<compile_context>
chip_gen: v6e
topology: v6e:2x2x1
jax: 0.10.0
libtpu: 0.0.40
codegen_flags: <defaults>
</compile_context>

<pallas_src>
import functools
import math

import jax
import jax.numpy as jnp
from jax import lax
from jax.experimental import pallas as pl
from jax.experimental.pallas import tpu as pltpu

EPS = 1e-6       # LayerNorm eps (Annotated Transformer: unbiased std + eps)
NEG_INF = -1e9   # masked_fill value
VMEM_LIMIT = 32 * 1024 * 1024   # <= physical VMEM on v5e/v6e (128 MiB) and v7x (64 MiB)


def _params(*sem):
    return pltpu.CompilerParams(dimension_semantics=sem, vmem_limit_bytes=VMEM_LIMIT)


def _row_tile(n, prefer=512):
    """Largest multiple-of-8 divisor of n that is <= prefer; when n >= 16 prefer a
    tile that leaves >= 2 grid steps (so both v7x TensorCores get work)."""
    target = min(prefer, max(8, n // 2)) if n >= 16 else min(prefer, n)
    best = None
    t = 8
    while t <= min(n, target):
        if n % t == 0:
            best = t
        t += 8
    return best if best is not None else n


def _kv_tile(sk, prefer=512):
    """KV tile: full Sk for short sequences, else a multiple-of-128 divisor (keeps
    the mask BlockSpec last dim lane-aligned)."""
    if sk <= prefer:
        return sk
    best = None
    t = 128
    while t <= prefer:
        if sk % t == 0:
            best = t
        t += 128
    return best if best is not None else sk


def _layernorm_f32(x, g, b):
    mean = jnp.mean(x, axis=-1, keepdims=True)
    diff = x - mean
    var = jnp.sum(diff * diff, axis=-1, keepdims=True) / (x.shape[-1] - 1)  # unbiased
    inv = pl.reciprocal(jnp.sqrt(var) + EPS, approx=True)  # EUP slot, off VALU path
    return g * diff * inv + b


# --------------------------- Pallas kernel bodies ---------------------------

def _ln_qkv_kernel(x_ref, g_ref, b_ref, wq_ref, bq_ref, wkv_ref, bkv_ref,
                   q_ref, kv_ref):
    """LayerNorm(x) then fused Q and [K|V] projections (one activation read).
    f32 accumulation, bf16 store (attention consumes bf16 anyway)."""
    xn = _layernorm_f32(x_ref[...], g_ref[...], b_ref[...]).astype(jnp.bfloat16)
    q_ref[...] = (jnp.dot(xn, wq_ref[...], preferred_element_type=jnp.float32)
                  + bq_ref[...]).astype(q_ref.dtype)
    kv_ref[...] = (jnp.dot(xn, wkv_ref[...], preferred_element_type=jnp.float32)
                   + bkv_ref[...]).astype(kv_ref.dtype)


def _ln_linear_kernel(x_ref, g_ref, b_ref, w_ref, bias_ref, o_ref):
    """LayerNorm(x) @ W + b, bf16 store."""
    xn = _layernorm_f32(x_ref[...], g_ref[...], b_ref[...]).astype(jnp.bfloat16)
    o_ref[...] = (jnp.dot(xn, w_ref[...], preferred_element_type=jnp.float32)
                  + bias_ref[...]).astype(o_ref.dtype)


def _linear_kernel(x_ref, w_ref, bias_ref, o_ref):
    """x @ W + b (encoder-side K/V projection, no LN), bf16 store."""
    o_ref[...] = (jnp.dot(x_ref[...].astype(jnp.bfloat16), w_ref[...],
                          preferred_element_type=jnp.float32)
                  + bias_ref[...]).astype(o_ref.dtype)


def _flash_attn_kernel(q_ref, kv_ref, mask_ref, wo_ref, bo_ref, res_ref, o_ref,
                       m_sc, l_sc, acc_sc, *, num_heads, head_dim):
    """Online-softmax attention over kv tiles (grid axis 2), all heads of one
    (batch, q-tile) per step; finalization applies 1/l, the per-head slice of the
    output projection (accumulated -> no concat) plus bias and residual."""
    k_step = pl.program_id(2)
    d_model = num_heads * head_dim

    @pl.when(k_step == 0)
    def _():
        m_sc[...] = jnp.full_like(m_sc, -jnp.inf)
        l_sc[...] = jnp.zeros_like(l_sc)
        acc_sc[...] = jnp.zeros_like(acc_sc)

    q = q_ref[0]                                         # (tq, D) bf16
    kv = kv_ref[0]                                       # (tk, 2D) bf16
    # compact 0/1 mask -> additive 0 / -1e9 bias, computed in-kernel (no f32 DMA)
    bias = (1.0 - mask_ref[0].astype(jnp.float32)) * NEG_INF   # (tq | 1, tk)
    inv_sqrt = 1.0 / math.sqrt(head_dim)

    for h in range(num_heads):
        sl = slice(h * head_dim, (h + 1) * head_dim)
        qs = q[:, sl]
        ks = kv[:, sl]
        vs = kv[:, d_model + h * head_dim:d_model + (h + 1) * head_dim]
        # contract last dims directly (no explicit K transpose materialized)
        s = lax.dot_general(qs, ks, (((1,), (1,)), ((), ())),
                            preferred_element_type=jnp.float32)
        s = s * inv_sqrt + bias                          # (tq, tk)
        m_prev = m_sc[h]                                 # (tq, 1)
        m_new = jnp.maximum(m_prev, jnp.max(s, axis=-1, keepdims=True))
        alpha = jnp.exp(m_prev - m_new)
        p = jnp.exp(s - m_new)
        l_sc[h] = alpha * l_sc[h] + jnp.sum(p, axis=-1, keepdims=True)
        acc_sc[h] = alpha * acc_sc[h] + jnp.dot(p.astype(jnp.bfloat16), vs,
                                                preferred_element_type=jnp.float32)
        m_sc[h] = m_new

    @pl.when(k_step == pl.num_programs(2) - 1)
    def _():
        out = res_ref[0] + bo_ref[...]                   # (tq, D) f32
        for h in range(num_heads):
            head_out = acc_sc[h] * pl.reciprocal(l_sc[h], approx=True)   # (tq, Dh)
            out = out + jnp.dot(head_out.astype(jnp.bfloat16),
                                wo_ref[h * head_dim:(h + 1) * head_dim, :],
                                preferred_element_type=jnp.float32)
        o_ref[0] = out


def _ln_ffn_res_kernel(x_ref, g_ref, b_ref, w1_ref, b1_ref, w2_ref, b2_ref, o_ref):
    """out = x + W2 @ relu(W1 @ LN(x) + b1) + b2, fully fused."""
    x = x_ref[...]
    xn = _layernorm_f32(x, g_ref[...], b_ref[...]).astype(jnp.bfloat16)
    h = jnp.dot(xn, w1_ref[...], preferred_element_type=jnp.float32) + b1_ref[...]
    h = jnp.maximum(h, 0.0)
    o_ref[...] = (jnp.dot(h.astype(jnp.bfloat16), w2_ref[...],
                          preferred_element_type=jnp.float32)
                  + b2_ref[...] + x)


# --------------------------- Pallas wrappers ---------------------------

def _const_spec(shape):
    return pl.BlockSpec(shape, lambda i: (0,) * len(shape))


def ln_qkv(x2d, g, b, wq, bq, wkv, bkv):
    N, D = x2d.shape
    D2 = wkv.shape[1]
    tm = _row_tile(N)
    return pl.pallas_call(
        _ln_qkv_kernel,
        out_shape=(jax.ShapeDtypeStruct((N, D), jnp.bfloat16),
                   jax.ShapeDtypeStruct((N, D2), jnp.bfloat16)),
        grid=(N // tm,),
        in_specs=[
            pl.BlockSpec((tm, D), lambda i: (i, 0)),
            _const_spec((1, D)), _const_spec((1, D)),
            _const_spec((D, D)), _const_spec((1, D)),
            _const_spec((D, D2)), _const_spec((1, D2)),
        ],
        out_specs=(pl.BlockSpec((tm, D), lambda i: (i, 0)),
                   pl.BlockSpec((tm, D2), lambda i: (i, 0))),
        compiler_params=_params("parallel"),
    )(x2d, g, b, wq, bq, wkv, bkv)


def ln_linear(x2d, g, b, w, bias):
    N, D = x2d.shape
    Do = w.shape[1]
    tm = _row_tile(N)
    return pl.pallas_call(
        _ln_linear_kernel,
        out_shape=jax.ShapeDtypeStruct((N, Do), jnp.bfloat16),
        grid=(N // tm,),
        in_specs=[
            pl.BlockSpec((tm, D), lambda i: (i, 0)),
            _const_spec((1, D)), _const_spec((1, D)),
            _const_spec((D, Do)), _const_spec((1, Do)),
        ],
        out_specs=pl.BlockSpec((tm, Do), lambda i: (i, 0)),
        compiler_params=_params("parallel"),
    )(x2d, g, b, w, bias)


def linear(x2d, w, bias):
    N, D = x2d.shape
    Do = w.shape[1]
    tm = _row_tile(N)
    return pl.pallas_call(
        _linear_kernel,
        out_shape=jax.ShapeDtypeStruct((N, Do), jnp.bfloat16),
        grid=(N // tm,),
        in_specs=[
            pl.BlockSpec((tm, D), lambda i: (i, 0)),
            _const_spec((D, Do)), _const_spec((1, Do)),
        ],
        out_specs=pl.BlockSpec((tm, Do), lambda i: (i, 0)),
        compiler_params=_params("parallel"),
    )(x2d, w, bias)


def attention_out_res(q, kv, mask, wo, bo, res, num_heads):
    """q: (B, Sq, D) bf16, kv: (B, Sk, 2D) bf16, mask: (B, 1|Sq, Sk) bf16 0/1,
    res: (B, Sq, D) f32.  Returns res + MHA(q, kv, mask) @ wo + bo (f32)."""
    B, Sq, D = q.shape
    Sk = kv.shape[1]
    Sm = mask.shape[1]
    assert Sm in (1, Sq), "mask must broadcast over queries or match Sq"
    Dh = D // num_heads
    tq = _row_tile(Sq, prefer=256)
    tk = _kv_tile(Sk)
    nq, nk = Sq // tq, Sk // tk

    if Sm == Sq:
        mask_spec = pl.BlockSpec((1, tq, tk), lambda b, i, k: (b, i, k))
    else:
        mask_spec = pl.BlockSpec((1, 1, tk), lambda b, i, k: (b, 0, k))

    kern = functools.partial(_flash_attn_kernel, num_heads=num_heads, head_dim=Dh)
    return pl.pallas_call(
        kern,
        out_shape=jax.ShapeDtypeStruct((B, Sq, D), jnp.float32),
        grid=(B, nq, nk),
        in_specs=[
            pl.BlockSpec((1, tq, D), lambda b, i, k: (b, i, 0)),
            pl.BlockSpec((1, tk, 2 * D), lambda b, i, k: (b, k, 0)),
            mask_spec,
            pl.BlockSpec((D, D), lambda b, i, k: (0, 0)),
            pl.BlockSpec((1, D), lambda b, i, k: (0, 0)),
            pl.BlockSpec((1, tq, D), lambda b, i, k: (b, i, 0)),
        ],
        out_specs=pl.BlockSpec((1, tq, D), lambda b, i, k: (b, i, 0)),
        scratch_shapes=[
            pltpu.VMEM((num_heads, tq, 1), jnp.float32),   # running max
            pltpu.VMEM((num_heads, tq, 1), jnp.float32),   # running sum
            pltpu.VMEM((num_heads, tq, Dh), jnp.float32),  # running PV accumulator
        ],
        compiler_params=_params("parallel", "parallel", "arbitrary"),
    )(q, kv, mask, wo, bo, res)


def ln_ffn_res(x2d, g, b, w1, b1, w2, b2):
    N, D = x2d.shape
    Dff = w1.shape[1]
    tm = _row_tile(N)
    return pl.pallas_call(
        _ln_ffn_res_kernel,
        out_shape=jax.ShapeDtypeStruct((N, D), jnp.float32),
        grid=(N // tm,),
        in_specs=[
            pl.BlockSpec((tm, D), lambda i: (i, 0)),
            _const_spec((1, D)), _const_spec((1, D)),
            _const_spec((D, Dff)), _const_spec((1, Dff)),
            _const_spec((Dff, D)), _const_spec((1, D)),
        ],
        out_specs=pl.BlockSpec((tm, D), lambda i: (i, 0)),
        compiler_params=_params("parallel"),
    )(x2d, g, b, w1, b1, w2, b2)


# --------------------------- Model glue ---------------------------

def prepare_params(params):
    """One-time (outside jit) weight prep: bf16 casts + K|V concatenation, so no
    per-step per-pallas_call .astype converts and no extra weight HBM round trips."""
    def prep_attn(p):
        return dict(
            wq=p["wq"].astype(jnp.bfloat16), bq=p["bq"],
            wkv=jnp.concatenate([p["wk"], p["wv"]], axis=1).astype(jnp.bfloat16),
            bkv=jnp.concatenate([p["bk"], p["bv"]], axis=1),
            wo=p["wo"].astype(jnp.bfloat16), bo=p["bo"])

    out = dict(params)
    out["self_attn"] = prep_attn(params["self_attn"])
    out["src_attn"] = prep_attn(params["src_attn"])
    out["ff_w1"] = params["ff_w1"].astype(jnp.bfloat16)
    out["ff_w2"] = params["ff_w2"].astype(jnp.bfloat16)
    return out


def decoder_layer_forward(params, encoded, x, src_mask, tgt_mask, num_heads):
    """x = x + self_attn(LN(x), tgt_mask); x = x + src_attn(LN(x), enc, src_mask);
    x = x + FFN(LN(x)).  `params` must come from prepare_params()."""
    B, St, D = x.shape
    Ss = encoded.shape[1]
    sa, ca = params["self_attn"], params["src_attn"]

    # Compact masks (no (B,Sq,Sk) f32 broadcast); pass bf16 directly to skip this cast.
    tgt_m = tgt_mask.astype(jnp.bfloat16)
    src_m = src_mask.astype(jnp.bfloat16)

    # ---- sublayer 1: masked self-attention (LN + QKV fused; flash attn + Wo + residual fused)
    q2, kv2 = ln_qkv(x.reshape(-1, D), params["ln1_g"], params["ln1_b"],
                     sa["wq"], sa["bq"], sa["wkv"], sa["bkv"])
    x = attention_out_res(q2.reshape(B, St, D), kv2.reshape(B, St, 2 * D),
                          tgt_m, sa["wo"], sa["bo"], x, num_heads)

    # ---- sublayer 2: encoder-decoder (source) attention
    q2 = ln_linear(x.reshape(-1, D), params["ln2_g"], params["ln2_b"],
                   ca["wq"], ca["bq"])
    kv2 = linear(encoded.reshape(-1, D), ca["wkv"], ca["bkv"])
    x = attention_out_res(q2.reshape(B, St, D), kv2.reshape(B, Ss, 2 * D),
                          src_m, ca["wo"], ca["bo"], x, num_heads)

    # ---- sublayer 3: position-wise feed-forward (LN + W1 + relu + W2 + residual fused)
    x = ln_ffn_res(x.reshape(-1, D), params["ln3_g"], params["ln3_b"],
                   params["ff_w1"], params["ff_b1"],
                   params["ff_w2"], params["ff_b2"]).reshape(B, St, D)
    return x


# --------------------------- Parameter init ---------------------------

def init_params(key, d_model, d_ff, num_heads):
    def lin(k, din, dout, scale=0.05):
        kw, kb = jax.random.split(k)
        w = scale * jax.random.normal(kw, (din, dout), jnp.float32)
        b = scale * jax.random.normal(kb, (1, dout), jnp.float32)
        return w, b

    def mha_params(k):
        kq, kk, kv, ko = jax.random.split(k, 4)
        wq, bq = lin(kq, d_model, d_model)
        wk, bk = lin(kk, d_model, d_model)
        wv, bv = lin(kv, d_model, d_model)
        wo, bo = lin(ko, d_model, d_model)
        return dict(wq=wq, bq=bq, wk=wk, bk=bk, wv=wv, bv=bv, wo=wo, bo=bo)

    k_self, k_src, k_ff1, k_ff2 = jax.random.split(key, 4)
    w1, b1 = lin(k_ff1, d_model, d_ff)
    w2, b2 = lin(k_ff2, d_ff, d_model)
    ones = jnp.ones((1, d_model), jnp.float32)
    zeros = jnp.zeros((1, d_model), jnp.float32)
    return dict(
        self_attn=mha_params(k_self), src_attn=mha_params(k_src),
        ff_w1=w1, ff_b1=b1, ff_w2=w2, ff_b2=b2,
        ln1_g=ones, ln1_b=zeros, ln2_g=ones, ln2_b=zeros, ln3_g=ones, ln3_b=zeros,
    )


# --------------------------- Pure-JAX reference ---------------------------

def ref_forward(params, encoded, x, src_mask, tgt_mask, num_heads):
    D = x.shape[-1]

    def ln(t, g, b):
        mean = t.mean(-1, keepdims=True)
        diff = t - mean
        var = (diff * diff).sum(-1, keepdims=True) / (t.shape[-1] - 1)
        return g.reshape(-1) * diff / (jnp.sqrt(var) + EPS) + b.reshape(-1)

    def mha(p, q_in, k_in, v_in, mask):
        B, Sq, _ = q_in.shape
        Sk = k_in.shape[1]
        Dh = D // num_heads

        def split(t):
            return t.reshape(t.shape[0], t.shape[1], num_heads, Dh).transpose(0, 2, 1, 3)

        q = split(q_in @ p["wq"] + p["bq"].reshape(-1))
        k = split(k_in @ p["wk"] + p["bk"].reshape(-1))
        v = split(v_in @ p["wv"] + p["bv"].reshape(-1))
        s = jnp.einsum("bhqd,bhkd->bhqk", q, k) / jnp.sqrt(jnp.float32(Dh))
        m = jnp.broadcast_to(mask, (B, Sq, Sk))[:, None, :, :]
        s = jnp.where(m == 0, NEG_INF, s)
        a = jax.nn.softmax(s, axis=-1)
        o = jnp.einsum("bhqk,bhkd->bhqd", a, v).transpose(0, 2, 1, 3).reshape(B, Sq, D)
        return o @ p["wo"] + p["bo"].reshape(-1)

    xn = ln(x, params["ln1_g"], params["ln1_b"])
    x = x + mha(params["self_attn"], xn, xn, xn, tgt_mask)
    xn = ln(x, params["ln2_g"], params["ln2_b"])
    x = x + mha(params["src_attn"], xn, encoded, encoded, src_mask)
    xn = ln(x, params["ln3_g"], params["ln3_b"])
    h = jnp.maximum(xn @ params["ff_w1"] + params["ff_b1"].reshape(-1), 0.0)
    return x + h @ params["ff_w2"] + params["ff_b2"].reshape(-1)


# --------------------------- Main ---------------------------

if __name__ == "__main__":
    B, S_TGT, S_SRC, D, H, D_FF = 2, 8, 8, 32, 4, 64

    key = jax.random.PRNGKey(0)
    k_p, k_x, k_e = jax.random.split(key, 3)
    params = init_params(k_p, D, D_FF, H)
    rt_params = prepare_params(params)   # bf16 weight casts done ONCE, outside jit

    x = jax.random.normal(k_x, (B, S_TGT, D), jnp.float32)          # decoder input
    encoded = jax.random.normal(k_e, (B, S_SRC, D), jnp.float32)    # encoder output
    tgt_mask = jnp.tile(jnp.tril(jnp.ones((S_TGT, S_TGT), jnp.float32))[None], (B, 1, 1))
    src_mask = jnp.ones((B, 1, S_SRC), jnp.float32)

    fwd = jax.jit(decoder_layer_forward, static_argnums=(5,))
    out = fwd(rt_params, encoded, x, src_mask, tgt_mask, H)
    out = jax.block_until_ready(out)

    ref = ref_forward(params, encoded, x, src_mask, tgt_mask, H)
    assert out.shape == (B, S_TGT, D)
    max_err = float(jnp.max(jnp.abs(out - ref)))
    assert jnp.allclose(out, ref, atol=3e-2, rtol=3e-2), f"mismatch, max_err={max_err}"

    print("KERNEL_OK")
</pallas_src>

<mosaic_0001>
module attributes {stable_mosaic.version = 11 : i64} {
  func.func @_linear_kernel(%arg0: i32, %arg1: memref<8x32xf32, #tpu.memory_space<vmem>>, %arg2: memref<32x64xbf16, #tpu.memory_space<vmem>>, %arg3: memref<1x64xf32, #tpu.memory_space<vmem>>, %arg4: memref<8x64xbf16, #tpu.memory_space<vmem>>) attributes {dimension_semantics = [#tpu.dimension_semantics<parallel>], iteration_bounds = array<i64: 2>, scalar_prefetch = 0 : i64, scratch_operands = 0 : i64, tpu.core_type = #tpu.core_type<tc>, window_params = [{transform_indices = @transform_0, window_bounds = array<i64: 8, 32>}, {pipeline_mode = #tpu.pipeline_mode<synchronous>, transform_indices = @transform_1, window_bounds = array<i64: 32, 64>}, {pipeline_mode = #tpu.pipeline_mode<synchronous>, transform_indices = @transform_2, window_bounds = array<i64: 1, 64>}, {transform_indices = @transform_3, window_bounds = array<i64: 8, 64>}]} {
    %c0 = arith.constant 0 : index
    %c0_0 = arith.constant 0 : index
    %0 = vector.load %arg1[%c0, %c0_0] : memref<8x32xf32, #tpu.memory_space<vmem>>, vector<8x32xf32>
    %1 = arith.truncf %0 : vector<8x32xf32> to vector<8x32xbf16>
    %c0_1 = arith.constant 0 : index
    %c0_2 = arith.constant 0 : index
    %2 = vector.load %arg2[%c0_1, %c0_2] : memref<32x64xbf16, #tpu.memory_space<vmem>>, vector<32x64xbf16>
    %cst = arith.constant dense<0.000000e+00> : vector<8x64xf32>
    %3 = tpu.matmul %1, %2, %cst {dimension_numbers = #tpu.dot_dimension_numbers<[1], [0], [0], [1], [0, 0, 1, 1], [], []>} : vector<8x32xbf16>, vector<32x64xbf16>, vector<8x64xf32> -> vector<8x64xf32>
    %c0_3 = arith.constant 0 : index
    %c0_4 = arith.constant 0 : index
    %4 = vector.load %arg3[%c0_3, %c0_4] : memref<1x64xf32, #tpu.memory_space<vmem>>, vector<1x64xf32>
    %5 = vector.broadcast %4 : vector<1x64xf32> to vector<8x64xf32>
    %6 = arith.addf %3, %5 : vector<8x64xf32>
    %7 = arith.truncf %6 : vector<8x64xf32> to vector<8x64xbf16>
    %c0_5 = arith.constant 0 : index
    %c0_6 = arith.constant 0 : index
    %8 = vector.load %arg4[%c0_5, %c0_6] : memref<8x64xbf16, #tpu.memory_space<vmem>>, vector<8x64xbf16>
    tpu.vector_store %arg4[%c0_5, %c0_6], %7 {strides = array<i32>} : memref<8x64xbf16, #tpu.memory_space<vmem>>, vector<8x64xbf16>,
    return
  }
  func.func @transform_0(%arg0: i32) -> (i32, i32) {
    %c0_i32 = arith.constant 0 : i32
    %c0_i32_0 = arith.constant 0 : i32
    return %arg0, %c0_i32 : i32, i32
  }
  func.func @transform_1(%arg0: i32) -> (i32, i32) {
    %c0_i32 = arith.constant 0 : i32
    %c0_i32_0 = arith.constant 0 : i32
    %c0_i32_1 = arith.constant 0 : i32
    return %c0_i32, %c0_i32_0 : i32, i32
  }
  func.func @transform_2(%arg0: i32) -> (i32, i32) {
    %c0_i32 = arith.constant 0 : i32
    %c0_i32_0 = arith.constant 0 : i32
    %c0_i32_1 = arith.constant 0 : i32
    return %c0_i32, %c0_i32_0 : i32, i32
  }
  func.func @transform_3(%arg0: i32) -> (i32, i32) {
    %c0_i32 = arith.constant 0 : i32
    %c0_i32_0 = arith.constant 0 : i32
    return %arg0, %c0_i32 : i32, i32
  }
}

module attributes {stable_mosaic.version = 11 : i64} {
  func.func @_ln_qkv_kernel(%arg0: i32, %arg1: memref<8x32xf32, #tpu.memory_space<vmem>>, %arg2: memref<1x32xf32, #tpu.memory_space<vmem>>, %arg3: memref<1x32xf32, #tpu.memory_space<vmem>>, %arg4: memref<32x32xbf16, #tpu.memory_space<vmem>>, %arg5: memref<1x32xf32, #tpu.memory_space<vmem>>, %arg6: memref<32x64xbf16, #tpu.memory_space<vmem>>, %arg7: memref<1x64xf32, #tpu.memory_space<vmem>>, %arg8: memref<8x32xbf16, #tpu.memory_space<vmem>>, %arg9: memref<8x64xbf16, #tpu.memory_space<vmem>>) attributes {dimension_semantics = [#tpu.dimension_semantics<parallel>], iteration_bounds = array<i64: 2>, scalar_prefetch = 0 : i64, scratch_operands = 0 : i64, tpu.core_type = #tpu.core_type<tc>, window_params = [{transform_indices = @transform_0, window_bounds = array<i64: 8, 32>}, {pipeline_mode = #tpu.pipeline_mode<synchronous>, transform_indices = @transform_1, window_bounds = array<i64: 1, 32>}, {pipeline_mode = #tpu.pipeline_mode<synchronous>, transform_indices = @transform_2, window_bounds = array<i64: 1, 32>}, {pipeline_mode = #tpu.pipeline_mode<synchronous>, transform_indices = @transform_3, window_bounds = array<i64: 32, 32>}, {pipeline_mode = #tpu.pipeline_mode<synchronous>, transform_indices = @transform_4, window_bounds = array<i64: 1, 32>}, {pipeline_mode = #tpu.pipeline_mode<synchronous>, transform_indices = @transform_5, window_bounds = array<i64: 32, 64>}, {pipeline_mode = #tpu.pipeline_mode<synchronous>, transform_indices = @transform_6, window_bounds = array<i64: 1, 64>}, {transform_indices = @transform_7, window_bounds = array<i64: 8, 32>}, {transform_indices = @transform_8, window_bounds = array<i64: 8, 64>}]} {
    %c0 = arith.constant 0 : index
    %c0_0 = arith.constant 0 : index
    %0 = vector.load %arg1[%c0, %c0_0] : memref<8x32xf32, #tpu.memory_space<vmem>>, vector<8x32xf32>
    %c0_1 = arith.constant 0 : index
    %c0_2 = arith.constant 0 : index
    %1 = vector.load %arg2[%c0_1, %c0_2] : memref<1x32xf32, #tpu.memory_space<vmem>>, vector<1x32xf32>
    %c0_3 = arith.constant 0 : index
    %c0_4 = arith.constant 0 : index
    %2 = vector.load %arg3[%c0_3, %c0_4] : memref<1x32xf32, #tpu.memory_space<vmem>>, vector<1x32xf32>
    %cst = arith.constant dense<0.000000e+00> : vector<8xf32>
    %3 = vector.multi_reduction <add>, %0, %cst [1] : vector<8x32xf32> to vector<8xf32>
    %4 = vector.shape_cast %3 : vector<8xf32> to vector<8x1xf32>
    %cst_5 = arith.constant 3.200000e+01 : f32
    %5 = vector.broadcast %cst_5 : f32 to vector<8x1xf32>
    %6 = arith.divf %4, %5 : vector<8x1xf32>
    %7 = vector.broadcast %6 : vector<8x1xf32> to vector<8x32xf32>
    %8 = arith.subf %0, %7 : vector<8x32xf32>
    %9 = arith.mulf %8, %8 : vector<8x32xf32>
    %cst_6 = arith.constant dense<0.000000e+00> : vector<8xf32>
    %10 = vector.multi_reduction <add>, %9, %cst_6 [1] : vector<8x32xf32> to vector<8xf32>
    %11 = vector.shape_cast %10 : vector<8xf32> to vector<8x1xf32>
    %cst_7 = arith.constant 3.100000e+01 : f32
    %12 = vector.broadcast %cst_7 : f32 to vector<8x1xf32>
    %13 = arith.divf %11, %12 : vector<8x1xf32>
    %14 = math.sqrt %13 : vector<8x1xf32>
    %cst_8 = arith.constant 9.99999997E-7 : f32
    %15 = vector.broadcast %cst_8 : f32 to vector<8x1xf32>
    %16 = arith.addf %14, %15 : vector<8x1xf32>
    %17 = tpu.reciprocal %16 {approx = true} : vector<8x1xf32> -> vector<8x1xf32>
    %18 = vector.broadcast %1 : vector<1x32xf32> to vector<8x32xf32>
    %19 = arith.mulf %18, %8 : vector<8x32xf32>
    %20 = vector.broadcast %17 : vector<8x1xf32> to vector<8x32xf32>
    %21 = arith.mulf %19, %20 : vector<8x32xf32>
    %22 = vector.broadcast %2 : vector<1x32xf32> to vector<8x32xf32>
    %23 = arith.addf %21, %22 : vector<8x32xf32>
    %24 = arith.truncf %23 : vector<8x32xf32> to vector<8x32xbf16>
    %c0_9 = arith.constant 0 : index
    %c0_10 = arith.constant 0 : index
    %25 = vector.load %arg4[%c0_9, %c0_10] : memref<32x32xbf16, #tpu.memory_space<vmem>>, vector<32x32xbf16>
    %cst_11 = arith.constant dense<0.000000e+00> : vector<8x32xf32>
    %26 = tpu.matmul %24, %25, %cst_11 {dimension_numbers = #tpu.dot_dimension_numbers<[1], [0], [0], [1], [0, 0, 1, 1], [], []>} : vector<8x32xbf16>, vector<32x32xbf16>, vector<8x32xf32> -> vector<8x32xf32>
    %c0_12 = arith.constant 0 : index
    %c0_13 = arith.constant 0 : index
    %27 = vector.load %arg5[%c0_12, %c0_13] : memref<1x32xf32, #tpu.memory_space<vmem>>, vector<1x32xf32>
    %28 = vector.broadcast %27 : vector<1x32xf32> to vector<8x32xf32>
    %29 = arith.addf %26, %28 : vector<8x32xf32>
    %30 = arith.truncf %29 : vector<8x32xf32> to vector<8x32xbf16>
    %c0_14 = arith.constant 0 : index
    %c0_15 = arith.constant 0 : index
    %31 = vector.load %arg8[%c0_14, %c0_15] : memref<8x32xbf16, #tpu.memory_space<vmem>>, vector<8x32xbf16>
    tpu.vector_store %arg8[%c0_14, %c0_15], %30 {strides = array<i32>} : memref<8x32xbf16, #tpu.memory_space<vmem>>, vector<8x32xbf16>,
    %c0_16 = arith.constant 0 : index
    %c0_17 = arith.constant 0 : index
    %32 = vector.load %arg6[%c0_16, %c0_17] : memref<32x64xbf16, #tpu.memory_space<vmem>>, vector<32x64xbf16>
    %cst_18 = arith.constant dense<0.000000e+00> : vector<8x64xf32>
    %33 = tpu.matmul %24, %32, %cst_18 {dimension_numbers = #tpu.dot_dimension_numbers<[1], [0], [0], [1], [0, 0, 1, 1], [], []>} : vector<8x32xbf16>, vector<32x64xbf16>, vector<8x64xf32> -> vector<8x64xf32>
    %c0_19 = arith.constant 0 : index
    %c0_20 = arith.constant 0 : index
    %34 = vector.load %arg7[%c0_19, %c0_20] : memref<1x64xf32, #tpu.memory_space<vmem>>, vector<1x64xf32>
    %35 = vector.broadcast %34 : vector<1x64xf32> to vector<8x64xf32>
    %36 = arith.addf %33, %35 : vector<8x64xf32>
    %37 = arith.truncf %36 : vector<8x64xf32> to vector<8x64xbf16>
    %c0_21 = arith.constant 0 : index
    %c0_22 = arith.constant 0 : index
    %38 = vector.load %arg9[%c0_21, %c0_22] : memref<8x64xbf16, #tpu.memory_space<vmem>>, vector<8x64xbf16>
    tpu.vector_store %arg9[%c0_21, %c0_22], %37 {strides = array<i32>} : memref<8x64xbf16, #tpu.memory_space<vmem>>, vector<8x64xbf16>,
    return
  }
  func.func @transform_0(%arg0: i32) -> (i32, i32) {
    %c0_i32 = arith.constant 0 : i32
    %c0_i32_0 = arith.constant 0 : i32
    return %arg0, %c0_i32 : i32, i32
  }
  func.func @transform_1(%arg0: i32) -> (i32, i32) {
    %c0_i32 = arith.constant 0 : i32
    %c0_i32_0 = arith.constant 0 : i32
    %c0_i32_1 = arith.constant 0 : i32
    return %c0_i32, %c0_i32_0 : i32, i32
  }
  func.func @transform_2(%arg0: i32) -> (i32, i32) {
    %c0_i32 = arith.constant 0 : i32
    %c0_i32_0 = arith.constant 0 : i32
    %c0_i32_1 = arith.constant 0 : i32
    return %c0_i32, %c0_i32_0 : i32, i32
  }
  func.func @transform_3(%arg0: i32) -> (i32, i32) {
    %c0_i32 = arith.constant 0 : i32
    %c0_i32_0 = arith.constant 0 : i32
    %c0_i32_1 = arith.constant 0 : i32
    return %c0_i32, %c0_i32_0 : i32, i32
  }
  func.func @transform_4(%arg0: i32) -> (i32, i32) {
    %c0_i32 = arith.constant 0 : i32
    %c0_i32_0 = arith.constant 0 : i32
    %c0_i32_1 = arith.constant 0 : i32
    return %c0_i32, %c0_i32_0 : i32, i32
  }
  func.func @transform_5(%arg0: i32) -> (i32, i32) {
    %c0_i32 = arith.constant 0 : i32
    %c0_i32_0 = arith.constant 0 : i32
    %c0_i32_1 = arith.constant 0 : i32
    return %c0_i32, %c0_i32_0 : i32, i32
  }
  func.func @transform_6(%arg0: i32) -> (i32, i32) {
    %c0_i32 = arith.constant 0 : i32
    %c0_i32_0 = arith.constant 0 : i32
    %c0_i32_1 = arith.constant 0 : i32
    return %c0_i32, %c0_i32_0 : i32, i32
  }
  func.func @transform_7(%arg0: i32) -> (i32, i32) {
    %c0_i32 = arith.constant 0 : i32
    %c0_i32_0 = arith.constant 0 : i32
    return %arg0, %c0_i32 : i32, i32
  }
  func.func @transform_8(%arg0: i32) -> (i32, i32) {
    %c0_i32 = arith.constant 0 : i32
    %c0_i32_0 = arith.constant 0 : i32
    return %arg0, %c0_i32 : i32, i32
  }
}

module attributes {stable_mosaic.version = 11 : i64} {
  func.func @_ln_linear_kernel(%arg0: i32, %arg1: memref<8x32xf32, #tpu.memory_space<vmem>>, %arg2: memref<1x32xf32, #tpu.memory_space<vmem>>, %arg3: memref<1x32xf32, #tpu.memory_space<vmem>>, %arg4: memref<32x32xbf16, #tpu.memory_space<vmem>>, %arg5: memref<1x32xf32, #tpu.memory_space<vmem>>, %arg6: memref<8x32xbf16, #tpu.memory_space<vmem>>) attributes {dimension_semantics = [#tpu.dimension_semantics<parallel>], iteration_bounds = array<i64: 2>, scalar_prefetch = 0 : i64, scratch_operands = 0 : i64, tpu.core_type = #tpu.core_type<tc>, window_params = [{transform_indices = @transform_0, window_bounds = array<i64: 8, 32>}, {pipeline_mode = #tpu.pipeline_mode<synchronous>, transform_indices = @transform_1, window_bounds = array<i64: 1, 32>}, {pipeline_mode = #tpu.pipeline_mode<synchronous>, transform_indices = @transform_2, window_bounds = array<i64: 1, 32>}, {pipeline_mode = #tpu.pipeline_mode<synchronous>, transform_indices = @transform_3, window_bounds = array<i64: 32, 32>}, {pipeline_mode = #tpu.pipeline_mode<synchronous>, transform_indices = @transform_4, window_bounds = array<i64: 1, 32>}, {transform_indices = @transform_5, window_bounds = array<i64: 8, 32>}]} {
    %c0 = arith.constant 0 : index
    %c0_0 = arith.constant 0 : index
    %0 = vector.load %arg1[%c0, %c0_0] : memref<8x32xf32, #tpu.memory_space<vmem>>, vector<8x32xf32>
    %c0_1 = arith.constant 0 : index
    %c0_2 = arith.constant 0 : index
    %1 = vector.load %arg2[%c0_1, %c0_2] : memref<1x32xf32, #tpu.memory_space<vmem>>, vector<1x32xf32>
    %c0_3 = arith.constant 0 : index
    %c0_4 = arith.constant 0 : index
    %2 = vector.load %arg3[%c0_3, %c0_4] : memref<1x32xf32, #tpu.memory_space<vmem>>, vector<1x32xf32>
    %cst = arith.constant dense<0.000000e+00> : vector<8xf32>
    %3 = vector.multi_reduction <add>, %0, %cst [1] : vector<8x32xf32> to vector<8xf32>
    %4 = vector.shape_cast %3 : vector<8xf32> to vector<8x1xf32>
    %cst_5 = arith.constant 3.200000e+01 : f32
    %5 = vector.broadcast %cst_5 : f32 to vector<8x1xf32>
    %6 = arith.divf %4, %5 : vector<8x1xf32>
    %7 = vector.broadcast %6 : vector<8x1xf32> to vector<8x32xf32>
    %8 = arith.subf %0, %7 : vector<8x32xf32>
    %9 = arith.mulf %8, %8 : vector<8x32xf32>
    %cst_6 = arith.constant dense<0.000000e+00> : vector<8xf32>
    %10 = vector.multi_reduction <add>, %9, %cst_6 [1] : vector<8x32xf32> to vector<8xf32>
    %11 = vector.shape_cast %10 : vector<8xf32> to vector<8x1xf32>
    %cst_7 = arith.constant 3.100000e+01 : f32
    %12 = vector.broadcast %cst_7 : f32 to vector<8x1xf32>
    %13 = arith.divf %11, %12 : vector<8x1xf32>
    %14 = math.sqrt %13 : vector<8x1xf32>
    %cst_8 = arith.constant 9.99999997E-7 : f32
    %15 = vector.broadcast %cst_8 : f32 to vector<8x1xf32>
    %16 = arith.addf %14, %15 : vector<8x1xf32>
    %17 = tpu.reciprocal %16 {approx = true} : vector<8x1xf32> -> vector<8x1xf32>
    %18 = vector.broadcast %1 : vector<1x32xf32> to vector<8x32xf32>
    %19 = arith.mulf %18, %8 : vector<8x32xf32>
    %20 = vector.broadcast %17 : vector<8x1xf32> to vector<8x32xf32>
    %21 = arith.mulf %19, %20 : vector<8x32xf32>
    %22 = vector.broadcast %2 : vector<1x32xf32> to vector<8x32xf32>
    %23 = arith.addf %21, %22 : vector<8x32xf32>
    %24 = arith.truncf %23 : vector<8x32xf32> to vector<8x32xbf16>
    %c0_9 = arith.constant 0 : index
    %c0_10 = arith.constant 0 : index
    %25 = vector.load %arg4[%c0_9, %c0_10] : memref<32x32xbf16, #tpu.memory_space<vmem>>, vector<32x32xbf16>
    %cst_11 = arith.constant dense<0.000000e+00> : vector<8x32xf32>
    %26 = tpu.matmul %24, %25, %cst_11 {dimension_numbers = #tpu.dot_dimension_numbers<[1], [0], [0], [1], [0, 0, 1, 1], [], []>} : vector<8x32xbf16>, vector<32x32xbf16>, vector<8x32xf32> -> vector<8x32xf32>
    %c0_12 = arith.constant 0 : index
    %c0_13 = arith.constant 0 : index
    %27 = vector.load %arg5[%c0_12, %c0_13] : memref<1x32xf32, #tpu.memory_space<vmem>>, vector<1x32xf32>
    %28 = vector.broadcast %27 : vector<1x32xf32> to vector<8x32xf32>
    %29 = arith.addf %26, %28 : vector<8x32xf32>
    %30 = arith.truncf %29 : vector<8x32xf32> to vector<8x32xbf16>
    %c0_14 = arith.constant 0 : index
    %c0_15 = arith.constant 0 : index
    %31 = vector.load %arg6[%c0_14, %c0_15] : memref<8x32xbf16, #tpu.memory_space<vmem>>, vector<8x32xbf16>
    tpu.vector_store %arg6[%c0_14, %c0_15], %30 {strides = array<i32>} : memref<8x32xbf16, #tpu.memory_space<vmem>>, vector<8x32xbf16>,
    return
  }
  func.func @transform_0(%arg0: i32) -> (i32, i32) {
    %c0_i32 = arith.constant 0 : i32
    %c0_i32_0 = arith.constant 0 : i32
    return %arg0, %c0_i32 : i32, i32
  }
  func.func @transform_1(%arg0: i32) -> (i32, i32) {
    %c0_i32 = arith.constant 0 : i32
    %c0_i32_0 = arith.constant 0 : i32
    %c0_i32_1 = arith.constant 0 : i32
    return %c0_i32, %c0_i32_0 : i32, i32
  }
  func.func @transform_2(%arg0: i32) -> (i32, i32) {
    %c0_i32 = arith.constant 0 : i32
    %c0_i32_0 = arith.constant 0 : i32
    %c0_i32_1 = arith.constant 0 : i32
    return %c0_i32, %c0_i32_0 : i32, i32
  }
  func.func @transform_3(%arg0: i32) -> (i32, i32) {
    %c0_i32 = arith.constant 0 : i32
    %c0_i32_0 = arith.constant 0 : i32
    %c0_i32_1 = arith.constant 0 : i32
    return %c0_i32, %c0_i32_0 : i32, i32
  }
  func.func @transform_4(%arg0: i32) -> (i32, i32) {
    %c0_i32 = arith.constant 0 : i32
    %c0_i32_0 = arith.constant 0 : i32
    %c0_i32_1 = arith.constant 0 : i32
    return %c0_i32, %c0_i32_0 : i32, i32
  }
  func.func @transform_5(%arg0: i32) -> (i32, i32) {
    %c0_i32 = arith.constant 0 : i32
    %c0_i32_0 = arith.constant 0 : i32
    return %arg0, %c0_i32 : i32, i32
  }
}

module attributes {stable_mosaic.version = 11 : i64} {
  func.func @_flash_attn_kernel(%arg0: i32, %arg1: i32, %arg2: i32, %arg3: memref<1x8x32xbf16, #tpu.memory_space<vmem>>, %arg4: memref<1x8x64xbf16, #tpu.memory_space<vmem>>, %arg5: memref<1x8x8xbf16, #tpu.memory_space<vmem>>, %arg6: memref<32x32xbf16, #tpu.memory_space<vmem>>, %arg7: memref<1x32xf32, #tpu.memory_space<vmem>>, %arg8: memref<1x8x32xf32, #tpu.memory_space<vmem>>, %arg9: memref<1x8x32xf32, #tpu.memory_space<vmem>>, %arg10: memref<4x8x1xf32, #tpu.memory_space<vmem>>, %arg11: memref<4x8x1xf32, #tpu.memory_space<vmem>>, %arg12: memref<4x8x8xf32, #tpu.memory_space<vmem>>) attributes {dimension_semantics = [#tpu.dimension_semantics<parallel>, #tpu.dimension_semantics<parallel>, #tpu.dimension_semantics<arbitrary>], iteration_bounds = array<i64: 2, 1, 1>, scalar_prefetch = 0 : i64, scratch_operands = 3 : i64, tpu.core_type = #tpu.core_type<tc>, window_params = [{transform_indices = @transform_0, window_bounds = array<i64: 1, 8, 32>}, {transform_indices = @transform_1, window_bounds = array<i64: 1, 8, 64>}, {transform_indices = @transform_2, window_bounds = array<i64: 1, 8, 8>}, {pipeline_mode = #tpu.pipeline_mode<synchronous>, transform_indices = @transform_3, window_bounds = array<i64: 32, 32>}, {pipeline_mode = #tpu.pipeline_mode<synchronous>, transform_indices = @transform_4, window_bounds = array<i64: 1, 32>}, {transform_indices = @transform_5, window_bounds = array<i64: 1, 8, 32>}, {transform_indices = @transform_6, window_bounds = array<i64: 1, 8, 32>}]} {
    %c0_i32 = arith.constant 0 : i32
    %0 = arith.cmpi eq, %arg2, %c0_i32 : i32
    %1 = arith.extui %0 : i1 to i32
    %c0_i32_0 = arith.constant 0 : i32
    %2 = arith.cmpi ne, %1, %c0_i32_0 : i32
    scf.if %2 {
      %cst_101 = arith.constant 0xFF800000 : f32
      %173 = vector.broadcast %cst_101 : f32 to vector<4x8x1xf32>
      %c0_102 = arith.constant 0 : index
      %c0_103 = arith.constant 0 : index
      %c0_104 = arith.constant 0 : index
      %174 = vector.load %arg10[%c0_102, %c0_103, %c0_104] : memref<4x8x1xf32, #tpu.memory_space<vmem>>, vector<4x8x1xf32>
      tpu.vector_store %arg10[%c0_102, %c0_103, %c0_104], %173 {strides = array<i32>} : memref<4x8x1xf32, #tpu.memory_space<vmem>>, vector<4x8x1xf32>,
      %cst_105 = arith.constant 0.000000e+00 : f32
      %175 = vector.broadcast %cst_105 : f32 to vector<4x8x1xf32>
      %c0_106 = arith.constant 0 : index
      %c0_107 = arith.constant 0 : index
      %c0_108 = arith.constant 0 : index
      %176 = vector.load %arg11[%c0_106, %c0_107, %c0_108] : memref<4x8x1xf32, #tpu.memory_space<vmem>>, vector<4x8x1xf32>
      tpu.vector_store %arg11[%c0_106, %c0_107, %c0_108], %175 {strides = array<i32>} : memref<4x8x1xf32, #tpu.memory_space<vmem>>, vector<4x8x1xf32>,
      %cst_109 = arith.constant 0.000000e+00 : f32
      %177 = vector.broadcast %cst_109 : f32 to vector<4x8x8xf32>
      %c0_110 = arith.constant 0 : index
      %c0_111 = arith.constant 0 : index
      %c0_112 = arith.constant 0 : index
      %178 = vector.load %arg12[%c0_110, %c0_111, %c0_112] : memref<4x8x8xf32, #tpu.memory_space<vmem>>, vector<4x8x8xf32>
      tpu.vector_store %arg12[%c0_110, %c0_111, %c0_112], %177 {strides = array<i32>} : memref<4x8x8xf32, #tpu.memory_space<vmem>>, vector<4x8x8xf32>,
    } else {
    }
    %c0 = arith.constant 0 : index
    %c0_1 = arith.constant 0 : index
    %c0_2 = arith.constant 0 : index
    %3 = vector.load %arg3[%c0, %c0_1, %c0_2] : memref<1x8x32xbf16, #tpu.memory_space<vmem>>, vector<1x8x32xbf16>
    %4 = vector.shape_cast %3 : vector<1x8x32xbf16> to vector<8x32xbf16>
    %c0_3 = arith.constant 0 : index
    %c0_4 = arith.constant 0 : index
    %c0_5 = arith.constant 0 : index
    %5 = vector.load %arg4[%c0_3, %c0_4, %c0_5] : memref<1x8x64xbf16, #tpu.memory_space<vmem>>, vector<1x8x64xbf16>
    %6 = vector.shape_cast %5 : vector<1x8x64xbf16> to vector<8x64xbf16>
    %c0_6 = arith.constant 0 : index
    %c0_7 = arith.constant 0 : index
    %c0_8 = arith.constant 0 : index
    %7 = vector.load %arg5[%c0_6, %c0_7, %c0_8] : memref<1x8x8xbf16, #tpu.memory_space<vmem>>, vector<1x8x8xbf16>
    %8 = vector.shape_cast %7 : vector<1x8x8xbf16> to vector<8x8xbf16>
    %9 = arith.extf %8 : vector<8x8xbf16> to vector<8x8xf32>
    %cst = arith.constant 1.000000e+00 : f32
    %10 = vector.broadcast %cst : f32 to vector<8x8xf32>
    %11 = arith.subf %10, %9 : vector<8x8xf32>
    %cst_9 = arith.constant -1.000000e+09 : f32
    %12 = vector.broadcast %cst_9 : f32 to vector<8x8xf32>
    %13 = arith.mulf %11, %12 : vector<8x8xf32>
    %14 = vector.extract_strided_slice %4 {offsets = [0, 0], sizes = [8, 8], strides = [1, 1]} : vector<8x32xbf16> to vector<8x8xbf16>
    %15 = vector.extract_strided_slice %6 {offsets = [0, 0], sizes = [8, 8], strides = [1, 1]} : vector<8x64xbf16> to vector<8x8xbf16>
    %16 = vector.extract_strided_slice %6 {offsets = [0, 32], sizes = [8, 8], strides = [1, 1]} : vector<8x64xbf16> to vector<8x8xbf16>
    %cst_10 = arith.constant dense<0.000000e+00> : vector<8x8xf32>
    %17 = tpu.matmul %14, %15, %cst_10 {dimension_numbers = #tpu.dot_dimension_numbers<[1], [1], [0], [0], [0, 0, 1, 0], [], []>} : vector<8x8xbf16>, vector<8x8xbf16>, vector<8x8xf32> -> vector<8x8xf32>
    %cst_11 = arith.constant 0.353553385 : f32
    %18 = vector.broadcast %cst_11 : f32 to vector<8x8xf32>
    %19 = arith.mulf %17, %18 : vector<8x8xf32>
    %20 = arith.addf %19, %13 : vector<8x8xf32>
    %c0_12 = arith.constant 0 : index
    %c0_13 = arith.constant 0 : index
    %c0_14 = arith.constant 0 : index
    %21 = vector.load %arg10[%c0_12, %c0_13, %c0_14] : memref<4x8x1xf32, #tpu.memory_space<vmem>>, vector<1x8x1xf32>
    %22 = vector.shape_cast %21 : vector<1x8x1xf32> to vector<8x1xf32>
    %cst_15 = arith.constant dense<0xFF800000> : vector<8xf32>
    %23 = vector.multi_reduction <maximumf>, %20, %cst_15 [1] : vector<8x8xf32> to vector<8xf32>
    %24 = vector.shape_cast %23 : vector<8xf32> to vector<8x1xf32>
    %25 = arith.maximumf %22, %24 : vector<8x1xf32>
    %26 = arith.subf %22, %25 : vector<8x1xf32>
    %27 = math.exp %26 : vector<8x1xf32>
    %28 = vector.broadcast %25 : vector<8x1xf32> to vector<8x8xf32>
    %29 = arith.subf %20, %28 : vector<8x8xf32>
    %30 = math.exp %29 : vector<8x8xf32>
    %c0_16 = arith.constant 0 : index
    %c0_17 = arith.constant 0 : index
    %c0_18 = arith.constant 0 : index
    %31 = vector.load %arg11[%c0_16, %c0_17, %c0_18] : memref<4x8x1xf32, #tpu.memory_space<vmem>>, vector<1x8x1xf32>
    %32 = vector.shape_cast %31 : vector<1x8x1xf32> to vector<8x1xf32>
    %33 = arith.mulf %27, %32 : vector<8x1xf32>
    %cst_19 = arith.constant dense<0.000000e+00> : vector<8xf32>
    %34 = vector.multi_reduction <add>, %30, %cst_19 [1] : vector<8x8xf32> to vector<8xf32>
    %35 = vector.shape_cast %34 : vector<8xf32> to vector<8x1xf32>
    %36 = arith.addf %33, %35 : vector<8x1xf32>
    %c0_20 = arith.constant 0 : index
    %c0_21 = arith.constant 0 : index
    %c0_22 = arith.constant 0 : index
    %37 = vector.load %arg11[%c0_20, %c0_21, %c0_22] : memref<4x8x1xf32, #tpu.memory_space<vmem>>, vector<1x8x1xf32>
    %38 = vector.shape_cast %37 : vector<1x8x1xf32> to vector<8x1xf32>
    %39 = vector.shape_cast %36 : vector<8x1xf32> to vector<1x8x1xf32>
    tpu.vector_store %arg11[%c0_20, %c0_21, %c0_22], %39 {strides = array<i32>} : memref<4x8x1xf32, #tpu.memory_space<vmem>>, vector<1x8x1xf32>,
    %c0_23 = arith.constant 0 : index
    %c0_24 = arith.constant 0 : index
    %c0_25 = arith.constant 0 : index
    %40 = vector.load %arg12[%c0_23, %c0_24, %c0_25] : memref<4x8x8xf32, #tpu.memory_space<vmem>>, vector<1x8x8xf32>
    %41 = vector.shape_cast %40 : vector<1x8x8xf32> to vector<8x8xf32>
    %42 = vector.broadcast %27 : vector<8x1xf32> to vector<8x8xf32>
    %43 = arith.mulf %42, %41 : vector<8x8xf32>
    %44 = arith.truncf %30 : vector<8x8xf32> to vector<8x8xbf16>
    %cst_26 = arith.constant dense<0.000000e+00> : vector<8x8xf32>
    %45 = tpu.matmul %44, %16, %cst_26 {dimension_numbers = #tpu.dot_dimension_numbers<[1], [0], [0], [1], [0, 0, 1, 1], [], []>} : vector<8x8xbf16>, vector<8x8xbf16>, vector<8x8xf32> -> vector<8x8xf32>
    %46 = arith.addf %43, %45 : vector<8x8xf32>
    %c0_27 = arith.constant 0 : index
    %c0_28 = arith.constant 0 : index
    %c0_29 = arith.constant 0 : index
    %47 = vector.load %arg12[%c0_27, %c0_28, %c0_29] : memref<4x8x8xf32, #tpu.memory_space<vmem>>, vector<1x8x8xf32>
    %48 = vector.shape_cast %47 : vector<1x8x8xf32> to vector<8x8xf32>
    %49 = vector.shape_cast %46 : vector<8x8xf32> to vector<1x8x8xf32>
    tpu.vector_store %arg12[%c0_27, %c0_28, %c0_29], %49 {strides = array<i32>} : memref<4x8x8xf32, #tpu.memory_space<vmem>>, vector<1x8x8xf32>,
    %c0_30 = arith.constant 0 : index
    %c0_31 = arith.constant 0 : index
    %c0_32 = arith.constant 0 : index
    %50 = vector.load %arg10[%c0_30, %c0_31, %c0_32] : memref<4x8x1xf32, #tpu.memory_space<vmem>>, vector<1x8x1xf32>
    %51 = vector.shape_cast %50 : vector<1x8x1xf32> to vector<8x1xf32>
    %52 = vector.shape_cast %25 : vector<8x1xf32> to vector<1x8x1xf32>
    tpu.vector_store %arg10[%c0_30, %c0_31, %c0_32], %52 {strides = array<i32>} : memref<4x8x1xf32, #tpu.memory_space<vmem>>, vector<1x8x1xf32>,
    %53 = vector.extract_strided_slice %4 {offsets = [0, 8], sizes = [8, 8], strides = [1, 1]} : vector<8x32xbf16> to vector<8x8xbf16>
    %54 = vector.extract_strided_slice %6 {offsets = [0, 8], sizes = [8, 8], strides = [1, 1]} : vector<8x64xbf16> to vector<8x8xbf16>
    %55 = vector.extract_strided_slice %6 {offsets = [0, 40], sizes = [8, 8], strides = [1, 1]} : vector<8x64xbf16> to vector<8x8xbf16>
    %cst_33 = arith.constant dense<0.000000e+00> : vector<8x8xf32>
    %56 = tpu.matmul %53, %54, %cst_33 {dimension_numbers = #tpu.dot_dimension_numbers<[1], [1], [0], [0], [0, 0, 1, 0], [], []>} : vector<8x8xbf16>, vector<8x8xbf16>, vector<8x8xf32> -> vector<8x8xf32>
    %cst_34 = arith.constant 0.353553385 : f32
    %57 = vector.broadcast %cst_34 : f32 to vector<8x8xf32>
    %58 = arith.mulf %56, %57 : vector<8x8xf32>
    %59 = arith.addf %58, %13 : vector<8x8xf32>
    %c1 = arith.constant 1 : index
    %c0_35 = arith.constant 0 : index
    %c0_36 = arith.constant 0 : index
    %60 = vector.load %arg10[%c1, %c0_35, %c0_36] : memref<4x8x1xf32, #tpu.memory_space<vmem>>, vector<1x8x1xf32>
    %61 = vector.shape_cast %60 : vector<1x8x1xf32> to vector<8x1xf32>
    %cst_37 = arith.constant dense<0xFF800000> : vector<8xf32>
    %62 = vector.multi_reduction <maximumf>, %59, %cst_37 [1] : vector<8x8xf32> to vector<8xf32>
    %63 = vector.shape_cast %62 : vector<8xf32> to vector<8x1xf32>
    %64 = arith.maximumf %61, %63 : vector<8x1xf32>
    %65 = arith.subf %61, %64 : vector<8x1xf32>
    %66 = math.exp %65 : vector<8x1xf32>
    %67 = vector.broadcast %64 : vector<8x1xf32> to vector<8x8xf32>
    %68 = arith.subf %59, %67 : vector<8x8xf32>
    %69 = math.exp %68 : vector<8x8xf32>
    %c1_38 = arith.constant 1 : index
    %c0_39 = arith.constant 0 : index
    %c0_40 = arith.constant 0 : index
    %70 = vector.load %arg11[%c1_38, %c0_39, %c0_40] : memref<4x8x1xf32, #tpu.memory_space<vmem>>, vector<1x8x1xf32>
    %71 = vector.shape_cast %70 : vector<1x8x1xf32> to vector<8x1xf32>
    %72 = arith.mulf %66, %71 : vector<8x1xf32>
    %cst_41 = arith.constant dense<0.000000e+00> : vector<8xf32>
    %73 = vector.multi_reduction <add>, %69, %cst_41 [1] : vector<8x8xf32> to vector<8xf32>
    %74 = vector.shape_cast %73 : vector<8xf32> to vector<8x1xf32>
    %75 = arith.addf %72, %74 : vector<8x1xf32>
    %c1_42 = arith.constant 1 : index
    %c0_43 = arith.constant 0 : index
    %c0_44 = arith.constant 0 : index
    %76 = vector.load %arg11[%c1_42, %c0_43, %c0_44] : memref<4x8x1xf32, #tpu.memory_space<vmem>>, vector<1x8x1xf32>
    %77 = vector.shape_cast %76 : vector<1x8x1xf32> to vector<8x1xf32>
    %78 = vector.shape_cast %75 : vector<8x1xf32> to vector<1x8x1xf32>
    tpu.vector_store %arg11[%c1_42, %c0_43, %c0_44], %78 {strides = array<i32>} : memref<4x8x1xf32, #tpu.memory_space<vmem>>, vector<1x8x1xf32>,
    %c1_45 = arith.constant 1 : index
    %c0_46 = arith.constant 0 : index
    %c0_47 = arith.constant 0 : index
    %79 = vector.load %arg12[%c1_45, %c0_46, %c0_47] : memref<4x8x8xf32, #tpu.memory_space<vmem>>, vector<1x8x8xf32>
    %80 = vector.shape_cast %79 : vector<1x8x8xf32> to vector<8x8xf32>
    %81 = vector.broadcast %66 : vector<8x1xf32> to vector<8x8xf32>
    %82 = arith.mulf %81, %80 : vector<8x8xf32>
    %83 = arith.truncf %69 : vector<8x8xf32> to vector<8x8xbf16>
    %cst_48 = arith.constant dense<0.000000e+00> : vector<8x8xf32>
    %84 = tpu.matmul %83, %55, %cst_48 {dimension_numbers = #tpu.dot_dimension_numbers<[1], [0], [0], [1], [0, 0, 1, 1], [], []>} : vector<8x8xbf16>, vector<8x8xbf16>, vector<8x8xf32> -> vector<8x8xf32>
    %85 = arith.addf %82, %84 : vector<8x8xf32>
    %c1_49 = arith.constant 1 : index
    %c0_50 = arith.constant 0 : index
    %c0_51 = arith.constant 0 : index
    %86 = vector.load %arg12[%c1_49, %c0_50, %c0_51] : memref<4x8x8xf32, #tpu.memory_space<vmem>>, vector<1x8x8xf32>
    %87 = vector.shape_cast %86 : vector<1x8x8xf32> to vector<8x8xf32>
    %88 = vector.shape_cast %85 : vector<8x8xf32> to vector<1x8x8xf32>
    tpu.vector_store %arg12[%c1_49, %c0_50, %c0_51], %88 {strides = array<i32>} : memref<4x8x8xf32, #tpu.memory_space<vmem>>, vector<1x8x8xf32>,
    %c1_52 = arith.constant 1 : index
    %c0_53 = arith.constant 0 : index
    %c0_54 = arith.constant 0 : index
    %89 = vector.load %arg10[%c1_52, %c0_53, %c0_54] : memref<4x8x1xf32, #tpu.memory_space<vmem>>, vector<1x8x1xf32>
    %90 = vector.shape_cast %89 : vector<1x8x1xf32> to vector<8x1xf32>
    %91 = vector.shape_cast %64 : vector<8x1xf32> to vector<1x8x1xf32>
    tpu.vector_store %arg10[%c1_52, %c0_53, %c0_54], %91 {strides = array<i32>} : memref<4x8x1xf32, #tpu.memory_space<vmem>>, vector<1x8x1xf32>,
    %92 = vector.extract_strided_slice %4 {offsets = [0, 16], sizes = [8, 8], strides = [1, 1]} : vector<8x32xbf16> to vector<8x8xbf16>
    %93 = vector.extract_strided_slice %6 {offsets = [0, 16], sizes = [8, 8], strides = [1, 1]} : vector<8x64xbf16> to vector<8x8xbf16>
    %94 = vector.extract_strided_slice %6 {offsets = [0, 48], sizes = [8, 8], strides = [1, 1]} : vector<8x64xbf16> to vector<8x8xbf16>
    %cst_55 = arith.constant dense<0.000000e+00> : vector<8x8xf32>
    %95 = tpu.matmul %92, %93, %cst_55 {dimension_numbers = #tpu.dot_dimension_numbers<[1], [1], [0], [0], [0, 0, 1, 0], [], []>} : vector<8x8xbf16>, vector<8x8xbf16>, vector<8x8xf32> -> vector<8x8xf32>
    %cst_56 = arith.constant 0.353553385 : f32
    %96 = vector.broadcast %cst_56 : f32 to vector<8x8xf32>
    %97 = arith.mulf %95, %96 : vector<8x8xf32>
    %98 = arith.addf %97, %13 : vector<8x8xf32>
    %c2 = arith.constant 2 : index
    %c0_57 = arith.constant 0 : index
    %c0_58 = arith.constant 0 : index
    %99 = vector.load %arg10[%c2, %c0_57, %c0_58] : memref<4x8x1xf32, #tpu.memory_space<vmem>>, vector<1x8x1xf32>
    %100 = vector.shape_cast %99 : vector<1x8x1xf32> to vector<8x1xf32>
    %cst_59 = arith.constant dense<0xFF800000> : vector<8xf32>
    %101 = vector.multi_reduction <maximumf>, %98, %cst_59 [1] : vector<8x8xf32> to vector<8xf32>
    %102 = vector.shape_cast %101 : vector<8xf32> to vector<8x1xf32>
    %103 = arith.maximumf %100, %102 : vector<8x1xf32>
    %104 = arith.subf %100, %103 : vector<8x1xf32>
    %105 = math.exp %104 : vector<8x1xf32>
    %106 = vector.broadcast %103 : vector<8x1xf32> to vector<8x8xf32>
    %107 = arith.subf %98, %106 : vector<8x8xf32>
    %108 = math.exp %107 : vector<8x8xf32>
    %c2_60 = arith.constant 2 : index
    %c0_61 = arith.constant 0 : index
    %c0_62 = arith.constant 0 : index
    %109 = vector.load %arg11[%c2_60, %c0_61, %c0_62] : memref<4x8x1xf32, #tpu.memory_space<vmem>>, vector<1x8x1xf32>
    %110 = vector.shape_cast %109 : vector<1x8x1xf32> to vector<8x1xf32>
    %111 = arith.mulf %105, %110 : vector<8x1xf32>
    %cst_63 = arith.constant dense<0.000000e+00> : vector<8xf32>
    %112 = vector.multi_reduction <add>, %108, %cst_63 [1] : vector<8x8xf32> to vector<8xf32>
    %113 = vector.shape_cast %112 : vector<8xf32> to vector<8x1xf32>
    %114 = arith.addf %111, %113 : vector<8x1xf32>
    %c2_64 = arith.constant 2 : index
    %c0_65 = arith.constant 0 : index
    %c0_66 = arith.constant 0 : index
    %115 = vector.load %arg11[%c2_64, %c0_65, %c0_66] : memref<4x8x1xf32, #tpu.memory_space<vmem>>, vector<1x8x1xf32>
    %116 = vector.shape_cast %115 : vector<1x8x1xf32> to vector<8x1xf32>
    %117 = vector.shape_cast %114 : vector<8x1xf32> to vector<1x8x1xf32>
    tpu.vector_store %arg11[%c2_64, %c0_65, %c0_66], %117 {strides = array<i32>} : memref<4x8x1xf32, #tpu.memory_space<vmem>>, vector<1x8x1xf32>,
    %c2_67 = arith.constant 2 : index
    %c0_68 = arith.constant 0 : index
    %c0_69 = arith.constant 0 : index
    %118 = vector.load %arg12[%c2_67, %c0_68, %c0_69] : memref<4x8x8xf32, #tpu.memory_space<vmem>>, vector<1x8x8xf32>
    %119 = vector.shape_cast %118 : vector<1x8x8xf32> to vector<8x8xf32>
    %120 = vector.broadcast %105 : vector<8x1xf32> to vector<8x8xf32>
    %121 = arith.mulf %120, %119 : vector<8x8xf32>
    %122 = arith.truncf %108 : vector<8x8xf32> to vector<8x8xbf16>
    %cst_70 = arith.constant dense<0.000000e+00> : vector<8x8xf32>
    %123 = tpu.matmul %122, %94, %cst_70 {dimension_numbers = #tpu.dot_dimension_numbers<[1], [0], [0], [1], [0, 0, 1, 1], [], []>} : vector<8x8xbf16>, vector<8x8xbf16>, vector<8x8xf32> -> vector<8x8xf32>
    %124 = arith.addf %121, %123 : vector<8x8xf32>
    %c2_71 = arith.constant 2 : index
    %c0_72 = arith.constant 0 : index
    %c0_73 = arith.constant 0 : index
    %125 = vector.load %arg12[%c2_71, %c0_72, %c0_73] : memref<4x8x8xf32, #tpu.memory_space<vmem>>, vector<1x8x8xf32>
    %126 = vector.shape_cast %125 : vector<1x8x8xf32> to vector<8x8xf32>
    %127 = vector.shape_cast %124 : vector<8x8xf32> to vector<1x8x8xf32>
    tpu.vector_store %arg12[%c2_71, %c0_72, %c0_73], %127 {strides = array<i32>} : memref<4x8x8xf32, #tpu.memory_space<vmem>>, vector<1x8x8xf32>,
    %c2_74 = arith.constant 2 : index
    %c0_75 = arith.constant 0 : index
    %c0_76 = arith.constant 0 : index
    %128 = vector.load %arg10[%c2_74, %c0_75, %c0_76] : memref<4x8x1xf32, #tpu.memory_space<vmem>>, vector<1x8x1xf32>
    %129 = vector.shape_cast %128 : vector<1x8x1xf32> to vector<8x1xf32>
    %130 = vector.shape_cast %103 : vector<8x1xf32> to vector<1x8x1xf32>
    tpu.vector_store %arg10[%c2_74, %c0_75, %c0_76], %130 {strides = array<i32>} : memref<4x8x1xf32, #tpu.memory_space<vmem>>, vector<1x8x1xf32>,
    %131 = vector.extract_strided_slice %4 {offsets = [0, 24], sizes = [8, 8], strides = [1, 1]} : vector<8x32xbf16> to vector<8x8xbf16>
    %132 = vector.extract_strided_slice %6 {offsets = [0, 24], sizes = [8, 8], strides = [1, 1]} : vector<8x64xbf16> to vector<8x8xbf16>
    %133 = vector.extract_strided_slice %6 {offsets = [0, 56], sizes = [8, 8], strides = [1, 1]} : vector<8x64xbf16> to vector<8x8xbf16>
    %cst_77 = arith.constant dense<0.000000e+00> : vector<8x8xf32>
    %134 = tpu.matmul %131, %132, %cst_77 {dimension_numbers = #tpu.dot_dimension_numbers<[1], [1], [0], [0], [0, 0, 1, 0], [], []>} : vector<8x8xbf16>, vector<8x8xbf16>, vector<8x8xf32> -> vector<8x8xf32>
    %cst_78 = arith.constant 0.353553385 : f32
    %135 = vector.broadcast %cst_78 : f32 to vector<8x8xf32>
    %136 = arith.mulf %134, %135 : vector<8x8xf32>
    %137 = arith.addf %136, %13 : vector<8x8xf32>
    %c3 = arith.constant 3 : index
    %c0_79 = arith.constant 0 : index
    %c0_80 = arith.constant 0 : index
    %138 = vector.load %arg10[%c3, %c0_79, %c0_80] : memref<4x8x1xf32, #tpu.memory_space<vmem>>, vector<1x8x1xf32>
    %139 = vector.shape_cast %138 : vector<1x8x1xf32> to vector<8x1xf32>
    %cst_81 = arith.constant dense<0xFF800000> : vector<8xf32>
    %140 = vector.multi_reduction <maximumf>, %137, %cst_81 [1] : vector<8x8xf32> to vector<8xf32>
    %141 = vector.shape_cast %140 : vector<8xf32> to vector<8x1xf32>
    %142 = arith.maximumf %139, %141 : vector<8x1xf32>
    %143 = arith.subf %139, %142 : vector<8x1xf32>
    %144 = math.exp %143 : vector<8x1xf32>
    %145 = vector.broadcast %142 : vector<8x1xf32> to vector<8x8xf32>
    %146 = arith.subf %137, %145 : vector<8x8xf32>
    %147 = math.exp %146 : vector<8x8xf32>
    %c3_82 = arith.constant 3 : index
    %c0_83 = arith.constant 0 : index
    %c0_84 = arith.constant 0 : index
    %148 = vector.load %arg11[%c3_82, %c0_83, %c0_84] : memref<4x8x1xf32, #tpu.memory_space<vmem>>, vector<1x8x1xf32>
    %149 = vector.shape_cast %148 : vector<1x8x1xf32> to vector<8x1xf32>
    %150 = arith.mulf %144, %149 : vector<8x1xf32>
    %cst_85 = arith.constant dense<0.000000e+00> : vector<8xf32>
    %151 = vector.multi_reduction <add>, %147, %cst_85 [1] : vector<8x8xf32> to vector<8xf32>
    %152 = vector.shape_cast %151 : vector<8xf32> to vector<8x1xf32>
    %153 = arith.addf %150, %152 : vector<8x1xf32>
    %c3_86 = arith.constant 3 : index
    %c0_87 = arith.constant 0 : index
    %c0_88 = arith.constant 0 : index
    %154 = vector.load %arg11[%c3_86, %c0_87, %c0_88] : memref<4x8x1xf32, #tpu.memory_space<vmem>>, vector<1x8x1xf32>
    %155 = vector.shape_cast %154 : vector<1x8x1xf32> to vector<8x1xf32>
    %156 = vector.shape_cast %153 : vector<8x1xf32> to vector<1x8x1xf32>
    tpu.vector_store %arg11[%c3_86, %c0_87, %c0_88], %156 {strides = array<i32>} : memref<4x8x1xf32, #tpu.memory_space<vmem>>, vector<1x8x1xf32>,
    %c3_89 = arith.constant 3 : index
    %c0_90 = arith.constant 0 : index
    %c0_91 = arith.constant 0 : index
    %157 = vector.load %arg12[%c3_89, %c0_90, %c0_91] : memref<4x8x8xf32, #tpu.memory_space<vmem>>, vector<1x8x8xf32>
    %158 = vector.shape_cast %157 : vector<1x8x8xf32> to vector<8x8xf32>
    %159 = vector.broadcast %144 : vector<8x1xf32> to vector<8x8xf32>
    %160 = arith.mulf %159, %158 : vector<8x8xf32>
    %161 = arith.truncf %147 : vector<8x8xf32> to vector<8x8xbf16>
    %cst_92 = arith.constant dense<0.000000e+00> : vector<8x8xf32>
    %162 = tpu.matmul %161, %133, %cst_92 {dimension_numbers = #tpu.dot_dimension_numbers<[1], [0], [0], [1], [0, 0, 1, 1], [], []>} : vector<8x8xbf16>, vector<8x8xbf16>, vector<8x8xf32> -> vector<8x8xf32>
    %163 = arith.addf %160, %162 : vector<8x8xf32>
    %c3_93 = arith.constant 3 : index
    %c0_94 = arith.constant 0 : index
    %c0_95 = arith.constant 0 : index
    %164 = vector.load %arg12[%c3_93, %c0_94, %c0_95] : memref<4x8x8xf32, #tpu.memory_space<vmem>>, vector<1x8x8xf32>
    %165 = vector.shape_cast %164 : vector<1x8x8xf32> to vector<8x8xf32>
    %166 = vector.shape_cast %163 : vector<8x8xf32> to vector<1x8x8xf32>
    tpu.vector_store %arg12[%c3_93, %c0_94, %c0_95], %166 {strides = array<i32>} : memref<4x8x8xf32, #tpu.memory_space<vmem>>, vector<1x8x8xf32>,
    %c3_96 = arith.constant 3 : index
    %c0_97 = arith.constant 0 : index
    %c0_98 = arith.constant 0 : index
    %167 = vector.load %arg10[%c3_96, %c0_97, %c0_98] : memref<4x8x1xf32, #tpu.memory_space<vmem>>, vector<1x8x1xf32>
    %168 = vector.shape_cast %167 : vector<1x8x1xf32> to vector<8x1xf32>
    %169 = vector.shape_cast %142 : vector<8x1xf32> to vector<1x8x1xf32>
    tpu.vector_store %arg10[%c3_96, %c0_97, %c0_98], %169 {strides = array<i32>} : memref<4x8x1xf32, #tpu.memory_space<vmem>>, vector<1x8x1xf32>,
    %c0_i32_99 = arith.constant 0 : i32
    %170 = arith.cmpi eq, %arg2, %c0_i32_99 : i32
    %171 = arith.extui %170 : i1 to i32
    %c0_i32_100 = arith.constant 0 : i32
    %172 = arith.cmpi ne, %171, %c0_i32_100 : i32
    scf.if %172 {
      %c0_101 = arith.constant 0 : index
      %c0_102 = arith.constant 0 : index
      %c0_103 = arith.constant 0 : index
      %173 = vector.load %arg8[%c0_101, %c0_102, %c0_103] : memref<1x8x32xf32, #tpu.memory_space<vmem>>, vector<1x8x32xf32>
      %174 = vector.shape_cast %173 : vector<1x8x32xf32> to vector<8x32xf32>
      %c0_104 = arith.constant 0 : index
      %c0_105 = arith.constant 0 : index
      %175 = vector.load %arg7[%c0_104, %c0_105] : memref<1x32xf32, #tpu.memory_space<vmem>>, vector<1x32xf32>
      %176 = vector.broadcast %175 : vector<1x32xf32> to vector<8x32xf32>
      %177 = arith.addf %174, %176 : vector<8x32xf32>
      %c0_106 = arith.constant 0 : index
      %c0_107 = arith.constant 0 : index
      %c0_108 = arith.constant 0 : index
      %178 = vector.load %arg12[%c0_106, %c0_107, %c0_108] : memref<4x8x8xf32, #tpu.memory_space<vmem>>, vector<1x8x8xf32>
      %179 = vector.shape_cast %178 : vector<1x8x8xf32> to vector<8x8xf32>
      %c0_109 = arith.constant 0 : index
      %c0_110 = arith.constant 0 : index
      %c0_111 = arith.constant 0 : index
      %180 = vector.load %arg11[%c0_109, %c0_110, %c0_111] : memref<4x8x1xf32, #tpu.memory_space<vmem>>, vector<1x8x1xf32>
      %181 = vector.shape_cast %180 : vector<1x8x1xf32> to vector<8x1xf32>
      %182 = tpu.reciprocal %181 {approx = true} : vector<8x1xf32> -> vector<8x1xf32>
      %183 = vector.broadcast %182 : vector<8x1xf32> to vector<8x8xf32>
      %184 = arith.mulf %179, %183 : vector<8x8xf32>
      %185 = arith.truncf %184 : vector<8x8xf32> to vector<8x8xbf16>
      %c0_112 = arith.constant 0 : index
      %c0_113 = arith.constant 0 : index
      %186 = vector.load %arg6[%c0_112, %c0_113] : memref<32x32xbf16, #tpu.memory_space<vmem>>, vector<8x32xbf16>
      %cst_114 = arith.constant dense<0.000000e+00> : vector<8x32xf32>
      %187 = tpu.matmul %185, %186, %cst_114 {dimension_numbers = #tpu.dot_dimension_numbers<[1], [0], [0], [1], [0, 0, 1, 1], [], []>} : vector<8x8xbf16>, vector<8x32xbf16>, vector<8x32xf32> -> vector<8x32xf32>
      %188 = arith.addf %177, %187 : vector<8x32xf32>
      %c1_115 = arith.constant 1 : index
      %c0_116 = arith.constant 0 : index
      %c0_117 = arith.constant 0 : index
      %189 = vector.load %arg12[%c1_115, %c0_116, %c0_117] : memref<4x8x8xf32, #tpu.memory_space<vmem>>, vector<1x8x8xf32>
      %190 = vector.shape_cast %189 : vector<1x8x8xf32> to vector<8x8xf32>
      %c1_118 = arith.constant 1 : index
      %c0_119 = arith.constant 0 : index
      %c0_120 = arith.constant 0 : index
      %191 = vector.load %arg11[%c1_118, %c0_119, %c0_120] : memref<4x8x1xf32, #tpu.memory_space<vmem>>, vector<1x8x1xf32>
      %192 = vector.shape_cast %191 : vector<1x8x1xf32> to vector<8x1xf32>
      %193 = tpu.reciprocal %192 {approx = true} : vector<8x1xf32> -> vector<8x1xf32>
      %194 = vector.broadcast %193 : vector<8x1xf32> to vector<8x8xf32>
      %195 = arith.mulf %190, %194 : vector<8x8xf32>
      %196 = arith.truncf %195 : vector<8x8xf32> to vector<8x8xbf16>
      %c8 = arith.constant 8 : index
      %c0_121 = arith.constant 0 : index
      %197 = vector.load %arg6[%c8, %c0_121] : memref<32x32xbf16, #tpu.memory_space<vmem>>, vector<8x32xbf16>
      %cst_122 = arith.constant dense<0.000000e+00> : vector<8x32xf32>
      %198 = tpu.matmul %196, %197, %cst_122 {dimension_numbers = #tpu.dot_dimension_numbers<[1], [0], [0], [1], [0, 0, 1, 1], [], []>} : vector<8x8xbf16>, vector<8x32xbf16>, vector<8x32xf32> -> vector<8x32xf32>
      %199 = arith.addf %188, %198 : vector<8x32xf32>
      %c2_123 = arith.constant 2 : index
      %c0_124 = arith.constant 0 : index
      %c0_125 = arith.constant 0 : index
      %200 = vector.load %arg12[%c2_123, %c0_124, %c0_125] : memref<4x8x8xf32, #tpu.memory_space<vmem>>, vector<1x8x8xf32>
      %201 = vector.shape_cast %200 : vector<1x8x8xf32> to vector<8x8xf32>
      %c2_126 = arith.constant 2 : index
      %c0_127 = arith.constant 0 : index
      %c0_128 = arith.constant 0 : index
      %202 = vector.load %arg11[%c2_126, %c0_127, %c0_128] : memref<4x8x1xf32, #tpu.memory_space<vmem>>, vector<1x8x1xf32>
      %203 = vector.shape_cast %202 : vector<1x8x1xf32> to vector<8x1xf32>
      %204 = tpu.reciprocal %203 {approx = true} : vector<8x1xf32> -> vector<8x1xf32>
      %205 = vector.broadcast %204 : vector<8x1xf32> to vector<8x8xf32>
      %206 = arith.mulf %201, %205 : vector<8x8xf32>
      %207 = arith.truncf %206 : vector<8x8xf32> to vector<8x8xbf16>
      %c16 = arith.constant 16 : index
      %c0_129 = arith.constant 0 : index
      %208 = vector.load %arg6[%c16, %c0_129] : memref<32x32xbf16, #tpu.memory_space<vmem>>, vector<8x32xbf16>
      %cst_130 = arith.constant dense<0.000000e+00> : vector<8x32xf32>
      %209 = tpu.matmul %207, %208, %cst_130 {dimension_numbers = #tpu.dot_dimension_numbers<[1], [0], [0], [1], [0, 0, 1, 1], [], []>} : vector<8x8xbf16>, vector<8x32xbf16>, vector<8x32xf32> -> vector<8x32xf32>
      %210 = arith.addf %199, %209 : vector<8x32xf32>
      %c3_131 = arith.constant 3 : index
      %c0_132 = arith.constant 0 : index
      %c0_133 = arith.constant 0 : index
      %211 = vector.load %arg12[%c3_131, %c0_132, %c0_133] : memref<4x8x8xf32, #tpu.memory_space<vmem>>, vector<1x8x8xf32>
      %212 = vector.shape_cast %211 : vector<1x8x8xf32> to vector<8x8xf32>
      %c3_134 = arith.constant 3 : index
      %c0_135 = arith.constant 0 : index
      %c0_136 = arith.constant 0 : index
      %213 = vector.load %arg11[%c3_134, %c0_135, %c0_136] : memref<4x8x1xf32, #tpu.memory_space<vmem>>, vector<1x8x1xf32>
      %214 = vector.shape_cast %213 : vector<1x8x1xf32> to vector<8x1xf32>
      %215 = tpu.reciprocal %214 {approx = true} : vector<8x1xf32> -> vector<8x1xf32>
      %216 = vector.broadcast %215 : vector<8x1xf32> to vector<8x8xf32>
      %217 = arith.mulf %212, %216 : vector<8x8xf32>
      %218 = arith.truncf %217 : vector<8x8xf32> to vector<8x8xbf16>
      %c24 = arith.constant 24 : index
      %c0_137 = arith.constant 0 : index
      %219 = vector.load %arg6[%c24, %c0_137] : memref<32x32xbf16, #tpu.memory_space<vmem>>, vector<8x32xbf16>
      %cst_138 = arith.constant dense<0.000000e+00> : vector<8x32xf32>
      %220 = tpu.matmul %218, %219, %cst_138 {dimension_numbers = #tpu.dot_dimension_numbers<[1], [0], [0], [1], [0, 0, 1, 1], [], []>} : vector<8x8xbf16>, vector<8x32xbf16>, vector<8x32xf32> -> vector<8x32xf32>
      %221 = arith.addf %210, %220 : vector<8x32xf32>
      %c0_139 = arith.constant 0 : index
      %c0_140 = arith.constant 0 : index
      %c0_141 = arith.constant 0 : index
      %222 = vector.load %arg9[%c0_139, %c0_140, %c0_141] : memref<1x8x32xf32, #tpu.memory_space<vmem>>, vector<1x8x32xf32>
      %223 = vector.shape_cast %222 : vector<1x8x32xf32> to vector<8x32xf32>
      %224 = vector.shape_cast %221 : vector<8x32xf32> to vector<1x8x32xf32>
      tpu.vector_store %arg9[%c0_139, %c0_140, %c0_141], %224 {strides = array<i32>} : memref<1x8x32xf32, #tpu.memory_space<vmem>>, vector<1x8x32xf32>,
    } else {
    }
    return
  }
  func.func @transform_0(%arg0: i32, %arg1: i32, %arg2: i32) -> (i32, i32, i32) {
    %c0_i32 = arith.constant 0 : i32
    %c0_i32_0 = arith.constant 0 : i32
    return %arg0, %arg1, %c0_i32 : i32, i32, i32
  }
  func.func @transform_1(%arg0: i32, %arg1: i32, %arg2: i32) -> (i32, i32, i32) {
    %c0_i32 = arith.constant 0 : i32
    %c0_i32_0 = arith.constant 0 : i32
    return %arg0, %arg2, %c0_i32 : i32, i32, i32
  }
  func.func @transform_2(%arg0: i32, %arg1: i32, %arg2: i32) -> (i32, i32, i32) {
    %c0_i32 = arith.constant 0 : i32
    return %arg0, %arg1, %arg2 : i32, i32, i32
  }
  func.func @transform_3(%arg0: i32, %arg1: i32, %arg2: i32) -> (i32, i32) {
    %c0_i32 = arith.constant 0 : i32
    %c0_i32_0 = arith.constant 0 : i32
    %c0_i32_1 = arith.constant 0 : i32
    return %c0_i32, %c0_i32_0 : i32, i32
  }
  func.func @transform_4(%arg0: i32, %arg1: i32, %arg2: i32) -> (i32, i32) {
    %c0_i32 = arith.constant 0 : i32
    %c0_i32_0 = arith.constant 0 : i32
    %c0_i32_1 = arith.constant 0 : i32
    return %c0_i32, %c0_i32_0 : i32, i32
  }
  func.func @transform_5(%arg0: i32, %arg1: i32, %arg2: i32) -> (i32, i32, i32) {
    %c0_i32 = arith.constant 0 : i32
    %c0_i32_0 = arith.constant 0 : i32
    return %arg0, %arg1, %c0_i32 : i32, i32, i32
  }
  func.func @transform_6(%arg0: i32, %arg1: i32, %arg2: i32) -> (i32, i32, i32) {
    %c0_i32 = arith.constant 0 : i32
    %c0_i32_0 = arith.constant 0 : i32
    return %arg0, %arg1, %c0_i32 : i32, i32, i32
  }
}

module attributes {stable_mosaic.version = 11 : i64} {
  func.func @_ln_ffn_res_kernel(%arg0: i32, %arg1: memref<8x32xf32, #tpu.memory_space<vmem>>, %arg2: memref<1x32xf32, #tpu.memory_space<vmem>>, %arg3: memref<1x32xf32, #tpu.memory_space<vmem>>, %arg4: memref<32x64xbf16, #tpu.memory_space<vmem>>, %arg5: memref<1x64xf32, #tpu.memory_space<vmem>>, %arg6: memref<64x32xbf16, #tpu.memory_space<vmem>>, %arg7: memref<1x32xf32, #tpu.memory_space<vmem>>, %arg8: memref<8x32xf32, #tpu.memory_space<vmem>>) attributes {dimension_semantics = [#tpu.dimension_semantics<parallel>], iteration_bounds = array<i64: 2>, scalar_prefetch = 0 : i64, scratch_operands = 0 : i64, tpu.core_type = #tpu.core_type<tc>, window_params = [{transform_indices = @transform_0, window_bounds = array<i64: 8, 32>}, {pipeline_mode = #tpu.pipeline_mode<synchronous>, transform_indices = @transform_1, window_bounds = array<i64: 1, 32>}, {pipeline_mode = #tpu.pipeline_mode<synchronous>, transform_indices = @transform_2, window_bounds = array<i64: 1, 32>}, {pipeline_mode = #tpu.pipeline_mode<synchronous>, transform_indices = @transform_3, window_bounds = array<i64: 32, 64>}, {pipeline_mode = #tpu.pipeline_mode<synchronous>, transform_indices = @transform_4, window_bounds = array<i64: 1, 64>}, {pipeline_mode = #tpu.pipeline_mode<synchronous>, transform_indices = @transform_5, window_bounds = array<i64: 64, 32>}, {pipeline_mode = #tpu.pipeline_mode<synchronous>, transform_indices = @transform_6, window_bounds = array<i64: 1, 32>}, {transform_indices = @transform_7, window_bounds = array<i64: 8, 32>}]} {
    %c0 = arith.constant 0 : index
    %c0_0 = arith.constant 0 : index
    %0 = vector.load %arg1[%c0, %c0_0] : memref<8x32xf32, #tpu.memory_space<vmem>>, vector<8x32xf32>
    %c0_1 = arith.constant 0 : index
    %c0_2 = arith.constant 0 : index
    %1 = vector.load %arg2[%c0_1, %c0_2] : memref<1x32xf32, #tpu.memory_space<vmem>>, vector<1x32xf32>
    %c0_3 = arith.constant 0 : index
    %c0_4 = arith.constant 0 : index
    %2 = vector.load %arg3[%c0_3, %c0_4] : memref<1x32xf32, #tpu.memory_space<vmem>>, vector<1x32xf32>
    %cst = arith.constant dense<0.000000e+00> : vector<8xf32>
    %3 = vector.multi_reduction <add>, %0, %cst [1] : vector<8x32xf32> to vector<8xf32>
    %4 = vector.shape_cast %3 : vector<8xf32> to vector<8x1xf32>
    %cst_5 = arith.constant 3.200000e+01 : f32
    %5 = vector.broadcast %cst_5 : f32 to vector<8x1xf32>
    %6 = arith.divf %4, %5 : vector<8x1xf32>
    %7 = vector.broadcast %6 : vector<8x1xf32> to vector<8x32xf32>
    %8 = arith.subf %0, %7 : vector<8x32xf32>
    %9 = arith.mulf %8, %8 : vector<8x32xf32>
    %cst_6 = arith.constant dense<0.000000e+00> : vector<8xf32>
    %10 = vector.multi_reduction <add>, %9, %cst_6 [1] : vector<8x32xf32> to vector<8xf32>
    %11 = vector.shape_cast %10 : vector<8xf32> to vector<8x1xf32>
    %cst_7 = arith.constant 3.100000e+01 : f32
    %12 = vector.broadcast %cst_7 : f32 to vector<8x1xf32>
    %13 = arith.divf %11, %12 : vector<8x1xf32>
    %14 = math.sqrt %13 : vector<8x1xf32>
    %cst_8 = arith.constant 9.99999997E-7 : f32
    %15 = vector.broadcast %cst_8 : f32 to vector<8x1xf32>
    %16 = arith.addf %14, %15 : vector<8x1xf32>
    %17 = tpu.reciprocal %16 {approx = true} : vector<8x1xf32> -> vector<8x1xf32>
    %18 = vector.broadcast %1 : vector<1x32xf32> to vector<8x32xf32>
    %19 = arith.mulf %18, %8 : vector<8x32xf32>
    %20 = vector.broadcast %17 : vector<8x1xf32> to vector<8x32xf32>
    %21 = arith.mulf %19, %20 : vector<8x32xf32>
    %22 = vector.broadcast %2 : vector<1x32xf32> to vector<8x32xf32>
    %23 = arith.addf %21, %22 : vector<8x32xf32>
    %24 = arith.truncf %23 : vector<8x32xf32> to vector<8x32xbf16>
    %c0_9 = arith.constant 0 : index
    %c0_10 = arith.constant 0 : index
    %25 = vector.load %arg4[%c0_9, %c0_10] : memref<32x64xbf16, #tpu.memory_space<vmem>>, vector<32x64xbf16>
    %cst_11 = arith.constant dense<0.000000e+00> : vector<8x64xf32>
    %26 = tpu.matmul %24, %25, %cst_11 {dimension_numbers = #tpu.dot_dimension_numbers<[1], [0], [0], [1], [0, 0, 1, 1], [], []>} : vector<8x32xbf16>, vector<32x64xbf16>, vector<8x64xf32> -> vector<8x64xf32>
    %c0_12 = arith.constant 0 : index
    %c0_13 = arith.constant 0 : index
    %27 = vector.load %arg5[%c0_12, %c0_13] : memref<1x64xf32, #tpu.memory_space<vmem>>, vector<1x64xf32>
    %28 = vector.broadcast %27 : vector<1x64xf32> to vector<8x64xf32>
    %29 = arith.addf %26, %28 : vector<8x64xf32>
    %cst_14 = arith.constant 0.000000e+00 : f32
    %30 = vector.broadcast %cst_14 : f32 to vector<8x64xf32>
    %31 = arith.maximumf %29, %30 : vector<8x64xf32>
    %32 = arith.truncf %31 : vector<8x64xf32> to vector<8x64xbf16>
    %c0_15 = arith.constant 0 : index
    %c0_16 = arith.constant 0 : index
    %33 = vector.load %arg6[%c0_15, %c0_16] : memref<64x32xbf16, #tpu.memory_space<vmem>>, vector<64x32xbf16>
    %cst_17 = arith.constant dense<0.000000e+00> : vector<8x32xf32>
    %34 = tpu.matmul %32, %33, %cst_17 {dimension_numbers = #tpu.dot_dimension_numbers<[1], [0], [0], [1], [0, 0, 1, 1], [], []>} : vector<8x64xbf16>, vector<64x32xbf16>, vector<8x32xf32> -> vector<8x32xf32>
    %c0_18 = arith.constant 0 : index
    %c0_19 = arith.constant 0 : index
    %35 = vector.load %arg7[%c0_18, %c0_19] : memref<1x32xf32, #tpu.memory_space<vmem>>, vector<1x32xf32>
    %36 = vector.broadcast %35 : vector<1x32xf32> to vector<8x32xf32>
    %37 = arith.addf %34, %36 : vector<8x32xf32>
    %38 = arith.addf %37, %0 : vector<8x32xf32>
    %c0_20 = arith.constant 0 : index
    %c0_21 = arith.constant 0 : index
    %39 = vector.load %arg8[%c0_20, %c0_21] : memref<8x32xf32, #tpu.memory_space<vmem>>, vector<8x32xf32>
    tpu.vector_store %arg8[%c0_20, %c0_21], %38 {strides = array<i32>} : memref<8x32xf32, #tpu.memory_space<vmem>>, vector<8x32xf32>,
    return
  }
  func.func @transform_0(%arg0: i32) -> (i32, i32) {
    %c0_i32 = arith.constant 0 : i32
    %c0_i32_0 = arith.constant 0 : i32
    return %arg0, %c0_i32 : i32, i32
  }
  func.func @transform_1(%arg0: i32) -> (i32, i32) {
    %c0_i32 = arith.constant 0 : i32
    %c0_i32_0 = arith.constant 0 : i32
    %c0_i32_1 = arith.constant 0 : i32
    return %c0_i32, %c0_i32_0 : i32, i32
  }
  func.func @transform_2(%arg0: i32) -> (i32, i32) {
    %c0_i32 = arith.constant 0 : i32
    %c0_i32_0 = arith.constant 0 : i32
    %c0_i32_1 = arith.constant 0 : i32
    return %c0_i32, %c0_i32_0 : i32, i32
  }
  func.func @transform_3(%arg0: i32) -> (i32, i32) {
    %c0_i32 = arith.constant 0 : i32
    %c0_i32_0 = arith.constant 0 : i32
    %c0_i32_1 = arith.constant 0 : i32
    return %c0_i32, %c0_i32_0 : i32, i32
  }
  func.func @transform_4(%arg0: i32) -> (i32, i32) {
    %c0_i32 = arith.constant 0 : i32
    %c0_i32_0 = arith.constant 0 : i32
    %c0_i32_1 = arith.constant 0 : i32
    return %c0_i32, %c0_i32_0 : i32, i32
  }
  func.func @transform_5(%arg0: i32) -> (i32, i32) {
    %c0_i32 = arith.constant 0 : i32
    %c0_i32_0 = arith.constant 0 : i32
    %c0_i32_1 = arith.constant 0 : i32
    return %c0_i32, %c0_i32_0 : i32, i32
  }
  func.func @transform_6(%arg0: i32) -> (i32, i32) {
    %c0_i32 = arith.constant 0 : i32
    %c0_i32_0 = arith.constant 0 : i32
    %c0_i32_1 = arith.constant 0 : i32
    return %c0_i32, %c0_i32_0 : i32, i32
  }
  func.func @transform_7(%arg0: i32) -> (i32, i32) {
    %c0_i32 = arith.constant 0 : i32
    %c0_i32_0 = arith.constant 0 : i32
    return %arg0, %c0_i32 : i32, i32
  }
}

module attributes {stable_mosaic.version = 11 : i64} {
  func.func @_flash_attn_kernel(%arg0: i32, %arg1: i32, %arg2: i32, %arg3: memref<1x8x32xbf16, #tpu.memory_space<vmem>>, %arg4: memref<1x8x64xbf16, #tpu.memory_space<vmem>>, %arg5: memref<1x1x8xbf16, #tpu.memory_space<vmem>>, %arg6: memref<32x32xbf16, #tpu.memory_space<vmem>>, %arg7: memref<1x32xf32, #tpu.memory_space<vmem>>, %arg8: memref<1x8x32xf32, #tpu.memory_space<vmem>>, %arg9: memref<1x8x32xf32, #tpu.memory_space<vmem>>, %arg10: memref<4x8x1xf32, #tpu.memory_space<vmem>>, %arg11: memref<4x8x1xf32, #tpu.memory_space<vmem>>, %arg12: memref<4x8x8xf32, #tpu.memory_space<vmem>>) attributes {dimension_semantics = [#tpu.dimension_semantics<parallel>, #tpu.dimension_semantics<parallel>, #tpu.dimension_semantics<arbitrary>], iteration_bounds = array<i64: 2, 1, 1>, scalar_prefetch = 0 : i64, scratch_operands = 3 : i64, tpu.core_type = #tpu.core_type<tc>, window_params = [{transform_indices = @transform_0, window_bounds = array<i64: 1, 8, 32>}, {transform_indices = @transform_1, window_bounds = array<i64: 1, 8, 64>}, {transform_indices = @transform_2, window_bounds = array<i64: 1, 1, 8>}, {pipeline_mode = #tpu.pipeline_mode<synchronous>, transform_indices = @transform_3, window_bounds = array<i64: 32, 32>}, {pipeline_mode = #tpu.pipeline_mode<synchronous>, transform_indices = @transform_4, window_bounds = array<i64: 1, 32>}, {transform_indices = @transform_5, window_bounds = array<i64: 1, 8, 32>}, {transform_indices = @transform_6, window_bounds = array<i64: 1, 8, 32>}]} {
    %c0_i32 = arith.constant 0 : i32
    %0 = arith.cmpi eq, %arg2, %c0_i32 : i32
    %1 = arith.extui %0 : i1 to i32
    %c0_i32_0 = arith.constant 0 : i32
    %2 = arith.cmpi ne, %1, %c0_i32_0 : i32
    scf.if %2 {
      %cst_101 = arith.constant 0xFF800000 : f32
      %177 = vector.broadcast %cst_101 : f32 to vector<4x8x1xf32>
      %c0_102 = arith.constant 0 : index
      %c0_103 = arith.constant 0 : index
      %c0_104 = arith.constant 0 : index
      %178 = vector.load %arg10[%c0_102, %c0_103, %c0_104] : memref<4x8x1xf32, #tpu.memory_space<vmem>>, vector<4x8x1xf32>
      tpu.vector_store %arg10[%c0_102, %c0_103, %c0_104], %177 {strides = array<i32>} : memref<4x8x1xf32, #tpu.memory_space<vmem>>, vector<4x8x1xf32>,
      %cst_105 = arith.constant 0.000000e+00 : f32
      %179 = vector.broadcast %cst_105 : f32 to vector<4x8x1xf32>
      %c0_106 = arith.constant 0 : index
      %c0_107 = arith.constant 0 : index
      %c0_108 = arith.constant 0 : index
      %180 = vector.load %arg11[%c0_106, %c0_107, %c0_108] : memref<4x8x1xf32, #tpu.memory_space<vmem>>, vector<4x8x1xf32>
      tpu.vector_store %arg11[%c0_106, %c0_107, %c0_108], %179 {strides = array<i32>} : memref<4x8x1xf32, #tpu.memory_space<vmem>>, vector<4x8x1xf32>,
      %cst_109 = arith.constant 0.000000e+00 : f32
      %181 = vector.broadcast %cst_109 : f32 to vector<4x8x8xf32>
      %c0_110 = arith.constant 0 : index
      %c0_111 = arith.constant 0 : index
      %c0_112 = arith.constant 0 : index
      %182 = vector.load %arg12[%c0_110, %c0_111, %c0_112] : memref<4x8x8xf32, #tpu.memory_space<vmem>>, vector<4x8x8xf32>
      tpu.vector_store %arg12[%c0_110, %c0_111, %c0_112], %181 {strides = array<i32>} : memref<4x8x8xf32, #tpu.memory_space<vmem>>, vector<4x8x8xf32>,
    } else {
    }
    %c0 = arith.constant 0 : index
    %c0_1 = arith.constant 0 : index
    %c0_2 = arith.constant 0 : index
    %3 = vector.load %arg3[%c0, %c0_1, %c0_2] : memref<1x8x32xbf16, #tpu.memory_space<vmem>>, vector<1x8x32xbf16>
    %4 = vector.shape_cast %3 : vector<1x8x32xbf16> to vector<8x32xbf16>
    %c0_3 = arith.constant 0 : index
    %c0_4 = arith.constant 0 : index
    %c0_5 = arith.constant 0 : index
    %5 = vector.load %arg4[%c0_3, %c0_4, %c0_5] : memref<1x8x64xbf16, #tpu.memory_space<vmem>>, vector<1x8x64xbf16>
    %6 = vector.shape_cast %5 : vector<1x8x64xbf16> to vector<8x64xbf16>
    %c0_6 = arith.constant 0 : index
    %c0_7 = arith.constant 0 : index
    %c0_8 = arith.constant 0 : index
    %7 = vector.load %arg5[%c0_6, %c0_7, %c0_8] : memref<1x1x8xbf16, #tpu.memory_space<vmem>>, vector<1x1x8xbf16>
    %8 = vector.shape_cast %7 : vector<1x1x8xbf16> to vector<1x8xbf16>
    %9 = arith.extf %8 : vector<1x8xbf16> to vector<1x8xf32>
    %cst = arith.constant 1.000000e+00 : f32
    %10 = vector.broadcast %cst : f32 to vector<1x8xf32>
    %11 = arith.subf %10, %9 : vector<1x8xf32>
    %cst_9 = arith.constant -1.000000e+09 : f32
    %12 = vector.broadcast %cst_9 : f32 to vector<1x8xf32>
    %13 = arith.mulf %11, %12 : vector<1x8xf32>
    %14 = vector.extract_strided_slice %4 {offsets = [0, 0], sizes = [8, 8], strides = [1, 1]} : vector<8x32xbf16> to vector<8x8xbf16>
    %15 = vector.extract_strided_slice %6 {offsets = [0, 0], sizes = [8, 8], strides = [1, 1]} : vector<8x64xbf16> to vector<8x8xbf16>
    %16 = vector.extract_strided_slice %6 {offsets = [0, 32], sizes = [8, 8], strides = [1, 1]} : vector<8x64xbf16> to vector<8x8xbf16>
    %cst_10 = arith.constant dense<0.000000e+00> : vector<8x8xf32>
    %17 = tpu.matmul %14, %15, %cst_10 {dimension_numbers = #tpu.dot_dimension_numbers<[1], [1], [0], [0], [0, 0, 1, 0], [], []>} : vector<8x8xbf16>, vector<8x8xbf16>, vector<8x8xf32> -> vector<8x8xf32>
    %cst_11 = arith.constant 0.353553385 : f32
    %18 = vector.broadcast %cst_11 : f32 to vector<8x8xf32>
    %19 = arith.mulf %17, %18 : vector<8x8xf32>
    %20 = vector.broadcast %13 : vector<1x8xf32> to vector<8x8xf32>
    %21 = arith.addf %19, %20 : vector<8x8xf32>
    %c0_12 = arith.constant 0 : index
    %c0_13 = arith.constant 0 : index
    %c0_14 = arith.constant 0 : index
    %22 = vector.load %arg10[%c0_12, %c0_13, %c0_14] : memref<4x8x1xf32, #tpu.memory_space<vmem>>, vector<1x8x1xf32>
    %23 = vector.shape_cast %22 : vector<1x8x1xf32> to vector<8x1xf32>
    %cst_15 = arith.constant dense<0xFF800000> : vector<8xf32>
    %24 = vector.multi_reduction <maximumf>, %21, %cst_15 [1] : vector<8x8xf32> to vector<8xf32>
    %25 = vector.shape_cast %24 : vector<8xf32> to vector<8x1xf32>
    %26 = arith.maximumf %23, %25 : vector<8x1xf32>
    %27 = arith.subf %23, %26 : vector<8x1xf32>
    %28 = math.exp %27 : vector<8x1xf32>
    %29 = vector.broadcast %26 : vector<8x1xf32> to vector<8x8xf32>
    %30 = arith.subf %21, %29 : vector<8x8xf32>
    %31 = math.exp %30 : vector<8x8xf32>
    %c0_16 = arith.constant 0 : index
    %c0_17 = arith.constant 0 : index
    %c0_18 = arith.constant 0 : index
    %32 = vector.load %arg11[%c0_16, %c0_17, %c0_18] : memref<4x8x1xf32, #tpu.memory_space<vmem>>, vector<1x8x1xf32>
    %33 = vector.shape_cast %32 : vector<1x8x1xf32> to vector<8x1xf32>
    %34 = arith.mulf %28, %33 : vector<8x1xf32>
    %cst_19 = arith.constant dense<0.000000e+00> : vector<8xf32>
    %35 = vector.multi_reduction <add>, %31, %cst_19 [1] : vector<8x8xf32> to vector<8xf32>
    %36 = vector.shape_cast %35 : vector<8xf32> to vector<8x1xf32>
    %37 = arith.addf %34, %36 : vector<8x1xf32>
    %c0_20 = arith.constant 0 : index
    %c0_21 = arith.constant 0 : index
    %c0_22 = arith.constant 0 : index
    %38 = vector.load %arg11[%c0_20, %c0_21, %c0_22] : memref<4x8x1xf32, #tpu.memory_space<vmem>>, vector<1x8x1xf32>
    %39 = vector.shape_cast %38 : vector<1x8x1xf32> to vector<8x1xf32>
    %40 = vector.shape_cast %37 : vector<8x1xf32> to vector<1x8x1xf32>
    tpu.vector_store %arg11[%c0_20, %c0_21, %c0_22], %40 {strides = array<i32>} : memref<4x8x1xf32, #tpu.memory_space<vmem>>, vector<1x8x1xf32>,
    %c0_23 = arith.constant 0 : index
    %c0_24 = arith.constant 0 : index
    %c0_25 = arith.constant 0 : index
    %41 = vector.load %arg12[%c0_23, %c0_24, %c0_25] : memref<4x8x8xf32, #tpu.memory_space<vmem>>, vector<1x8x8xf32>
    %42 = vector.shape_cast %41 : vector<1x8x8xf32> to vector<8x8xf32>
    %43 = vector.broadcast %28 : vector<8x1xf32> to vector<8x8xf32>
    %44 = arith.mulf %43, %42 : vector<8x8xf32>
    %45 = arith.truncf %31 : vector<8x8xf32> to vector<8x8xbf16>
    %cst_26 = arith.constant dense<0.000000e+00> : vector<8x8xf32>
    %46 = tpu.matmul %45, %16, %cst_26 {dimension_numbers = #tpu.dot_dimension_numbers<[1], [0], [0], [1], [0, 0, 1, 1], [], []>} : vector<8x8xbf16>, vector<8x8xbf16>, vector<8x8xf32> -> vector<8x8xf32>
    %47 = arith.addf %44, %46 : vector<8x8xf32>
    %c0_27 = arith.constant 0 : index
    %c0_28 = arith.constant 0 : index
    %c0_29 = arith.constant 0 : index
    %48 = vector.load %arg12[%c0_27, %c0_28, %c0_29] : memref<4x8x8xf32, #tpu.memory_space<vmem>>, vector<1x8x8xf32>
    %49 = vector.shape_cast %48 : vector<1x8x8xf32> to vector<8x8xf32>
    %50 = vector.shape_cast %47 : vector<8x8xf32> to vector<1x8x8xf32>
    tpu.vector_store %arg12[%c0_27, %c0_28, %c0_29], %50 {strides = array<i32>} : memref<4x8x8xf32, #tpu.memory_space<vmem>>, vector<1x8x8xf32>,
    %c0_30 = arith.constant 0 : index
    %c0_31 = arith.constant 0 : index
    %c0_32 = arith.constant 0 : index
    %51 = vector.load %arg10[%c0_30, %c0_31, %c0_32] : memref<4x8x1xf32, #tpu.memory_space<vmem>>, vector<1x8x1xf32>
    %52 = vector.shape_cast %51 : vector<1x8x1xf32> to vector<8x1xf32>
    %53 = vector.shape_cast %26 : vector<8x1xf32> to vector<1x8x1xf32>
    tpu.vector_store %arg10[%c0_30, %c0_31, %c0_32], %53 {strides = array<i32>} : memref<4x8x1xf32, #tpu.memory_space<vmem>>, vector<1x8x1xf32>,
    %54 = vector.extract_strided_slice %4 {offsets = [0, 8], sizes = [8, 8], strides = [1, 1]} : vector<8x32xbf16> to vector<8x8xbf16>
    %55 = vector.extract_strided_slice %6 {offsets = [0, 8], sizes = [8, 8], strides = [1, 1]} : vector<8x64xbf16> to vector<8x8xbf16>
    %56 = vector.extract_strided_slice %6 {offsets = [0, 40], sizes = [8, 8], strides = [1, 1]} : vector<8x64xbf16> to vector<8x8xbf16>
    %cst_33 = arith.constant dense<0.000000e+00> : vector<8x8xf32>
    %57 = tpu.matmul %54, %55, %cst_33 {dimension_numbers = #tpu.dot_dimension_numbers<[1], [1], [0], [0], [0, 0, 1, 0], [], []>} : vector<8x8xbf16>, vector<8x8xbf16>, vector<8x8xf32> -> vector<8x8xf32>
    %cst_34 = arith.constant 0.353553385 : f32
    %58 = vector.broadcast %cst_34 : f32 to vector<8x8xf32>
    %59 = arith.mulf %57, %58 : vector<8x8xf32>
    %60 = vector.broadcast %13 : vector<1x8xf32> to vector<8x8xf32>
    %61 = arith.addf %59, %60 : vector<8x8xf32>
    %c1 = arith.constant 1 : index
    %c0_35 = arith.constant 0 : index
    %c0_36 = arith.constant 0 : index
    %62 = vector.load %arg10[%c1, %c0_35, %c0_36] : memref<4x8x1xf32, #tpu.memory_space<vmem>>, vector<1x8x1xf32>
    %63 = vector.shape_cast %62 : vector<1x8x1xf32> to vector<8x1xf32>
    %cst_37 = arith.constant dense<0xFF800000> : vector<8xf32>
    %64 = vector.multi_reduction <maximumf>, %61, %cst_37 [1] : vector<8x8xf32> to vector<8xf32>
    %65 = vector.shape_cast %64 : vector<8xf32> to vector<8x1xf32>
    %66 = arith.maximumf %63, %65 : vector<8x1xf32>
    %67 = arith.subf %63, %66 : vector<8x1xf32>
    %68 = math.exp %67 : vector<8x1xf32>
    %69 = vector.broadcast %66 : vector<8x1xf32> to vector<8x8xf32>
    %70 = arith.subf %61, %69 : vector<8x8xf32>
    %71 = math.exp %70 : vector<8x8xf32>
    %c1_38 = arith.constant 1 : index
    %c0_39 = arith.constant 0 : index
    %c0_40 = arith.constant 0 : index
    %72 = vector.load %arg11[%c1_38, %c0_39, %c0_40] : memref<4x8x1xf32, #tpu.memory_space<vmem>>, vector<1x8x1xf32>
    %73 = vector.shape_cast %72 : vector<1x8x1xf32> to vector<8x1xf32>
    %74 = arith.mulf %68, %73 : vector<8x1xf32>
    %cst_41 = arith.constant dense<0.000000e+00> : vector<8xf32>
    %75 = vector.multi_reduction <add>, %71, %cst_41 [1] : vector<8x8xf32> to vector<8xf32>
    %76 = vector.shape_cast %75 : vector<8xf32> to vector<8x1xf32>
    %77 = arith.addf %74, %76 : vector<8x1xf32>
    %c1_42 = arith.constant 1 : index
    %c0_43 = arith.constant 0 : index
    %c0_44 = arith.constant 0 : index
    %78 = vector.load %arg11[%c1_42, %c0_43, %c0_44] : memref<4x8x1xf32, #tpu.memory_space<vmem>>, vector<1x8x1xf32>
    %79 = vector.shape_cast %78 : vector<1x8x1xf32> to vector<8x1xf32>
    %80 = vector.shape_cast %77 : vector<8x1xf32> to vector<1x8x1xf32>
    tpu.vector_store %arg11[%c1_42, %c0_43, %c0_44], %80 {strides = array<i32>} : memref<4x8x1xf32, #tpu.memory_space<vmem>>, vector<1x8x1xf32>,
    %c1_45 = arith.constant 1 : index
    %c0_46 = arith.constant 0 : index
    %c0_47 = arith.constant 0 : index
    %81 = vector.load %arg12[%c1_45, %c0_46, %c0_47] : memref<4x8x8xf32, #tpu.memory_space<vmem>>, vector<1x8x8xf32>
    %82 = vector.shape_cast %81 : vector<1x8x8xf32> to vector<8x8xf32>
    %83 = vector.broadcast %68 : vector<8x1xf32> to vector<8x8xf32>
    %84 = arith.mulf %83, %82 : vector<8x8xf32>
    %85 = arith.truncf %71 : vector<8x8xf32> to vector<8x8xbf16>
    %cst_48 = arith.constant dense<0.000000e+00> : vector<8x8xf32>
    %86 = tpu.matmul %85, %56, %cst_48 {dimension_numbers = #tpu.dot_dimension_numbers<[1], [0], [0], [1], [0, 0, 1, 1], [], []>} : vector<8x8xbf16>, vector<8x8xbf16>, vector<8x8xf32> -> vector<8x8xf32>
    %87 = arith.addf %84, %86 : vector<8x8xf32>
    %c1_49 = arith.constant 1 : index
    %c0_50 = arith.constant 0 : index
    %c0_51 = arith.constant 0 : index
    %88 = vector.load %arg12[%c1_49, %c0_50, %c0_51] : memref<4x8x8xf32, #tpu.memory_space<vmem>>, vector<1x8x8xf32>
    %89 = vector.shape_cast %88 : vector<1x8x8xf32> to vector<8x8xf32>
    %90 = vector.shape_cast %87 : vector<8x8xf32> to vector<1x8x8xf32>
    tpu.vector_store %arg12[%c1_49, %c0_50, %c0_51], %90 {strides = array<i32>} : memref<4x8x8xf32, #tpu.memory_space<vmem>>, vector<1x8x8xf32>,
    %c1_52 = arith.constant 1 : index
    %c0_53 = arith.constant 0 : index
    %c0_54 = arith.constant 0 : index
    %91 = vector.load %arg10[%c1_52, %c0_53, %c0_54] : memref<4x8x1xf32, #tpu.memory_space<vmem>>, vector<1x8x1xf32>
    %92 = vector.shape_cast %91 : vector<1x8x1xf32> to vector<8x1xf32>
    %93 = vector.shape_cast %66 : vector<8x1xf32> to vector<1x8x1xf32>
    tpu.vector_store %arg10[%c1_52, %c0_53, %c0_54], %93 {strides = array<i32>} : memref<4x8x1xf32, #tpu.memory_space<vmem>>, vector<1x8x1xf32>,
    %94 = vector.extract_strided_slice %4 {offsets = [0, 16], sizes = [8, 8], strides = [1, 1]} : vector<8x32xbf16> to vector<8x8xbf16>
    %95 = vector.extract_strided_slice %6 {offsets = [0, 16], sizes = [8, 8], strides = [1, 1]} : vector<8x64xbf16> to vector<8x8xbf16>
    %96 = vector.extract_strided_slice %6 {offsets = [0, 48], sizes = [8, 8], strides = [1, 1]} : vector<8x64xbf16> to vector<8x8xbf16>
    %cst_55 = arith.constant dense<0.000000e+00> : vector<8x8xf32>
    %97 = tpu.matmul %94, %95, %cst_55 {dimension_numbers = #tpu.dot_dimension_numbers<[1], [1], [0], [0], [0, 0, 1, 0], [], []>} : vector<8x8xbf16>, vector<8x8xbf16>, vector<8x8xf32> -> vector<8x8xf32>
    %cst_56 = arith.constant 0.353553385 : f32
    %98 = vector.broadcast %cst_56 : f32 to vector<8x8xf32>
    %99 = arith.mulf %97, %98 : vector<8x8xf32>
    %100 = vector.broadcast %13 : vector<1x8xf32> to vector<8x8xf32>
    %101 = arith.addf %99, %100 : vector<8x8xf32>
    %c2 = arith.constant 2 : index
    %c0_57 = arith.constant 0 : index
    %c0_58 = arith.constant 0 : index
    %102 = vector.load %arg10[%c2, %c0_57, %c0_58] : memref<4x8x1xf32, #tpu.memory_space<vmem>>, vector<1x8x1xf32>
    %103 = vector.shape_cast %102 : vector<1x8x1xf32> to vector<8x1xf32>
    %cst_59 = arith.constant dense<0xFF800000> : vector<8xf32>
    %104 = vector.multi_reduction <maximumf>, %101, %cst_59 [1] : vector<8x8xf32> to vector<8xf32>
    %105 = vector.shape_cast %104 : vector<8xf32> to vector<8x1xf32>
    %106 = arith.maximumf %103, %105 : vector<8x1xf32>
    %107 = arith.subf %103, %106 : vector<8x1xf32>
    %108 = math.exp %107 : vector<8x1xf32>
    %109 = vector.broadcast %106 : vector<8x1xf32> to vector<8x8xf32>
    %110 = arith.subf %101, %109 : vector<8x8xf32>
    %111 = math.exp %110 : vector<8x8xf32>
    %c2_60 = arith.constant 2 : index
    %c0_61 = arith.constant 0 : index
    %c0_62 = arith.constant 0 : index
    %112 = vector.load %arg11[%c2_60, %c0_61, %c0_62] : memref<4x8x1xf32, #tpu.memory_space<vmem>>, vector<1x8x1xf32>
    %113 = vector.shape_cast %112 : vector<1x8x1xf32> to vector<8x1xf32>
    %114 = arith.mulf %108, %113 : vector<8x1xf32>
    %cst_63 = arith.constant dense<0.000000e+00> : vector<8xf32>
    %115 = vector.multi_reduction <add>, %111, %cst_63 [1] : vector<8x8xf32> to vector<8xf32>
    %116 = vector.shape_cast %115 : vector<8xf32> to vector<8x1xf32>
    %117 = arith.addf %114, %116 : vector<8x1xf32>
    %c2_64 = arith.constant 2 : index
    %c0_65 = arith.constant 0 : index
    %c0_66 = arith.constant 0 : index
    %118 = vector.load %arg11[%c2_64, %c0_65, %c0_66] : memref<4x8x1xf32, #tpu.memory_space<vmem>>, vector<1x8x1xf32>
    %119 = vector.shape_cast %118 : vector<1x8x1xf32> to vector<8x1xf32>
    %120 = vector.shape_cast %117 : vector<8x1xf32> to vector<1x8x1xf32>
    tpu.vector_store %arg11[%c2_64, %c0_65, %c0_66], %120 {strides = array<i32>} : memref<4x8x1xf32, #tpu.memory_space<vmem>>, vector<1x8x1xf32>,
    %c2_67 = arith.constant 2 : index
    %c0_68 = arith.constant 0 : index
    %c0_69 = arith.constant 0 : index
    %121 = vector.load %arg12[%c2_67, %c0_68, %c0_69] : memref<4x8x8xf32, #tpu.memory_space<vmem>>, vector<1x8x8xf32>
    %122 = vector.shape_cast %121 : vector<1x8x8xf32> to vector<8x8xf32>
    %123 = vector.broadcast %108 : vector<8x1xf32> to vector<8x8xf32>
    %124 = arith.mulf %123, %122 : vector<8x8xf32>
    %125 = arith.truncf %111 : vector<8x8xf32> to vector<8x8xbf16>
    %cst_70 = arith.constant dense<0.000000e+00> : vector<8x8xf32>
    %126 = tpu.matmul %125, %96, %cst_70 {dimension_numbers = #tpu.dot_dimension_numbers<[1], [0], [0], [1], [0, 0, 1, 1], [], []>} : vector<8x8xbf16>, vector<8x8xbf16>, vector<8x8xf32> -> vector<8x8xf32>
    %127 = arith.addf %124, %126 : vector<8x8xf32>
    %c2_71 = arith.constant 2 : index
    %c0_72 = arith.constant 0 : index
    %c0_73 = arith.constant 0 : index
    %128 = vector.load %arg12[%c2_71, %c0_72, %c0_73] : memref<4x8x8xf32, #tpu.memory_space<vmem>>, vector<1x8x8xf32>
    %129 = vector.shape_cast %128 : vector<1x8x8xf32> to vector<8x8xf32>
    %130 = vector.shape_cast %127 : vector<8x8xf32> to vector<1x8x8xf32>
    tpu.vector_store %arg12[%c2_71, %c0_72, %c0_73], %130 {strides = array<i32>} : memref<4x8x8xf32, #tpu.memory_space<vmem>>, vector<1x8x8xf32>,
    %c2_74 = arith.constant 2 : index
    %c0_75 = arith.constant 0 : index
    %c0_76 = arith.constant 0 : index
    %131 = vector.load %arg10[%c2_74, %c0_75, %c0_76] : memref<4x8x1xf32, #tpu.memory_space<vmem>>, vector<1x8x1xf32>
    %132 = vector.shape_cast %131 : vector<1x8x1xf32> to vector<8x1xf32>
    %133 = vector.shape_cast %106 : vector<8x1xf32> to vector<1x8x1xf32>
    tpu.vector_store %arg10[%c2_74, %c0_75, %c0_76], %133 {strides = array<i32>} : memref<4x8x1xf32, #tpu.memory_space<vmem>>, vector<1x8x1xf32>,
    %134 = vector.extract_strided_slice %4 {offsets = [0, 24], sizes = [8, 8], strides = [1, 1]} : vector<8x32xbf16> to vector<8x8xbf16>
    %135 = vector.extract_strided_slice %6 {offsets = [0, 24], sizes = [8, 8], strides = [1, 1]} : vector<8x64xbf16> to vector<8x8xbf16>
    %136 = vector.extract_strided_slice %6 {offsets = [0, 56], sizes = [8, 8], strides = [1, 1]} : vector<8x64xbf16> to vector<8x8xbf16>
    %cst_77 = arith.constant dense<0.000000e+00> : vector<8x8xf32>
    %137 = tpu.matmul %134, %135, %cst_77 {dimension_numbers = #tpu.dot_dimension_numbers<[1], [1], [0], [0], [0, 0, 1, 0], [], []>} : vector<8x8xbf16>, vector<8x8xbf16>, vector<8x8xf32> -> vector<8x8xf32>
    %cst_78 = arith.constant 0.353553385 : f32
    %138 = vector.broadcast %cst_78 : f32 to vector<8x8xf32>
    %139 = arith.mulf %137, %138 : vector<8x8xf32>
    %140 = vector.broadcast %13 : vector<1x8xf32> to vector<8x8xf32>
    %141 = arith.addf %139, %140 : vector<8x8xf32>
    %c3 = arith.constant 3 : index
    %c0_79 = arith.constant 0 : index
    %c0_80 = arith.constant 0 : index
    %142 = vector.load %arg10[%c3, %c0_79, %c0_80] : memref<4x8x1xf32, #tpu.memory_space<vmem>>, vector<1x8x1xf32>
    %143 = vector.shape_cast %142 : vector<1x8x1xf32> to vector<8x1xf32>
    %cst_81 = arith.constant dense<0xFF800000> : vector<8xf32>
    %144 = vector.multi_reduction <maximumf>, %141, %cst_81 [1] : vector<8x8xf32> to vector<8xf32>
    %145 = vector.shape_cast %144 : vector<8xf32> to vector<8x1xf32>
    %146 = arith.maximumf %143, %145 : vector<8x1xf32>
    %147 = arith.subf %143, %146 : vector<8x1xf32>
    %148 = math.exp %147 : vector<8x1xf32>
    %149 = vector.broadcast %146 : vector<8x1xf32> to vector<8x8xf32>
    %150 = arith.subf %141, %149 : vector<8x8xf32>
    %151 = math.exp %150 : vector<8x8xf32>
    %c3_82 = arith.constant 3 : index
    %c0_83 = arith.constant 0 : index
    %c0_84 = arith.constant 0 : index
    %152 = vector.load %arg11[%c3_82, %c0_83, %c0_84] : memref<4x8x1xf32, #tpu.memory_space<vmem>>, vector<1x8x1xf32>
    %153 = vector.shape_cast %152 : vector<1x8x1xf32> to vector<8x1xf32>
    %154 = arith.mulf %148, %153 : vector<8x1xf32>
    %cst_85 = arith.constant dense<0.000000e+00> : vector<8xf32>
    %155 = vector.multi_reduction <add>, %151, %cst_85 [1] : vector<8x8xf32> to vector<8xf32>
    %156 = vector.shape_cast %155 : vector<8xf32> to vector<8x1xf32>
    %157 = arith.addf %154, %156 : vector<8x1xf32>
    %c3_86 = arith.constant 3 : index
    %c0_87 = arith.constant 0 : index
    %c0_88 = arith.constant 0 : index
    %158 = vector.load %arg11[%c3_86, %c0_87, %c0_88] : memref<4x8x1xf32, #tpu.memory_space<vmem>>, vector<1x8x1xf32>
    %159 = vector.shape_cast %158 : vector<1x8x1xf32> to vector<8x1xf32>
    %160 = vector.shape_cast %157 : vector<8x1xf32> to vector<1x8x1xf32>
    tpu.vector_store %arg11[%c3_86, %c0_87, %c0_88], %160 {strides = array<i32>} : memref<4x8x1xf32, #tpu.memory_space<vmem>>, vector<1x8x1xf32>,
    %c3_89 = arith.constant 3 : index
    %c0_90 = arith.constant 0 : index
    %c0_91 = arith.constant 0 : index
    %161 = vector.load %arg12[%c3_89, %c0_90, %c0_91] : memref<4x8x8xf32, #tpu.memory_space<vmem>>, vector<1x8x8xf32>
    %162 = vector.shape_cast %161 : vector<1x8x8xf32> to vector<8x8xf32>
    %163 = vector.broadcast %148 : vector<8x1xf32> to vector<8x8xf32>
    %164 = arith.mulf %163, %162 : vector<8x8xf32>
    %165 = arith.truncf %151 : vector<8x8xf32> to vector<8x8xbf16>
    %cst_92 = arith.constant dense<0.000000e+00> : vector<8x8xf32>
    %166 = tpu.matmul %165, %136, %cst_92 {dimension_numbers = #tpu.dot_dimension_numbers<[1], [0], [0], [1], [0, 0, 1, 1], [], []>} : vector<8x8xbf16>, vector<8x8xbf16>, vector<8x8xf32> -> vector<8x8xf32>
    %167 = arith.addf %164, %166 : vector<8x8xf32>
    %c3_93 = arith.constant 3 : index
    %c0_94 = arith.constant 0 : index
    %c0_95 = arith.constant 0 : index
    %168 = vector.load %arg12[%c3_93, %c0_94, %c0_95] : memref<4x8x8xf32, #tpu.memory_space<vmem>>, vector<1x8x8xf32>
    %169 = vector.shape_cast %168 : vector<1x8x8xf32> to vector<8x8xf32>
    %170 = vector.shape_cast %167 : vector<8x8xf32> to vector<1x8x8xf32>
    tpu.vector_store %arg12[%c3_93, %c0_94, %c0_95], %170 {strides = array<i32>} : memref<4x8x8xf32, #tpu.memory_space<vmem>>, vector<1x8x8xf32>,
    %c3_96 = arith.constant 3 : index
    %c0_97 = arith.constant 0 : index
    %c0_98 = arith.constant 0 : index
    %171 = vector.load %arg10[%c3_96, %c0_97, %c0_98] : memref<4x8x1xf32, #tpu.memory_space<vmem>>, vector<1x8x1xf32>
    %172 = vector.shape_cast %171 : vector<1x8x1xf32> to vector<8x1xf32>
    %173 = vector.shape_cast %146 : vector<8x1xf32> to vector<1x8x1xf32>
    tpu.vector_store %arg10[%c3_96, %c0_97, %c0_98], %173 {strides = array<i32>} : memref<4x8x1xf32, #tpu.memory_space<vmem>>, vector<1x8x1xf32>,
    %c0_i32_99 = arith.constant 0 : i32
    %174 = arith.cmpi eq, %arg2, %c0_i32_99 : i32
    %175 = arith.extui %174 : i1 to i32
    %c0_i32_100 = arith.constant 0 : i32
    %176 = arith.cmpi ne, %175, %c0_i32_100 : i32
    scf.if %176 {
      %c0_101 = arith.constant 0 : index
      %c0_102 = arith.constant 0 : index
      %c0_103 = arith.constant 0 : index
      %177 = vector.load %arg8[%c0_101, %c0_102, %c0_103] : memref<1x8x32xf32, #tpu.memory_space<vmem>>, vector<1x8x32xf32>
      %178 = vector.shape_cast %177 : vector<1x8x32xf32> to vector<8x32xf32>
      %c0_104 = arith.constant 0 : index
      %c0_105 = arith.constant 0 : index
      %179 = vector.load %arg7[%c0_104, %c0_105] : memref<1x32xf32, #tpu.memory_space<vmem>>, vector<1x32xf32>
      %180 = vector.broadcast %179 : vector<1x32xf32> to vector<8x32xf32>
      %181 = arith.addf %178, %180 : vector<8x32xf32>
      %c0_106 = arith.constant 0 : index
      %c0_107 = arith.constant 0 : index
      %c0_108 = arith.constant 0 : index
      %182 = vector.load %arg12[%c0_106, %c0_107, %c0_108] : memref<4x8x8xf32, #tpu.memory_space<vmem>>, vector<1x8x8xf32>
      %183 = vector.shape_cast %182 : vector<1x8x8xf32> to vector<8x8xf32>
      %c0_109 = arith.constant 0 : index
      %c0_110 = arith.constant 0 : index
      %c0_111 = arith.constant 0 : index
      %184 = vector.load %arg11[%c0_109, %c0_110, %c0_111] : memref<4x8x1xf32, #tpu.memory_space<vmem>>, vector<1x8x1xf32>
      %185 = vector.shape_cast %184 : vector<1x8x1xf32> to vector<8x1xf32>
      %186 = tpu.reciprocal %185 {approx = true} : vector<8x1xf32> -> vector<8x1xf32>
      %187 = vector.broadcast %186 : vector<8x1xf32> to vector<8x8xf32>
      %188 = arith.mulf %183, %187 : vector<8x8xf32>
      %189 = arith.truncf %188 : vector<8x8xf32> to vector<8x8xbf16>
      %c0_112 = arith.constant 0 : index
      %c0_113 = arith.constant 0 : index
      %190 = vector.load %arg6[%c0_112, %c0_113] : memref<32x32xbf16, #tpu.memory_space<vmem>>, vector<8x32xbf16>
      %cst_114 = arith.constant dense<0.000000e+00> : vector<8x32xf32>
      %191 = tpu.matmul %189, %190, %cst_114 {dimension_numbers = #tpu.dot_dimension_numbers<[1], [0], [0], [1], [0, 0, 1, 1], [], []>} : vector<8x8xbf16>, vector<8x32xbf16>, vector<8x32xf32> -> vector<8x32xf32>
      %192 = arith.addf %181, %191 : vector<8x32xf32>
      %c1_115 = arith.constant 1 : index
      %c0_116 = arith.constant 0 : index
      %c0_117 = arith.constant 0 : index
      %193 = vector.load %arg12[%c1_115, %c0_116, %c0_117] : memref<4x8x8xf32, #tpu.memory_space<vmem>>, vector<1x8x8xf32>
      %194 = vector.shape_cast %193 : vector<1x8x8xf32> to vector<8x8xf32>
      %c1_118 = arith.constant 1 : index
      %c0_119 = arith.constant 0 : index
      %c0_120 = arith.constant 0 : index
      %195 = vector.load %arg11[%c1_118, %c0_119, %c0_120] : memref<4x8x1xf32, #tpu.memory_space<vmem>>, vector<1x8x1xf32>
      %196 = vector.shape_cast %195 : vector<1x8x1xf32> to vector<8x1xf32>
      %197 = tpu.reciprocal %196 {approx = true} : vector<8x1xf32> -> vector<8x1xf32>
      %198 = vector.broadcast %197 : vector<8x1xf32> to vector<8x8xf32>
      %199 = arith.mulf %194, %198 : vector<8x8xf32>
      %200 = arith.truncf %199 : vector<8x8xf32> to vector<8x8xbf16>
      %c8 = arith.constant 8 : index
      %c0_121 = arith.constant 0 : index
      %201 = vector.load %arg6[%c8, %c0_121] : memref<32x32xbf16, #tpu.memory_space<vmem>>, vector<8x32xbf16>
      %cst_122 = arith.constant dense<0.000000e+00> : vector<8x32xf32>
      %202 = tpu.matmul %200, %201, %cst_122 {dimension_numbers = #tpu.dot_dimension_numbers<[1], [0], [0], [1], [0, 0, 1, 1], [], []>} : vector<8x8xbf16>, vector<8x32xbf16>, vector<8x32xf32> -> vector<8x32xf32>
      %203 = arith.addf %192, %202 : vector<8x32xf32>
      %c2_123 = arith.constant 2 : index
      %c0_124 = arith.constant 0 : index
      %c0_125 = arith.constant 0 : index
      %204 = vector.load %arg12[%c2_123, %c0_124, %c0_125] : memref<4x8x8xf32, #tpu.memory_space<vmem>>, vector<1x8x8xf32>
      %205 = vector.shape_cast %204 : vector<1x8x8xf32> to vector<8x8xf32>
      %c2_126 = arith.constant 2 : index
      %c0_127 = arith.constant 0 : index
      %c0_128 = arith.constant 0 : index
      %206 = vector.load %arg11[%c2_126, %c0_127, %c0_128] : memref<4x8x1xf32, #tpu.memory_space<vmem>>, vector<1x8x1xf32>
      %207 = vector.shape_cast %206 : vector<1x8x1xf32> to vector<8x1xf32>
      %208 = tpu.reciprocal %207 {approx = true} : vector<8x1xf32> -> vector<8x1xf32>
      %209 = vector.broadcast %208 : vector<8x1xf32> to vector<8x8xf32>
      %210 = arith.mulf %205, %209 : vector<8x8xf32>
      %211 = arith.truncf %210 : vector<8x8xf32> to vector<8x8xbf16>
      %c16 = arith.constant 16 : index
      %c0_129 = arith.constant 0 : index
      %212 = vector.load %arg6[%c16, %c0_129] : memref<32x32xbf16, #tpu.memory_space<vmem>>, vector<8x32xbf16>
      %cst_130 = arith.constant dense<0.000000e+00> : vector<8x32xf32>
      %213 = tpu.matmul %211, %212, %cst_130 {dimension_numbers = #tpu.dot_dimension_numbers<[1], [0], [0], [1], [0, 0, 1, 1], [], []>} : vector<8x8xbf16>, vector<8x32xbf16>, vector<8x32xf32> -> vector<8x32xf32>
      %214 = arith.addf %203, %213 : vector<8x32xf32>
      %c3_131 = arith.constant 3 : index
      %c0_132 = arith.constant 0 : index
      %c0_133 = arith.constant 0 : index
      %215 = vector.load %arg12[%c3_131, %c0_132, %c0_133] : memref<4x8x8xf32, #tpu.memory_space<vmem>>, vector<1x8x8xf32>
      %216 = vector.shape_cast %215 : vector<1x8x8xf32> to vector<8x8xf32>
      %c3_134 = arith.constant 3 : index
      %c0_135 = arith.constant 0 : index
      %c0_136 = arith.constant 0 : index
      %217 = vector.load %arg11[%c3_134, %c0_135, %c0_136] : memref<4x8x1xf32, #tpu.memory_space<vmem>>, vector<1x8x1xf32>
      %218 = vector.shape_cast %217 : vector<1x8x1xf32> to vector<8x1xf32>
      %219 = tpu.reciprocal %218 {approx = true} : vector<8x1xf32> -> vector<8x1xf32>
      %220 = vector.broadcast %219 : vector<8x1xf32> to vector<8x8xf32>
      %221 = arith.mulf %216, %220 : vector<8x8xf32>
      %222 = arith.truncf %221 : vector<8x8xf32> to vector<8x8xbf16>
      %c24 = arith.constant 24 : index
      %c0_137 = arith.constant 0 : index
      %223 = vector.load %arg6[%c24, %c0_137] : memref<32x32xbf16, #tpu.memory_space<vmem>>, vector<8x32xbf16>
      %cst_138 = arith.constant dense<0.000000e+00> : vector<8x32xf32>
      %224 = tpu.matmul %222, %223, %cst_138 {dimension_numbers = #tpu.dot_dimension_numbers<[1], [0], [0], [1], [0, 0, 1, 1], [], []>} : vector<8x8xbf16>, vector<8x32xbf16>, vector<8x32xf32> -> vector<8x32xf32>
      %225 = arith.addf %214, %224 : vector<8x32xf32>
      %c0_139 = arith.constant 0 : index
      %c0_140 = arith.constant 0 : index
      %c0_141 = arith.constant 0 : index
      %226 = vector.load %arg9[%c0_139, %c0_140, %c0_141] : memref<1x8x32xf32, #tpu.memory_space<vmem>>, vector<1x8x32xf32>
      %227 = vector.shape_cast %226 : vector<1x8x32xf32> to vector<8x32xf32>
      %228 = vector.shape_cast %225 : vector<8x32xf32> to vector<1x8x32xf32>
      tpu.vector_store %arg9[%c0_139, %c0_140, %c0_141], %228 {strides = array<i32>} : memref<1x8x32xf32, #tpu.memory_space<vmem>>, vector<1x8x32xf32>,
    } else {
    }
    return
  }
  func.func @transform_0(%arg0: i32, %arg1: i32, %arg2: i32) -> (i32, i32, i32) {
    %c0_i32 = arith.constant 0 : i32
    %c0_i32_0 = arith.constant 0 : i32
    return %arg0, %arg1, %c0_i32 : i32, i32, i32
  }
  func.func @transform_1(%arg0: i32, %arg1: i32, %arg2: i32) -> (i32, i32, i32) {
    %c0_i32 = arith.constant 0 : i32
    %c0_i32_0 = arith.constant 0 : i32
    return %arg0, %arg2, %c0_i32 : i32, i32, i32
  }
  func.func @transform_2(%arg0: i32, %arg1: i32, %arg2: i32) -> (i32, i32, i32) {
    %c0_i32 = arith.constant 0 : i32
    %c0_i32_0 = arith.constant 0 : i32
    return %arg0, %c0_i32, %arg2 : i32, i32, i32
  }
  func.func @transform_3(%arg0: i32, %arg1: i32, %arg2: i32) -> (i32, i32) {
    %c0_i32 = arith.constant 0 : i32
    %c0_i32_0 = arith.constant 0 : i32
    %c0_i32_1 = arith.constant 0 : i32
    return %c0_i32, %c0_i32_0 : i32, i32
  }
  func.func @transform_4(%arg0: i32, %arg1: i32, %arg2: i32) -> (i32, i32) {
    %c0_i32 = arith.constant 0 : i32
    %c0_i32_0 = arith.constant 0 : i32
    %c0_i32_1 = arith.constant 0 : i32
    return %c0_i32, %c0_i32_0 : i32, i32
  }
  func.func @transform_5(%arg0: i32, %arg1: i32, %arg2: i32) -> (i32, i32, i32) {
    %c0_i32 = arith.constant 0 : i32
    %c0_i32_0 = arith.constant 0 : i32
    return %arg0, %arg1, %c0_i32 : i32, i32, i32
  }
  func.func @transform_6(%arg0: i32, %arg1: i32, %arg2: i32) -> (i32, i32, i32) {
    %c0_i32 = arith.constant 0 : i32
    %c0_i32_0 = arith.constant 0 : i32
    return %arg0, %arg1, %c0_i32 : i32, i32, i32
  }
}

</mosaic_0001>

<bundles_post_ra>
// kernel: decoder_layer_forward.8
= control target key start
LH: loop header
LB: loop body
LE: loop exit
PB: predicated region body
PF: predicated region fallthrough
CT: control target
= control target key end

     0   :  { %s466_s18 = smov 0   ;;  %s505_s0 = inlined_call_operand.vmem [shape: f32[16,32], index: 0, kind: input, shape index: {}]   ;;  %s506_s1 = inlined_call_operand.vmem [shape: f32[1,32], index: 1, kind: input, shape index: {}]   ;;  %s507_s2 = inlined_call_operand.vmem [shape: f32[1,32], index: 2, kind: input, shape index: {}]   ;;  %s508_s3 = inlined_call_operand.vmem [shape: bf16[32,32], index: 3, kind: input, shape index: {}]   ;;  %s509_s4 = inlined_call_operand.vmem [shape: f32[1,32], index: 4, kind: input, shape index: {}]   ;;  %s510_s5 = inlined_call_operand.vmem [shape: bf16[16,32], index: 5, kind: output, shape index: {}]  }
   0x1 LB: > { %s384_s19 = sadd.s32 4294967295, %s432_s18   ;;  %p388_p0 = scmp.ge.s32.totalorder %s432_s18, 1  ;;  %s432_s18 = sphi %s466_s18, %s15_s18  }
   0x2   : > { %p186_p1 = scmp.lt.s32.totalorder %s432_s18, 3 }
   0x4   : > { %p187_p2 = pnand %p388_p0, %p186_p1 }
   0x5   : > { %p212_p3 = scmp.lt.s32.totalorder (!%p187_p2), %s384_s19, 1 }
   0x6   : > { %190 = sbr.rel (%p187_p2) target bundleno = 540 (0x21c), region = 40 }
   0xb   : > { %s512_s19 = smov (!%p212_p3, %s384_s19), 1  ;;  %vm224_vm0 = vcmask 261120   ;;  %v420_v7 = vld [vmem:[%s508_s3 + $0x8] sm:$0xff]   ;;  %v434_v8 = vmov 0.0   ;;  %vm435_vm1 = vmmov 0   ;;  %v421_v9 = vld [vmem:[%s508_s3] sm:$0xff]  }
   0xc   : > { %s389_s20 = sshll.u32 %s512_s19, 3  ;;  %402 = vmatprep.subr.bf16.mxu0 %v434_v8  ;;  %406 = vmatprep.mubr.msk.bf16.mxu0 %vm435_vm1, %v434_v8  ;;  %v391_v18 = vld [vmem:[%s506_s1] ss:$0 sm:$0xff]  ;;  %s390_s9 = sshll.u32 %s512_s19, 2  ;;  %vm329_vm4 = vcmask 257024  }
   0xd   : > { %s215_s23 = scalar_lea.vmem %s505_s0, %s389_s20  ;;  %403 = vmatpush3.bf16.msra.mxu0 %v420_v7  ;;  %v392_v21 = vld [vmem:[%s507_s2] ss:$0 sm:$0xff]  ;;  %s219_s12 = scalar_lea.vmem %s510_s5, %s390_s9 }
   0xe   : > { %v221_v0 = vld [vmem:[%s215_s23] sm:$0xff]  ;;  %404 = vmatprep.subr.bf16.mxu0 %v434_v8 }
   0xf   : > { %v225_v1 = vsel %vm224_vm0, %v221_v0, 0.0  ;;  %v393_v25 = vld [vmem:[%s509_s4] ss:$0 sm:$0xff] }
  0x10   : > { %226 = vadd.xlane.f32.xlu0 %v225_v1 }
  0x11   : > { %405 = vmatpush3.bf16.msra.mxu0 %v421_v9 }
  0x99   : > { %v227_v2 = vpop.xlane.xlu0 %226 }
  0x9a   : > { %v229_v3 = vmul.f32 0.03125, %v227_v2 }
  0x9c   : > { %v230_v4 = vsub.f32 %v221_v0, %v229_v3 }
  0x9e   : > { %v231_v5 = vmul.f32 %v230_v4, %v230_v4  ;;  %v252_v19 = vmul.f32 %v391_v18, %v230_v4 }
  0xa0   : > { %v232_v6 = vsel %vm224_vm0, %v231_v5, 0.0 }
  0xa1   : > { %233 = vadd.xlane.f32.xlu0 %v232_v6 }
 0x12a   : > { %v234_v10 = vpop.xlane.xlu0 %233 }
 0x12b   : > { %v236_v11 = vmul.f32 0.032258064, %v234_v10 }
 0x12d   : > { %422 = vrsqrt.f32 %v236_v11  ;;  %vm239_vm2 = vcmp.eq.f32.partialorder %v236_v11, inf  ;;  %v242_v14 = vand.u32 2147483648, %v236_v11  ;;  %vm241_vm3 = vcmp.eq.f32.partialorder %v236_v11, 0.0 }
 0x13a   : > { %v423_v12 = vpop.eup %422 }
 0x13b   : > { %v238_v13 = vmul.f32 %v423_v12, %v236_v11 }
 0x13d   : > { %v240_v15 = vsel %vm239_vm2, %v236_v11, %v238_v13 }
 0x13e   : > { %v243_v16 = vsel %vm241_vm3, %v242_v14, %v240_v15 }
 0x13f   : > { %v244_v17 = vadd.f32 1e-06, %v243_v16 }
 0x141   : > { %424 = vrcp.f32 %v244_v17 }
 0x14e   : > { %v425_v20 = vpop.eup %424 }
 0x14f   : > { %v253_v22 = vmul.f32 %v425_v20, %v252_v19 }
 0x151   : > { %v260_v23 = vadd.f32 %v392_v21, %v253_v22 }
 0x153   : > { %v261_v24 = vpack.c.bf16 %v260_v23, %v260_v23 }
 0x155   : > { %407 = vmatmul.mubr.msk.bf16.vlgmr.msra.gmra.mxu0 %vm224_vm0, %v261_v24 }
 0x215   : > { %v322_v26 = vpop.f32.mrf.mxu0 }
 0x216   : > { %v323_v27 = vadd.f32 %v393_v25, %v322_v26 }
 0x217   : > { %v408_v28 = vpop.f32.mrf.mxu0 }
 0x218   : > { %v328_v29 = vpack.c.bf16 %v323_v27, %v323_v27 }
 0x219   : > { %v325_v30 = vpop.f32.mrf.mxu0 }
 0x21a   : > { %330 = vst.msk [vmem:[%s219_s12] sm:$0xf] %vm329_vm4, %v328_v29 }
 0x21b   : > { %v409_v31 = vpop.f32.mrf.mxu0 }
 0x21c PF: > { %s15_s18 = sadd.s32 1, %s432_s18  }
 0x21d   : > { %p12_p4 = scmp.ge.s32.totalorder %s15_s18, 4  }
 0x21f   :  { %14 = sbr.rel (!%p12_p4) target bundleno = 1 (0x1), region = 70 }

// kernel: decoder_layer_forward.9
= control target key start
LH: loop header
LB: loop body
LE: loop exit
PB: predicated region body
PF: predicated region fallthrough
CT: control target
= control target key end

     0   :  { %s358_s12 = smov 0   ;;  %s384_s0 = inlined_call_operand.vmem [shape: f32[16,32], index: 0, kind: input, shape index: {}]   ;;  %s385_s1 = inlined_call_operand.vmem [shape: bf16[32,64], index: 1, kind: input, shape index: {}]   ;;  %s386_s2 = inlined_call_operand.vmem [shape: f32[1,64], index: 2, kind: input, shape index: {}]   ;;  %s387_s3 = inlined_call_operand.vmem [shape: bf16[16,64], index: 3, kind: output, shape index: {}]  }
   0x1 LB: > { %s292_s13 = sadd.s32 4294967295, %s334_s12   ;;  %p296_p0 = scmp.ge.s32.totalorder %s334_s12, 1  ;;  %s334_s12 = sphi %s358_s12, %s13_s12  }
   0x2   : > { %p136_p1 = scmp.lt.s32.totalorder %s334_s12, 3 }
   0x4   : > { %p137_p2 = pnand %p296_p0, %p136_p1 }
   0x5   : > { %p158_p3 = scmp.lt.s32.totalorder (!%p137_p2), %s292_s13, 1 }
   0x6   : > { %140 = sbr.rel (%p137_p2) target bundleno = 219 (0xdb), region = 32 }
   0xb   : > { %v326_v0 = vld [vmem:[%s385_s1 + $0x8] sm:$0xff]   ;;  %v336_v1 = vmov 0.0   ;;  %v327_v2 = vld [vmem:[%s385_s1] sm:$0xff]   ;;  %vm337_vm0 = vmmov 0   ;;  %s389_s13 = smov (!%p158_p3, %s292_s13), 1  ;;  %vm192_vm1 = vcmask 261120  }
   0xc   : > { %308 = vmatprep.subr.bf16.mxu0 %v336_v1  ;;  %312 = vmatprep.mubr.msk.bf16.mxu0 %vm337_vm0, %v336_v1  ;;  %s297_s18 = sshll.u32 %s389_s13, 3  ;;  %v299_v5 = vld [vmem:[%s386_s2] ss:$0 sm:$0xff]  ;;  %s298_s24 = sshll.u32 %s389_s13, 2  ;;  %vm237_vm2 = vcmask 519168  }
   0xd   : > { %309 = vmatpush3.bf16.msra.mxu0 %v326_v0  ;;  %s161_s21 = scalar_lea.vmem %s384_s0, %s297_s18  ;;  %s165_s27 = scalar_lea.vmem %s387_s3, %s298_s24 }
   0xe   : > { %310 = vmatprep.subr.bf16.mxu0 %v336_v1  ;;  %v167_v3 = vld [vmem:[%s161_s21] sm:$0xff] }
   0xf   : > { %v168_v4 = vpack.c.bf16 %v167_v3, %v167_v3 }
  0x11   : > { %311 = vmatpush3.bf16.msra.mxu0 %v327_v2 }
  0x14   : > { %313 = vmatmul.mubr.msk.bf16.vlgmr.msra.gmra.mxu0 %vm192_vm1, %v168_v4 }
  0xd4   : > { %v230_v6 = vpop.f32.mrf.mxu0 }
  0xd5   : > { %v231_v7 = vadd.f32 %v299_v5, %v230_v6 }
  0xd6   : > { %v314_v8 = vpop.f32.mrf.mxu0 }
  0xd7   : > { %v236_v9 = vpack.c.bf16 %v231_v7, %v231_v7 }
  0xd8   : > { %v233_v10 = vpop.f32.mrf.mxu0 }
  0xd9   : > { %238 = vst.msk [vmem:[%s165_s27] sm:$0xf] %vm237_vm2, %v236_v9 }
  0xda   : > { %v315_v11 = vpop.f32.mrf.mxu0 }
  0xdb PF: > { %s13_s12 = sadd.s32 1, %s334_s12  }
  0xdc   : > { %p10_p4 = scmp.ge.s32.totalorder %s13_s12, 4  }
  0xde   :  { %12 = sbr.rel (!%p10_p4) target bundleno = 1 (0x1), region = 62 }

// kernel: decoder_layer_forward.6
= control target key start
LH: loop header
LB: loop body
LE: loop exit
PB: predicated region body
PF: predicated region fallthrough
CT: control target
= control target key end

     0   :  { %14 = vsyncpa [#allocation3], 0  ;;  %s757_s27 = smov 0   ;;  %s820_s0 = inlined_call_operand.vmem [shape: f32[16,32], index: 0, kind: input, shape index: {}]   ;;  %s821_s1 = inlined_call_operand.vmem [shape: f32[1,32], index: 1, kind: input, shape index: {}]   ;;  %s822_s2 = inlined_call_operand.vmem [shape: f32[1,32], index: 2, kind: input, shape index: {}]   ;;  %s823_s3 = inlined_call_operand.vmem [shape: bf16[32,32], index: 3, kind: input, shape index: {}]   ;;  %s824_s4 = inlined_call_operand.vmem [shape: f32[1,32], index: 4, kind: input, shape index: {}]   ;;  %s825_s5 = inlined_call_operand.vmem [shape: bf16[32,64], index: 5, kind: input, shape index: {}]   ;;  %s826_s6 = inlined_call_operand.hbm [shape: f32[1,64], index: 6, kind: input, shape index: {}]   ;;  %s827_s7 = inlined_call_operand.vmem [shape: bf16[16,32], index: 7, kind: output, shape index: {0}]   ;;  %s828_s8 = inlined_call_operand.vmem [shape: bf16[16,64], index: 8, kind: output, shape index: {1}]  }
   0x1 LB: > { %s598_s28 = sadd.s32 4294967295, %s707_s27   ;;  %p600_p0 = scmp.ge.s32.totalorder %s707_s27, 1  ;;  %s707_s27 = sphi %s757_s27, %s20_s27  }
   0x2   : > { %p229_p1 = scmp.lt.s32.totalorder %s707_s27, 3  ;;  %p650_p3 = scmp.eq.s32.totalorder %s598_s28, 0 }
   0x3   : > { %s709_s30 = smov [#allocation2]  }
   0x4   : > { %p765_p2 = pnand %p600_p0, %p229_p1  ;;  %s257_s9 = sshll.u32 %s709_s30, 4  ;;  %s258_s9 = int_to_ptr.vmem [resolvable:$true] %s257_s9 }
   0x5   : > { %s682_s10 = scalar_lea.vmem %s258_s9, 16  ;;  %s689_s11 = scalar_lea.vmem %s258_s9, 32 }
   0x6   : > { %p646_p4 = pneg %p765_p2  ;;  %p683_p7 = scmp.ne.s32.totalorder %s258_s9, %s682_s10 }
   0x7   : > { %p690_p10 = scmp.lt.s32.totalorder %s258_s9, %s258_s9  ;;  %p691_p11 = scmp.lt.s32.totalorder %s689_s11, %s682_s10 }
   0x8   : > { %p647_p5 = pnand %p650_p3, %p646_p4 }
   0x9   : > { %p692_p12 = por %p691_p11, %p690_p10 }
   0xa   : > { %p673_p6 = pneg %p647_p5 }
   0xc   : > { %p685_p8 = pnand %p683_p7, %p673_p6 }
   0xe   : > { %p686_p9 = pneg %p685_p8 }
  0x10   : > { %p693_p13 = pnand %p692_p12, %p686_p9 }
  0x12   : > { %696 = shalt.err (!%p693_p13)
}
  0x13   : > { %649 = dma.hbm_to_vmem [thread:$0]  (!%p647_p5), %s826_s6, 16, %s258_s9, [#allocation3]  }
  0x14   : > { %277 = sbr.rel (%p765_p2) target bundleno = 557 (0x22d), region = 48 }
  0x19   : > { %702 = dma.done.wait (%p650_p3), [#allocation3], 16  }
  0x1a   : > { %704 = vsyncadd (%p650_p3), [#allocation3], 4294967280  ;;  %p313_p0 = scmp.lt.s32.totalorder %s598_s28, 1  ;;  %vm329_vm0 = vcmask 261120   ;;  %v663_v7 = vld [vmem:[%s823_s3 + $0x8] sm:$0xff]   ;;  %v710_v9 = vmov 0.0  }
  0x1b   : > { %v664_v8 = vld [vmem:[%s825_s5 + $0x8] sm:$0xff]   ;;  %626 = vmatprep.subr.bf16.mxu0 %v710_v9  ;;  %634 = vmatprep.subr.bf16.mxu1 %v710_v9  ;;  %v665_v10 = vld [vmem:[%s823_s3] sm:$0xff]   ;;  %vm711_vm1 = vmmov 0   ;;  %vm434_vm4 = vcmask 257024   ;;  %vm500_vm5 = vcmask 519168  }
  0x1c   : > { %s831_s28 = smov (!%p313_p0, %s598_s28), 1  ;;  %627 = vmatpush3.bf16.msra.mxu0 %v663_v7  ;;  %635 = vmatpush3.bf16.msra.mxu1 %v664_v8  ;;  %v666_v11 = vld [vmem:[%s825_s5] sm:$0xff]  }
  0x1d   : > { %s605_s14 = sshll.u32 %s831_s28, 3  ;;  %628 = vmatprep.subr.bf16.mxu0 %v710_v9  ;;  %636 = vmatprep.subr.bf16.mxu1 %v710_v9  ;;  %v608_v20 = vld [vmem:[%s821_s1] ss:$0 sm:$0xff]  ;;  %s606_s12 = sshll.u32 %s831_s28, 2 }
  0x1e   : > { %s316_s17 = scalar_lea.vmem %s820_s0, %s605_s14  ;;  %630 = vmatprep.mubr.msk.bf16.mxu0 %vm711_vm1, %v710_v9  ;;  %638 = vmatprep.mubr.msk.bf16.mxu1 %vm711_vm1, %v710_v9  ;;  %v609_v23 = vld [vmem:[%s822_s2] ss:$0 sm:$0xff]  ;;  %s320_s15 = scalar_lea.vmem %s827_s7, %s606_s12 }
  0x1f   : > { %v326_v0 = vld [vmem:[%s316_s17] sm:$0xff]  ;;  %s324_s18 = scalar_lea.vmem %s828_s8, %s606_s12 }
  0x20   : > { %v330_v1 = vsel %vm329_vm0, %v326_v0, 0.0  ;;  %629 = vmatpush3.bf16.msra.mxu0 %v665_v10  ;;  %637 = vmatpush3.bf16.msra.mxu1 %v666_v11  ;;  %v610_v27 = vld [vmem:[%s824_s4] ss:$0 sm:$0xff] }
  0x21   : > { %331 = vadd.xlane.f32.xlu0 %v330_v1  ;;  %v614_v28 = vld [vmem:[#allocation2] ss:$0 sm:$0xff] }
  0xaa   : > { %v332_v2 = vpop.xlane.xlu0 %331 }
  0xab   : > { %v334_v3 = vmul.f32 0.03125, %v332_v2 }
  0xad   : > { %v335_v4 = vsub.f32 %v326_v0, %v334_v3 }
  0xaf   : > { %v336_v5 = vmul.f32 %v335_v4, %v335_v4  ;;  %v357_v21 = vmul.f32 %v608_v20, %v335_v4 }
  0xb1   : > { %v337_v6 = vsel %vm329_vm0, %v336_v5, 0.0 }
  0xb2   : > { %338 = vadd.xlane.f32.xlu0 %v337_v6 }
 0x13b   : > { %v339_v12 = vpop.xlane.xlu0 %338 }
 0x13c   : > { %v341_v13 = vmul.f32 0.032258064, %v339_v12 }
 0x13e   : > { %667 = vrsqrt.f32 %v341_v13  ;;  %vm344_vm2 = vcmp.eq.f32.partialorder %v341_v13, inf  ;;  %v347_v16 = vand.u32 2147483648, %v341_v13  ;;  %vm346_vm3 = vcmp.eq.f32.partialorder %v341_v13, 0.0 }
 0x14b   : > { %v668_v14 = vpop.eup %667 }
 0x14c   : > { %v343_v15 = vmul.f32 %v668_v14, %v341_v13 }
 0x14e   : > { %v345_v17 = vsel %vm344_vm2, %v341_v13, %v343_v15 }
 0x14f   : > { %v348_v18 = vsel %vm346_vm3, %v347_v16, %v345_v17 }
 0x150   : > { %v349_v19 = vadd.f32 1e-06, %v348_v18 }
 0x152   : > { %669 = vrcp.f32 %v349_v19 }
 0x15f   : > { %v670_v22 = vpop.eup %669 }
 0x160   : > { %v358_v24 = vmul.f32 %v670_v22, %v357_v21 }
 0x162   : > { %v365_v25 = vadd.f32 %v609_v23, %v358_v24 }
 0x164   : > { %v366_v26 = vpack.c.bf16 %v365_v25, %v365_v25 }
 0x166   : > { %631 = vmatmul.mubr.msk.bf16.vlgmr.msra.gmra.mxu0 %vm329_vm0, %v366_v26  ;;  %639 = vmatmul.mubr.msk.bf16.vlgmr.msra.gmra.mxu1 %vm329_vm0, %v366_v26 }
 0x226   : > { %v427_v29 = vpop.f32.mrf.mxu0  ;;  %v493_v30 = vpop.f32.mrf.mxu1 }
 0x227   : > { %v428_v31 = vadd.f32 %v610_v27, %v427_v29  ;;  %v494_v32 = vadd.f32 %v614_v28, %v493_v30 }
 0x228   : > { %v632_v33 = vpop.f32.mrf.mxu0  ;;  %v640_v34 = vpop.f32.mrf.mxu1 }
 0x229   : > { %v433_v35 = vpack.c.bf16 %v428_v31, %v428_v31  ;;  %v499_v36 = vpack.c.bf16 %v494_v32, %v494_v32 }
 0x22a   : > { %v430_v37 = vpop.f32.mrf.mxu0  ;;  %v496_v38 = vpop.f32.mrf.mxu1 }
 0x22b   : > { %435 = vst.msk [vmem:[%s320_s15] sm:$0xf] %vm434_vm4, %v433_v35 }
 0x22c   : > { %501 = vst.msk [vmem:[%s324_s18] sm:$0xf] %vm500_vm5, %v499_v36  ;;  %v633_v39 = vpop.f32.mrf.mxu0  ;;  %v641_v40 = vpop.f32.mrf.mxu1 }
 0x22d PF: > { %s20_s27 = sadd.s32 1, %s707_s27  }
 0x22e   : > { %p17_p1 = scmp.ge.s32.totalorder %s20_s27, 4  }
 0x230   :  { %19 = sbr.rel (!%p17_p1) target bundleno = 1 (0x1), region = 95 }
 0x235   :  { %535 = vsyncpa [#allocation3], 1 }
 0x236   :  { %537 = vsyncpa [#allocation3 + $0x1], 1 }

// kernel: decoder_layer_forward.7
= control target key start
LH: loop header
LB: loop body
LE: loop exit
PB: predicated region body
PF: predicated region fallthrough
CT: control target
= control target key end

     0   :  { %s1581_s21 = smov 0   ;;  %s1583_s22 = smov 0   ;;  %s1789_s0 = inlined_call_operand.vmem [shape: bf16[2,8,32], index: 0, kind: input, shape index: {}]   ;;  %s1790_s1 = inlined_call_operand.vmem [shape: bf16[2,8,64], index: 1, kind: input, shape index: {}]   ;;  %s1791_s2 = inlined_call_operand.vmem [shape: bf16[2,8,8], index: 2, kind: input, shape index: {}]   ;;  %s1792_s3 = inlined_call_operand.vmem [shape: bf16[32,32], index: 3, kind: input, shape index: {}]   ;;  %s1793_s4 = inlined_call_operand.vmem [shape: f32[1,32], index: 4, kind: input, shape index: {}]   ;;  %s1794_s5 = inlined_call_operand.vmem [shape: f32[2,8,32], index: 5, kind: input, shape index: {}]   ;;  %s1795_s6 = inlined_call_operand.vmem [shape: f32[2,8,32], index: 6, kind: output, shape index: {}]  }
   0x1   :  { %s1585_s23 = smov 0  }
   0x2 LB: > { %s35_s24 = sadd.s32 1, %s1529_s22  ;;  %p1330_p0 = scmp.ge.s32.totalorder %s1533_s23, 1  ;;  %s1533_s23 = sphi %s1585_s23, %s16_s23   ;;  %s1529_s22 = sphi %s1583_s22, %s1797_s22   ;;  %s1525_s21 = sphi %s1581_s21, %s1796_s21  }
   0x3   : > { %p37_p1 = scmp.ge.s32.totalorder %s35_s24, 2  ;;  %p284_p2 = scmp.lt.s32.totalorder %s1533_s23, 3 }
   0x5   : > { %s1799_s24 = smov (%p37_p1, %s35_s24), 0  ;;  %p285_p3 = pnand %p1330_p0, %p284_p2 }
   0x6   : > { %p342_p4 = scmp.lt.s32.totalorder (!%p285_p3), %s1525_s21, 1  ;;  %s1539_s11 = smov (!%p285_p3), 96  }
   0x7   : > { %288 = sbr.rel (%p285_p3) target bundleno = 1500 (0x5dc), region = 44  ;;  %s1540_s12 = smov (!%p285_p3), 120  }
   0x8   : > { %s1541_s13 = smov (!%p285_p3), 112   ;;  %s1542_s14 = smov (!%p285_p3), 104  }
   0x9   : > { %s1543_s15 = smov (!%p285_p3), 88   ;;  %s1544_s16 = smov (!%p285_p3), 80  }
   0xa   : > { %s1545_s17 = smov (!%p285_p3), 72  }
   0xc   : > { %vm394_vm0 = vcmask 64512   ;;  %v1535_v0 = vmov 0.0   ;;  %vm1536_vm1 = vmmov 0   ;;  %s1801_s21 = smov (!%p342_p4, %s1525_s21), 1  ;;  %vm385_vm2 = vcmask 7168  }
   0xd   : > { %1377 = vmatprep.subr.bf16.mxu0 %v1535_v0  ;;  %395 = vst.msk [vmem:[#allocation4] sm:$0xff] %vm394_vm0, %v1535_v0  ;;  %396 = vst.msk [vmem:[#allocation4 + $0x8] sm:$0xff] %vm394_vm0, %v1535_v0  ;;  %1379 = vmatprep.mubr.msk.bf16.mxu0 %vm1536_vm1, %v1535_v0  ;;  %s1331_s25 = sshll.u32 %s1801_s21, 2  ;;  %v1537_v4 = vmov -inf   ;;  %v1538_v16 = vmov 0   ;;  %vm494_vm3 = vcmask 1043456  }
   0xe   : > { %397 = vst.msk [vmem:[#allocation4 + $0x10] sm:$0xff] %vm394_vm0, %v1535_v0  ;;  %398 = vst.msk [vmem:[#allocation4 + $0x18] sm:$0xff] %vm394_vm0, %v1535_v0  ;;  %1383 = vmatprep.subr.bf16.mxu1 %v1535_v0  ;;  %1385 = vmatprep.mubr.msk.bf16.mxu1 %vm1536_vm1, %v1535_v0  ;;  %s355_s28 = scalar_lea.vmem %s1790_s1, %s1331_s25  ;;  %s348_s7 = scalar_lea.vmem %s1789_s0, %s1331_s25  ;;  %vm1199_vm4 = vcmask 261120  }
   0xf   : > { %v400_v1 = vld [vmem:[%s355_s28] sm:$0xf]  ;;  %386 = vst.msk [vmem:[#allocation2] sm:$0xff] %vm385_vm2, %v1537_v4  ;;  %387 = vst.msk [vmem:[#allocation2 + $0x8] sm:$0xff] %vm385_vm2, %v1537_v4  ;;  %s365_s10 = scalar_lea.vmem %s1791_s2, %s1331_s25  ;;  %1484 = vset.pattern.permute.xlu0 %v1538_v16  ;;  %1485 = vset.pattern.permute.xlu1 %v1538_v16  ;;  %s1334_s30 = sshll.u32 %s1801_s21, 3 }
  0x10   : > { %v410_v2 = vsel %vm394_vm0, %v400_v1, 0  ;;  %v399_v3 = vld [vmem:[%s348_s7] sm:$0xf]  ;;  %388 = vst.msk [vmem:[#allocation2 + $0x10] sm:$0xff] %vm385_vm2, %v1537_v4  ;;  %389 = vst.msk [vmem:[#allocation2 + $0x18] sm:$0xff] %vm385_vm2, %v1537_v4  ;;  %v1646_v17 = vcombine.low %v400_v1, %v400_v1  ;;  %s372_s9 = scalar_lea.vmem %s1794_s5, %s1334_s30 }
  0x11   : > { %1378 = vmatpush3.bf16.xpose.msra.mxu0 %v410_v2  ;;  %390 = vst.msk [vmem:[#allocation3] sm:$0xff] %vm385_vm2, %v1535_v0  ;;  %391 = vst.msk [vmem:[#allocation3 + $0x8] sm:$0xff] %vm385_vm2, %v1535_v0  ;;  %v401_v5 = vld [vmem:[%s365_s10] sm:$0xf]  ;;  %v1339_v18 = vcombine.low %v399_v3, %v399_v3 }
  0x12   : > { %1395 = vmatprep.subr.bf16.mxu0 %v1535_v0  ;;  %392 = vst.msk [vmem:[#allocation3 + $0x10] sm:$0xff] %vm385_vm2, %v1535_v0  ;;  %393 = vst.msk [vmem:[#allocation3 + $0x18] sm:$0xff] %vm385_vm2, %v1535_v0  ;;  %v402_v6 = vunpack.c.l.bf16 %v401_v5  ;;  %489 = vrot.lane.b32.xlu1 %v1646_v17, %s1539_s11 }
  0x14   : > { %v403_v7 = vsub.f32 1.0, %v402_v6 }
  0x16   : > { %v1642_v8 = vmul.f32 -1e+09, %v403_v7  ;;  %546 = vrot.lane.b32.xlu1 %v1646_v17, %s1540_s12  ;;  %v1652_v19 = vld [vmem:[#allocation2] sm:$0xff]  ;;  %v1694_v1 = vld [vmem:[#allocation2 + $0x8] sm:$0xff] }
  0x17   : > { %v734_v5 = vld [vmem:[#allocation2 + $0x10] sm:$0xff] }
  0x18   : > { %1380 = vmatmul.mubr.msk.bf16.vlgmr.msra.gmra.mxu0 %vm394_vm0, %v399_v3 }
  0x19   : > { %1397 = vmatprep.mubr.msk.bf16.mxu0 %vm1536_vm1, %v1535_v0 }
  0x1a   : > { %544 = vrot.lane.b32.xlu1 %v1339_v18, %s1540_s12 }
  0x1e   : > { %683 = vrot.lane.b32.xlu1 %v1646_v17, %s1541_s13 }
  0x22   : > { %681 = vrot.lane.b32.xlu1 %v1339_v18, %s1541_s13  ;;  %s379_s13 = scalar_lea.vmem %s1795_s6, %s1334_s30 }
  0x26   : > { %820 = vrot.lane.b32.xlu1 %v1646_v17, %s1542_s14 }
  0x2a   : > { %818 = vrot.lane.b32.xlu1 %v1339_v18, %s1542_s14 }
  0x84   : > { %v490_v23 = vpop.permute.xlu1 %489 }
  0x85   : > { %v496_v24 = vsel %vm494_vm3, %v490_v23, 0 }
  0x86   : > { %1384 = vmatpush3.bf16.msra.mxu1 %v496_v24 }
  0x87   : > { %1389 = vmatprep.subr.bf16.mxu1 %v1535_v0 }
  0x88   : > { %v547_v28 = vpop.permute.xlu1 %546 }
  0x89   : > { %v552_v31 = vsel %vm394_vm0, %v547_v28, 0 }
  0x8c   : > { %v545_v29 = vpop.permute.xlu1 %544 }
  0x90   : > { %v684_v33 = vpop.permute.xlu1 %683 }
  0x91   : > { %v689_v35 = vsel %vm394_vm0, %v684_v33, 0 }
  0x94   : > { %v682_v34 = vpop.permute.xlu1 %681 }
  0x98   : > { %v821_v36 = vpop.permute.xlu1 %820 }
  0x99   : > { %v826_v37 = vsel %vm394_vm0, %v821_v36, 0 }
  0x9c   : > { %v819_v38 = vpop.permute.xlu1 %818 }
  0xd8   : > { %v446_v9 = vpop.f32.mrf.mxu0 }
  0xd9   : > { %v452_v10 = vmul.f32 0.35355338, %v446_v9  ;;  %v871_v9 = vld [vmem:[#allocation2 + $0x18] sm:$0xff] }
  0xda   : > { %v1381_v11 = vpop.f32.mrf.mxu0 }
  0xdb   : > { %v453_v12 = vadd.f32 %v452_v10, %v1642_v8 }
  0xdc   : > { %v449_v13 = vpop.f32.mrf.mxu0 }
  0xdd   : > { %v455_v14 = vsel %vm394_vm0, %v453_v12, -inf }
  0xde   : > { %456 = vmax.xlane.f32.xlu0 %v455_v14  ;;  %v1382_v15 = vpop.f32.mrf.mxu0 }
 0x167   : > { %v457_v20 = vpop.xlane.xlu0 %456 }
 0x168   : > { %v1655_v21 = vmax.f32 %v1652_v19, %v457_v20 }
 0x16a   : > { %v459_v22 = vsub.f32 %v1652_v19, %v1655_v21  ;;  %540 = vst.msk [vmem:[#allocation2] sm:$0xff] %vm385_vm2, %v1655_v21  ;;  %464 = vperm.xlu0 %1484, %v1655_v21  }
 0x1e5   : > { %v465_v25 = vpop.permute.xlu0 %464 }
 0x1e6   : > { %v467_v26 = vsub.f32 %v453_v12, %v465_v25 }
 0x1e8   : > { %v468_v27 = vmul.f32 1.442695, %v467_v26 }
 0x1ea   : > { %1487 = vpow2.f32 %v468_v27  ;;  %v460_v27 = vmul.f32 1.442695, %v459_v22 }
 0x1f7   : > { %v1664_v30 = vpop.eup %1487 }
 0x1f8   : > { %v485_v32 = vpack.c.bf16 %v1664_v30, %v1664_v30  ;;  %v472_v13 = vsel %vm394_vm0, %v1664_v30, 0.0 }
 0x1fa   : > { %1386 = vmatmul.mubr.msk.bf16.vlgmr.msra.gmra.mxu1 %vm394_vm0, %v485_v32 }
 0x1fb   : > { %1390 = vmatpush3.bf16.xpose.msra.mxu1 %v552_v31  ;;  %1391 = vmatprep.mubr.msk.bf16.mxu1 %vm1536_vm1, %v1535_v0 }
 0x1fc   : > { %1401 = vmatprep.subr.bf16.mxu1 %v1535_v0 }
 0x202   : > { %1392 = vmatmul.mubr.msk.bf16.vlgmr.msra.gmra.mxu1 %vm394_vm0, %v545_v29 }
 0x203   : > { %1402 = vmatpush3.bf16.xpose.msra.mxu1 %v689_v35  ;;  %1403 = vmatprep.mubr.msk.bf16.mxu1 %vm1536_vm1, %v1535_v0 }
 0x204   : > { %1413 = vmatprep.subr.bf16.mxu1 %v1535_v0 }
 0x20a   : > { %1404 = vmatmul.mubr.msk.bf16.vlgmr.msra.gmra.mxu1 %vm394_vm0, %v682_v34 }
 0x20b   : > { %1414 = vmatpush3.bf16.xpose.msra.mxu1 %v826_v37  ;;  %1415 = vmatprep.mubr.msk.bf16.mxu1 %vm1536_vm1, %v1535_v0 }
 0x20c   : > { %1425 = vmatprep.subr.bf16.mxu1 %v1535_v0 }
 0x212   : > { %1416 = vmatmul.mubr.msk.bf16.vlgmr.msra.gmra.mxu1 %vm394_vm0, %v819_v38 }
 0x213   : > { %1427 = vmatprep.mubr.msk.bf16.mxu1 %vm1536_vm1, %v1535_v0 }
 0x2ba   : > { %v1686_v39 = vpop.f32.mrf.mxu1 }
 0x2bc   : > { %v1387_v40 = vpop.f32.mrf.mxu1 }
 0x2be   : > { %v535_v41 = vpop.f32.mrf.mxu1 }
 0x2c0   : > { %v1388_v42 = vpop.f32.mrf.mxu1 }
 0x2c2   : > { %v588_v43 = vpop.f32.mrf.mxu1 }
 0x2c3   : > { %v594_v44 = vmul.f32 0.35355338, %v588_v43 }
 0x2c4   : > { %v1393_v45 = vpop.f32.mrf.mxu1 }
 0x2c5   : > { %v595_v46 = vadd.f32 %v594_v44, %v1642_v8 }
 0x2c6   : > { %v591_v47 = vpop.f32.mrf.mxu1 }
 0x2c7   : > { %v598_v48 = vsel %vm394_vm0, %v595_v46, -inf }
 0x2c8   : > { %599 = vmax.xlane.f32.xlu1 %v598_v48  ;;  %v1394_v49 = vpop.f32.mrf.mxu1 }
 0x2ca   : > { %v725_v50 = vpop.f32.mrf.mxu1 }
 0x2cb   : > { %v731_v51 = vmul.f32 0.35355338, %v725_v50 }
 0x2cc   : > { %v1405_v52 = vpop.f32.mrf.mxu1 }
 0x2cd   : > { %v732_v53 = vadd.f32 %v731_v51, %v1642_v8  ;;  %v977_v52 = vld [vmem:[%s1792_s3] sm:$0xf] }
 0x2ce   : > { %v728_v54 = vpop.f32.mrf.mxu1 }
 0x2cf   : > { %v735_v55 = vsel %vm394_vm0, %v732_v53, -inf }
 0x2d0   : > { %736 = vmax.xlane.f32.xlu0 %v735_v55  ;;  %v1406_v56 = vpop.f32.mrf.mxu1  ;;  %v614_v55 = vld [vmem:[#allocation3 + $0x8] sm:$0xff] }
 0x2d2   : > { %v862_v57 = vpop.f32.mrf.mxu1 }
 0x2d3   : > { %v868_v58 = vmul.f32 0.35355338, %v862_v57 }
 0x2d4   : > { %v1417_v59 = vpop.f32.mrf.mxu1 }
 0x2d5   : > { %v869_v60 = vadd.f32 %v868_v58, %v1642_v8  ;;  %v478_v59 = vld [vmem:[#allocation4] sm:$0xff] }
 0x2d6   : > { %v865_v61 = vpop.f32.mrf.mxu1 }
 0x2d7   : > { %v872_v62 = vsel %vm394_vm0, %v869_v60, -inf  ;;  %v751_v61 = vld [vmem:[#allocation3 + $0x10] sm:$0xff] }
 0x2d8   : > { %873 = vmax.xlane.f32.xlu1 %v872_v62  ;;  %v1418_v63 = vpop.f32.mrf.mxu1 }
 0x351   : > { %v600_v2 = vpop.xlane.xlu1 %599 }
 0x352   : > { %v1697_v3 = vmax.f32 %v1694_v1, %v600_v2 }
 0x354   : > { %v602_v4 = vsub.f32 %v1694_v1, %v1697_v3  ;;  %680 = vst.msk [vmem:[#allocation2 + $0x8] sm:$0xff] %vm385_vm2, %v1697_v3  ;;  %607 = vperm.xlu1 %1485, %v1697_v3  }
 0x356   : > { %v603_v44 = vmul.f32 1.442695, %v602_v4 }
 0x359   : > { %v737_v6 = vpop.xlane.xlu0 %736 }
 0x35a   : > { %v738_v7 = vmax.f32 %v734_v5, %v737_v6 }
 0x35c   : > { %v739_v8 = vsub.f32 %v734_v5, %v738_v7  ;;  %817 = vst.msk [vmem:[#allocation2 + $0x10] sm:$0xff] %vm385_vm2, %v738_v7  ;;  %744 = vperm.xlu0 %1484, %v738_v7   ;;  %v888_v5 = vld [vmem:[#allocation3 + $0x18] sm:$0xff] }
 0x35e   : > { %v740_v31 = vmul.f32 1.442695, %v739_v8 }
 0x361   : > { %v874_v10 = vpop.xlane.xlu1 %873 }
 0x362   : > { %v875_v11 = vmax.f32 %v871_v9, %v874_v10 }
 0x364   : > { %v876_v12 = vsub.f32 %v871_v9, %v875_v11  ;;  %954 = vst.msk [vmem:[#allocation2 + $0x18] sm:$0xff] %vm385_vm2, %v875_v11  ;;  %881 = vperm.xlu1 %1485, %v875_v11  }
 0x366   : > { %v877_v22 = vmul.f32 1.442695, %v876_v12 }
 0x368   : > { %630 = vrot.lane.b32.xlu1 %v1646_v17, %s1543_s15 }
 0x36c   : > { %767 = vrot.lane.b32.xlu1 %v1646_v17, %s1544_s16 }
 0x370   : > { %904 = vrot.lane.b32.xlu1 %v1646_v17, %s1545_s17 }
 0x37b   : > { %473 = vadd.xlane.f32.xlu0 %v472_v13 }
 0x3cf   : > { %v608_v14 = vpop.permute.xlu1 %607 }
 0x3d0   : > { %v610_v15 = vsub.f32 %v595_v46, %v608_v14  ;;  %v470_v46 = vld [vmem:[#allocation3] sm:$0xff] }
 0x3d2   : > { %v611_v16 = vmul.f32 1.442695, %v610_v15 }
 0x3d4   : > { %1489 = vpow2.f32 %v611_v16 }
 0x3d7   : > { %v745_v18 = vpop.permute.xlu0 %744 }
 0x3d8   : > { %v747_v20 = vsub.f32 %v732_v53, %v745_v18  ;;  %v982_v53 = vsel %vm494_vm3, %v977_v52, 0 }
 0x3d9   : > { %1426 = vmatpush3.bf16.msra.mxu1 %v982_v53 }
 0x3da   : > { %v748_v23 = vmul.f32 1.442695, %v747_v20  ;;  %1437 = vmatprep.subr.bf16.mxu1 %v1535_v0  ;;  %v1093_v20 = vld [vmem:[%s1792_s3 + $0x8] sm:$0xf] }
 0x3dc   : > { %1491 = vpow2.f32 %v748_v23 }
 0x3df   : > { %v882_v24 = vpop.permute.xlu1 %881 }
 0x3e0   : > { %v884_v25 = vsub.f32 %v869_v60, %v882_v24 }
 0x3e1   : > { %v1490_v26 = vpop.eup %1489 }
 0x3e2   : > { %v885_v17 = vmul.f32 1.442695, %v884_v25  ;;  %v616_v28 = vsel %vm394_vm0, %v1490_v26, 0.0  ;;  %v629_v32 = vpack.c.bf16 %v1490_v26, %v1490_v26  ;;  %v1098_v25 = vsel %vm494_vm3, %v1093_v20, 0  ;;  %v622_v26 = vld [vmem:[#allocation4 + $0x8] sm:$0xff] }
 0x3e3   : > { %617 = vadd.xlane.f32.xlu1 %v616_v28  ;;  %v631_v29 = vpop.permute.xlu1 %630 }
 0x3e4   : > { %1493 = vpow2.f32 %v885_v17  ;;  %v636_v30 = vsel %vm494_vm3, %v631_v29, 0 }
 0x3e5   : > { %1396 = vmatpush3.bf16.msra.mxu0 %v636_v30  ;;  %1495 = vpow2.f32 %v460_v27  ;;  %v759_v30 = vld [vmem:[#allocation4 + $0x10] sm:$0xff] }
 0x3e6   : > { %1407 = vmatprep.subr.bf16.mxu0 %v1535_v0  ;;  %1497 = vpow2.f32 %v740_v31 }
 0x3e7   : > { %v768_v33 = vpop.permute.xlu1 %767  ;;  %1499 = vpow2.f32 %v877_v22 }
 0x3e8   : > { %1398 = vmatmul.mubr.msk.bf16.vlgmr.msra.gmra.mxu0 %vm394_vm0, %v629_v32  ;;  %v773_v19 = vsel %vm494_vm3, %v768_v33, 0  ;;  %1501 = vpow2.f32 %v603_v44 }
 0x3e9   : > { %v1492_v21 = vpop.eup %1491  ;;  %1408 = vmatpush3.bf16.msra.mxu0 %v773_v19  ;;  %1409 = vmatprep.mubr.msk.bf16.mxu0 %vm1536_vm1, %v1535_v0 }
 0x3ea   : > { %v753_v34 = vsel %vm394_vm0, %v1492_v21, 0.0  ;;  %1419 = vmatprep.subr.bf16.mxu0 %v1535_v0  ;;  %v766_v36 = vpack.c.bf16 %v1492_v21, %v1492_v21 }
 0x3eb   : > { %754 = vadd.xlane.f32.xlu0 %v753_v34  ;;  %v905_v35 = vpop.permute.xlu1 %904 }
 0x3ec   : > { %v910_v37 = vsel %vm494_vm3, %v905_v35, 0  ;;  %v896_v35 = vld [vmem:[#allocation4 + $0x18] sm:$0xff] }
 0x3f0   : > { %1410 = vmatmul.mubr.msk.bf16.vlgmr.msra.gmra.mxu0 %vm394_vm0, %v766_v36 }
 0x3f1   : > { %v1494_v38 = vpop.eup %1493  ;;  %1420 = vmatpush3.bf16.msra.mxu0 %v910_v37  ;;  %1421 = vmatprep.mubr.msk.bf16.mxu0 %vm1536_vm1, %v1535_v0 }
 0x3f2   : > { %v890_v40 = vsel %vm394_vm0, %v1494_v38, 0.0  ;;  %1431 = vmatprep.subr.bf16.mxu0 %v1535_v0  ;;  %v1496_v41 = vpop.eup %1495  ;;  %v903_v42 = vpack.c.bf16 %v1494_v38, %v1494_v38 }
 0x3f3   : > { %891 = vadd.xlane.f32.xlu0 %v890_v40  ;;  %v1498_v43 = vpop.eup %1497  ;;  %v471_v47 = vmul.f32 %v1496_v41, %v470_v46 }
 0x3f4   : > { %481 = vperm.xlu1 %1485, %v1496_v41   ;;  %v1500_v45 = vpop.eup %1499  ;;  %v752_v1 = vmul.f32 %v1498_v43, %v751_v61 }
 0x3f5   : > { %v1502_v50 = vpop.eup %1501  ;;  %v889_v6 = vmul.f32 %v1500_v45, %v888_v5 }
 0x3f6   : > { %v615_v56 = vmul.f32 %v1502_v50, %v614_v55 }
 0x3f8   : > { %1422 = vmatmul.mubr.msk.bf16.vlgmr.msra.gmra.mxu0 %vm394_vm0, %v903_v42  ;;  %762 = vperm.xlu1 %1485, %v1498_v43  }
 0x3f9   : > { %1433 = vmatprep.mubr.msk.bf16.mxu0 %vm1536_vm1, %v1535_v0 }
 0x3fc   : > { %899 = vperm.xlu1 %1485, %v1500_v45  }
 0x404   : > { %v474_v48 = vpop.xlane.xlu0 %473 }
 0x405   : > { %v475_v49 = vadd.f32 %v474_v48, %v471_v47  ;;  %v1151_v48 = vld [vmem:[%s1792_s3 + $0xc] sm:$0xf] }
 0x407   : > { %477 = vst.msk [vmem:[#allocation3] sm:$0xff] %vm385_vm2, %v475_v49 }
 0x409   : > { %625 = vperm.xlu0 %1484, %v1502_v50  }
 0x40e   : > { %v968_v51 = vld [vmem:[#allocation3] sm:$0xff] }
 0x40f   : > { %1503 = vrcp.f32 %v968_v51  ;;  %v1156_v51 = vsel %vm494_vm3, %v1151_v48, 0 }
 0x41c   : > { %v1504_v54 = vpop.eup %1503 }
 0x41d   : > { %972 = vperm.xlu0 %1484, %v1504_v54  }
 0x46c   : > { %v618_v57 = vpop.xlane.xlu1 %617 }
 0x46d   : > { %v619_v58 = vadd.f32 %v618_v57, %v615_v56 }
 0x46f   : > { %620 = vst.msk [vmem:[#allocation3 + $0x8] sm:$0xff] %vm385_vm2, %v619_v58 }
 0x470   : > { %v482_v60 = vpop.permute.xlu1 %481 }
 0x471   : > { %v484_v62 = vmul.f32 %v482_v60, %v478_v59 }
 0x473   : > { %v538_v63 = vadd.f32 %v1686_v39, %v484_v62  ;;  %v1035_v39 = vld [vmem:[%s1792_s3 + $0x4] sm:$0xf] }
 0x474   : > { %v755_v2 = vpop.xlane.xlu0 %754  ;;  %v1040_v10 = vsel %vm494_vm3, %v1035_v39, 0  ;;  %v763_v31 = vpop.permute.xlu1 %762 }
 0x475   : > { %539 = vst.msk [vmem:[#allocation4] sm:$0xff] %vm394_vm0, %v538_v63  ;;  %v756_v3 = vadd.f32 %v755_v2, %v752_v1  ;;  %1432 = vmatpush3.bf16.msra.mxu0 %v1040_v10  ;;  %v765_v19 = vmul.f32 %v763_v31, %v759_v30  ;;  %v958_v2 = vld [vmem:[%s372_s9] sm:$0xff] }
 0x476   : > { %v1026_v4 = vld [vmem:[#allocation3 + $0x8] sm:$0xff]  ;;  %1443 = vmatprep.subr.bf16.mxu0 %v1535_v0 }
 0x477   : > { %757 = vst.msk [vmem:[#allocation3 + $0x10] sm:$0xff] %vm385_vm2, %v756_v3  ;;  %1505 = vrcp.f32 %v1026_v4  ;;  %v1346_v3 = vld [vmem:[%s1793_s4] ss:$0 sm:$0xff] }
 0x478   : > { %v900_v36 = vpop.permute.xlu1 %899 }
 0x479   : > { %v902_v40 = vmul.f32 %v900_v36, %v896_v35 }
 0x47c   : > { %v892_v7 = vpop.xlane.xlu0 %891  ;;  %v967_v16 = vld [vmem:[#allocation4] sm:$0xff] }
 0x47d   : > { %v893_v8 = vadd.f32 %v892_v7, %v889_v6  ;;  %v966_v6 = vadd.f32 %v1346_v3, %v958_v2 }
 0x47e   : > { %v1084_v9 = vld [vmem:[#allocation3 + $0x10] sm:$0xff] }
 0x47f   : > { %894 = vst.msk [vmem:[#allocation3 + $0x18] sm:$0xff] %vm385_vm2, %v893_v8  ;;  %1507 = vrcp.f32 %v1084_v9 }
 0x484   : > { %v1506_v11 = vpop.eup %1505  ;;  %v626_v15 = vpop.permute.xlu0 %625 }
 0x485   : > { %1030 = vperm.xlu1 %1485, %v1506_v11   ;;  %v628_v27 = vmul.f32 %v626_v15, %v622_v26 }
 0x486   : > { %v1142_v12 = vld [vmem:[#allocation3 + $0x18] sm:$0xff] }
 0x487   : > { %1509 = vrcp.f32 %v1142_v12 }
 0x48c   : > { %v1508_v13 = vpop.eup %1507 }
 0x48d   : > { %1088 = vperm.xlu0 %1484, %v1508_v13  }
 0x494   : > { %v1510_v14 = vpop.eup %1509 }
 0x495   : > { %1146 = vperm.xlu1 %1485, %v1510_v14  }
 0x498   : > { %v973_v18 = vpop.permute.xlu0 %972 }
 0x499   : > { %v975_v23 = vmul.f32 %v973_v18, %v967_v16 }
 0x49b   : > { %v976_v24 = vpack.c.bf16 %v975_v23, %v975_v23 }
 0x49d   : > { %1428 = vmatmul.mubr.msk.bf16.vlgmr.msra.gmra.mxu1 %vm394_vm0, %v976_v24 }
 0x49e   : > { %1438 = vmatpush3.bf16.msra.mxu1 %v1098_v25  ;;  %1439 = vmatprep.mubr.msk.bf16.mxu1 %vm1536_vm1, %v1535_v0 }
 0x4a8   : > { %v672_v17 = vpop.f32.mrf.mxu0 }
 0x4a9   : > { %v678_v28 = vadd.f32 %v672_v17, %v628_v27 }
 0x4aa   : > { %v1399_v29 = vpop.f32.mrf.mxu0 }
 0x4ab   : > { %679 = vst.msk [vmem:[#allocation4 + $0x8] sm:$0xff] %vm394_vm0, %v678_v28 }
 0x4ac   : > { %v675_v32 = vpop.f32.mrf.mxu0 }
 0x4ae   : > { %v1400_v33 = vpop.f32.mrf.mxu0 }
 0x4b0   : > { %v809_v21 = vpop.f32.mrf.mxu0 }
 0x4b1   : > { %v815_v22 = vadd.f32 %v809_v21, %v765_v19 }
 0x4b2   : > { %v1411_v34 = vpop.f32.mrf.mxu0  ;;  %v1025_v47 = vld [vmem:[#allocation4 + $0x8] sm:$0xff] }
 0x4b3   : > { %816 = vst.msk [vmem:[#allocation4 + $0x10] sm:$0xff] %vm394_vm0, %v815_v22 }
 0x4b4   : > { %v812_v37 = vpop.f32.mrf.mxu0 }
 0x4b6   : > { %v1412_v38 = vpop.f32.mrf.mxu0 }
 0x4b8   : > { %v946_v41 = vpop.f32.mrf.mxu0 }
 0x4b9   : > { %v952_v42 = vadd.f32 %v946_v41, %v902_v40 }
 0x4ba   : > { %v1423_v43 = vpop.f32.mrf.mxu0  ;;  %v1083_v53 = vld [vmem:[#allocation4 + $0x10] sm:$0xff] }
 0x4bb   : > { %953 = vst.msk [vmem:[#allocation4 + $0x18] sm:$0xff] %vm394_vm0, %v952_v42 }
 0x4bc   : > { %v949_v44 = vpop.f32.mrf.mxu0 }
 0x4be   : > { %v1424_v45 = vpop.f32.mrf.mxu0 }
 0x4c2   : > { %v1141_v57 = vld [vmem:[#allocation4 + $0x18] sm:$0xff] }
 0x500   : > { %v1031_v46 = vpop.permute.xlu1 %1030 }
 0x501   : > { %v1033_v49 = vmul.f32 %v1031_v46, %v1025_v47 }
 0x503   : > { %v1034_v50 = vpack.c.bf16 %v1033_v49, %v1033_v49 }
 0x505   : > { %1434 = vmatmul.mubr.msk.bf16.vlgmr.msra.gmra.mxu0 %vm394_vm0, %v1034_v50 }
 0x506   : > { %1444 = vmatpush3.bf16.msra.mxu0 %v1156_v51  ;;  %1445 = vmatprep.mubr.msk.bf16.mxu0 %vm1536_vm1, %v1535_v0 }
 0x508   : > { %v1089_v52 = vpop.permute.xlu0 %1088 }
 0x509   : > { %v1091_v54 = vmul.f32 %v1089_v52, %v1083_v53 }
 0x50b   : > { %v1092_v55 = vpack.c.bf16 %v1091_v54, %v1091_v54 }
 0x50d   : > { %1440 = vmatmul.mubr.msk.bf16.vlgmr.msra.gmra.mxu1 %vm394_vm0, %v1092_v55 }
 0x510   : > { %v1147_v56 = vpop.permute.xlu1 %1146 }
 0x511   : > { %v1149_v58 = vmul.f32 %v1147_v56, %v1141_v57 }
 0x513   : > { %v1150_v59 = vpack.c.bf16 %v1149_v58, %v1149_v58 }
 0x515   : > { %1446 = vmatmul.mubr.msk.bf16.vlgmr.msra.gmra.mxu0 %vm394_vm0, %v1150_v59 }
 0x55d   : > { %v1018_v60 = vpop.f32.mrf.mxu1 }
 0x55e   : > { %v1024_v9 = vadd.f32 %v1018_v60, %v966_v6 }
 0x55f   : > { %v1429_v61 = vpop.f32.mrf.mxu1 }
 0x561   : > { %v1021_v62 = vpop.f32.mrf.mxu1 }
 0x563   : > { %v1430_v63 = vpop.f32.mrf.mxu1 }
 0x5c5   : > { %v1076_v1 = vpop.f32.mrf.mxu0 }
 0x5c6   : > { %v1082_v10 = vadd.f32 %v1076_v1, %v1024_v9 }
 0x5c7   : > { %v1435_v0 = vpop.f32.mrf.mxu0 }
 0x5c9   : > { %v1079_v4 = vpop.f32.mrf.mxu0 }
 0x5cb   : > { %v1436_v5 = vpop.f32.mrf.mxu0 }
 0x5cd   : > { %v1134_v7 = vpop.f32.mrf.mxu1 }
 0x5ce   : > { %v1140_v12 = vadd.f32 %v1134_v7, %v1082_v10 }
 0x5cf   : > { %v1441_v8 = vpop.f32.mrf.mxu1 }
 0x5d1   : > { %v1137_v39 = vpop.f32.mrf.mxu1 }
 0x5d3   : > { %v1442_v11 = vpop.f32.mrf.mxu1 }
 0x5d5   : > { %v1192_v13 = vpop.f32.mrf.mxu0 }
 0x5d6   : > { %v1198_v14 = vadd.f32 %v1192_v13, %v1140_v12 }
 0x5d7   : > { %v1447_v15 = vpop.f32.mrf.mxu0 }
 0x5d8   : > { %1200 = vst.msk [vmem:[%s379_s13] sm:$0xff] %vm1199_vm4, %v1198_v14 }
 0x5d9   : > { %v1195_v16 = vpop.f32.mrf.mxu0 }
 0x5db   : > { %v1448_v18 = vpop.f32.mrf.mxu0 }
 0x5dc PF: > { %s16_s23 = sadd.s32 1, %s1533_s23   ;;  %s1796_s21 = smov %s1529_s22 }
 0x5dd   : > { %p13_p5 = scmp.ge.s32.totalorder %s16_s23, 4   ;;  %s1797_s22 = smov %s1799_s24 }
 0x5df   :  { %15 = sbr.rel (!%p13_p5) target bundleno = 2 (0x2), region = 100 }

// kernel: decoder_layer_forward.11
= control target key start
LH: loop header
LB: loop body
LE: loop exit
PB: predicated region body
PF: predicated region fallthrough
CT: control target
= control target key end

     0   :  { %12 = vsyncpa [#allocation3], 0  ;;  %s886_s0 = inlined_call_operand.vmem [shape: f32[16,32], index: 0, kind: input, shape index: {}]   ;;  %s887_s1 = inlined_call_operand.vmem [shape: f32[1,32], index: 1, kind: input, shape index: {}]   ;;  %s888_s2 = inlined_call_operand.vmem [shape: f32[1,32], index: 2, kind: input, shape index: {}]   ;;  %s889_s3 = inlined_call_operand.vmem [shape: bf16[32,64], index: 3, kind: input, shape index: {}]   ;;  %s890_s4 = inlined_call_operand.vmem [shape: f32[1,64], index: 4, kind: input, shape index: {}]   ;;  %s891_s5 = inlined_call_operand.vmem [shape: bf16[64,32], index: 5, kind: input, shape index: {}]   ;;  %s892_s6 = inlined_call_operand.vmem [shape: f32[1,32], index: 6, kind: input, shape index: {}]   ;;  %s893_s7 = inlined_call_operand.hbm [shape: f32[16,32], index: 7, kind: output, shape index: {}]  }
   0x1   :  { %14 = vsyncpa [#allocation3 + $0x1], 0  ;;  %s748_s24 = smov 0   ;;  %s750_s25 = smov 0  }
   0x2   :  { %s752_s26 = smov 0   ;;  %s754_s27 = smov 0  }
   0x3 LB: > { %s769_s28 = sadd.s32 4294967295, %s703_s27   ;;  %s542_s29 = sadd.s32 4294967294, %s703_s27   ;;  %s703_s27 = sphi %s754_s27, %s899_s27   ;;  %s699_s26 = sphi %s752_s26, %s898_s26   ;;  %s695_s25 = sphi %s750_s25, %s897_s25   ;;  %s691_s24 = sphi %s748_s24, %s896_s24  }
   0x4   : > { %s773_s30 = sadd.s32 1, %s703_s27   ;;  %s179_s8 = sadd.s32 1, %s699_s26 }
   0x5   : > { %s176_s9 = ssub.s32 %s703_s27, %s773_s30  ;;  %p189_p0 = scmp.ne.s32.totalorder %s699_s26, %s695_s25 }
   0x6   : > { %p177_p1 = scmp.eq.s32.totalorder %s176_s9, 0  ;;  %p190_p2 = scmp.eq.s32.totalorder %s769_s28, 1 }
   0x7   : > { %p195_p3 = scmp.ne.s32.totalorder %s695_s25, %s691_s24  ;;  %p196_p4 = scmp.eq.s32.totalorder %s542_s29, 1 }
   0x8   : > { %s784_s10 = scalar_select %p177_p1, %s699_s26, %s179_s8  }
   0x9   : > { %p786_p5 = por %p190_p2, %p189_p0  ;;  %p790_p6 = por %p196_p4, %p195_p3 }
   0xa   : > { %p545_p7 = scmp.ge.s32.totalorder %s703_s27, 1  ;;  %p239_p8 = scmp.lt.s32.totalorder %s703_s27, 3 }
   0xc   : > { %p240_p9 = pnand %p545_p7, %p239_p8 }
   0xd   : > { %p270_p10 = scmp.lt.s32.totalorder (!%p240_p9), %s769_s28, 1  ;;  %s267_s22 = sand.u32 (!%p240_p9), 1, %s695_s25  }
   0xe   : > { %243 = sbr.rel (%p240_p9) target bundleno = 760 (0x2f8), region = 48  ;;  %s546_s23 = sshll.u32 (!%p240_p9), %s267_s22, 3 }
   0xf   : > { %s561_s9 = sshll.u32 (!%p240_p9), %s769_s28, 7  ;;  %s707_s19 = smov (!%p240_p9), [#allocation2]  }
  0x10   : > { %s647_s20 = sshll.u32 (!%p240_p9), %s707_s19, 4  ;;  %s648_s20 = int_to_ptr.vmem [resolvable:$false] %s647_s20 }
  0x11   : > { %s649_s21 = scalar_lea.vmem (!%p240_p9), %s648_s20, 256 }
  0x13   : > { %s271_s13 = scalar_select %p270_p10, %s769_s28, 1  ;;  %vm278_vm0 = vcmask 261120   ;;  %v633_v7 = vld [vmem:[%s889_s3 + $0x8] sm:$0xff]   ;;  %v705_v8 = vmov 0.0   ;;  %vm706_vm1 = vmmov 0   ;;  %v634_v9 = vld [vmem:[%s889_s3] sm:$0xff]  }
  0x14   : > { %572 = vmatprep.subr.bf16.mxu0 %v705_v8  ;;  %576 = vmatprep.mubr.msk.bf16.mxu0 %vm706_vm1, %v705_v8  ;;  %v635_v10 = vld [vmem:[%s891_s5 + $0x18] sm:$0xff]   ;;  %v636_v11 = vld [vmem:[%s891_s5 + $0x10] sm:$0xff]   ;;  %v548_v20 = vld [vmem:[%s887_s1] ss:$0 sm:$0xff]  ;;  %vm423_vm4 = vcmask 523264   ;;  %s470_s28 = scalar_lea.sflag [#allocation3], %s267_s22 }
  0x15   : > { %s547_s14 = sshll.u32 %s271_s13, 3  ;;  %573 = vmatpush3.bf16.msra.mxu0 %v633_v7  ;;  %580 = vmatprep.subr.bf16.mxu1 %v705_v8  ;;  %v549_v23 = vld [vmem:[%s888_s2] ss:$0 sm:$0xff]  ;;  %v637_v27 = vld [vmem:[%s891_s5 + $0x8] sm:$0xff]   ;;  %s269_s13 = scalar_lea.vmem [#allocation2], %s546_s23 }
  0x16   : > { %s273_s17 = scalar_lea.vmem %s886_s0, %s547_s14  ;;  %574 = vmatprep.subr.bf16.mxu0 %v705_v8  ;;  %588 = vmatprep.mubr.msk.bf16.mxu1 %vm706_vm1, %v705_v8  ;;  %v638_v28 = vld [vmem:[%s891_s5] sm:$0xff]   ;;  %s483_s14 = sshll.u32 %s269_s13, 4  ;;  %s846_s14 = int_to_ptr.vmem [resolvable:$true] %s483_s14 }
  0x17   : > { %v801_v0 = vld [vmem:[%s273_s17] sm:$0xff]  ;;  %581 = vmatpush3.bf16.msra.mxu1 %v635_v10  ;;  %s844_s17 = scalar_lea.hbm %s893_s7, %s561_s9  ;;  %s643_s18 = scalar_lea.vmem %s846_s14, 128 }
  0x18   : > { %v279_v1 = vsel %vm278_vm0, %v801_v0, 0.0  ;;  %582 = vmatprep.subr.bf16.mxu1 %v705_v8  ;;  %v550_v29 = vld [vmem:[%s890_s4] ss:$0 sm:$0xff]  ;;  %p644_p11 = scmp.ne.s32.totalorder %s846_s14, %s643_s18  ;;  %p650_p0 = scmp.lt.s32.totalorder %s846_s14, %s648_s20 }
  0x19   : > { %280 = vadd.xlane.f32.xlu0 %v279_v1  ;;  %575 = vmatpush3.bf16.msra.mxu0 %v634_v9  ;;  %v554_v37 = vld [vmem:[%s892_s6] ss:$0 sm:$0xff]  ;;  %p651_p1 = scmp.lt.s32.totalorder %s649_s21, %s643_s18 }
  0x1a   : > { %p645_p12 = pnand %p644_p11, %p786_p5 }
  0x1b   : > { %583 = vmatpush3.bf16.msra.mxu1 %v636_v11  ;;  %p652_p2 = por %p651_p1, %p650_p0 }
  0x1c   : > { %584 = vmatprep.subr.bf16.mxu1 %v705_v8  ;;  %p646_p13 = pneg %p645_p12 }
  0x1e   : > { %p653_p3 = pnand %p652_p2, %p646_p13 }
  0x1f   : > { %585 = vmatpush3.bf16.msra.mxu1 %v637_v27 }
  0x20   : > { %586 = vmatprep.subr.bf16.mxu1 %v705_v8 }
  0x23   : > { %587 = vmatpush3.bf16.msra.mxu1 %v638_v28 }
  0xa2   : > { %v281_v2 = vpop.xlane.xlu0 %280 }
  0xa3   : > { %v283_v3 = vmul.f32 0.03125, %v281_v2 }
  0xa5   : > { %v284_v4 = vsub.f32 %v801_v0, %v283_v3 }
  0xa7   : > { %v285_v5 = vmul.f32 %v284_v4, %v284_v4  ;;  %v306_v21 = vmul.f32 %v548_v20, %v284_v4 }
  0xa9   : > { %v286_v6 = vsel %vm278_vm0, %v285_v5, 0.0 }
  0xaa   : > { %287 = vadd.xlane.f32.xlu0 %v286_v6 }
 0x133   : > { %v288_v12 = vpop.xlane.xlu0 %287 }
 0x134   : > { %v290_v13 = vmul.f32 0.032258064, %v288_v12 }
 0x136   : > { %639 = vrsqrt.f32 %v290_v13  ;;  %vm293_vm2 = vcmp.eq.f32.partialorder %v290_v13, inf  ;;  %v296_v16 = vand.u32 2147483648, %v290_v13  ;;  %vm295_vm3 = vcmp.eq.f32.partialorder %v290_v13, 0.0 }
 0x143   : > { %v640_v14 = vpop.eup %639 }
 0x144   : > { %v292_v15 = vmul.f32 %v640_v14, %v290_v13 }
 0x146   : > { %v294_v17 = vsel %vm293_vm2, %v290_v13, %v292_v15 }
 0x147   : > { %v297_v18 = vsel %vm295_vm3, %v296_v16, %v294_v17 }
 0x148   : > { %v298_v19 = vadd.f32 1e-06, %v297_v18 }
 0x14a   : > { %641 = vrcp.f32 %v298_v19 }
 0x157   : > { %v642_v22 = vpop.eup %641 }
 0x158   : > { %v307_v24 = vmul.f32 %v642_v22, %v306_v21 }
 0x15a   : > { %v314_v25 = vadd.f32 %v549_v23, %v307_v24 }
 0x15c   : > { %v315_v26 = vpack.c.bf16 %v314_v25, %v314_v25 }
 0x15e   : > { %577 = vmatmul.mubr.msk.bf16.vlgmr.msra.gmra.mxu0 %vm278_vm0, %v315_v26 }
 0x21e   : > { %v376_v30 = vpop.f32.mrf.mxu0 }
 0x21f   : > { %v377_v31 = vadd.f32 %v550_v29, %v376_v30 }
 0x220   : > { %v578_v32 = vpop.f32.mrf.mxu0 }
 0x221   : > { %v382_v33 = vmax.f32 %v377_v31, 0.0 }
 0x222   : > { %v379_v34 = vpop.f32.mrf.mxu0 }
 0x223   : > { %v383_v35 = vpack.c.bf16 %v382_v33, %v382_v33 }
 0x224   : > { %v579_v36 = vpop.f32.mrf.mxu0 }
 0x225   : > { %589 = vmatmul.mubr.msk.bf16.vlgmr.msra.gmra.mxu1 %vm423_vm4, %v383_v35 }
 0x2e5   : > { %v461_v38 = vpop.f32.mrf.mxu1 }
 0x2e6   : > { %v462_v39 = vadd.f32 %v554_v37, %v461_v38 }
 0x2e7   : > { %v590_v40 = vpop.f32.mrf.mxu1 }
 0x2e8   : > { %v467_v41 = vadd.f32 %v462_v39, %v801_v0 }
 0x2e9   : > { %v464_v42 = vpop.f32.mrf.mxu1 }
 0x2ea   : > { %468 = vst.msk [vmem:[%s269_s13] sm:$0xff] %vm278_vm0, %v467_v41 }
 0x2eb   : > { %v591_v43 = vpop.f32.mrf.mxu1 }
 0x2ec   : > { %656 = shalt.err (!%p653_p3)
}
 0x2ed   : > { %s657_s23 = scalar_lea.hbm %s844_s17, 128  ;;  %s661_s8 = scalar_lea.hbm %s893_s7, 256 }
 0x2ee   : > { %p658_p4 = scmp.ne.s32.totalorder %s844_s17, %s657_s23  ;;  %p662_p9 = scmp.lt.s32.totalorder %s844_s17, %s893_s7 }
 0x2ef   : > { %p663_p10 = scmp.lt.s32.totalorder %s661_s8, %s657_s23 }
 0x2f0   : > { %p659_p7 = pnand %p658_p4, %p786_p5 }
 0x2f1   : > { %p664_p11 = por %p663_p10, %p662_p9 }
 0x2f2   : > { %p660_p8 = pneg %p659_p7 }
 0x2f4   : > { %p665_p12 = pnand %p664_p11, %p660_p8 }
 0x2f6   : > { %668 = shalt.err (!%p665_p12)
}
 0x2f7   : > { %592 = dma.vmem_to_hbm [thread:$0]  (%p786_p5), %s846_s14, 128, %s844_s17, %s470_s28  }
 0x2f8 PF: > { %p598_p13 = scmp.ge.s32.totalorder %s703_s27, 2  ;;  %s495_s15 = sand.u32 1, %s691_s24  }
 0x2f9   : > { %s496_s16 = scalar_lea.sflag [#allocation3], %s495_s15 }
 0x2fa   : > { %p595_p0 = pnand %p598_p13, %p790_p6 }
 0x2fc   : > { %p596_p1 = pneg %p595_p0 }
 0x2fe   : > { %686 = dma.done.wait (%p596_p1), %s496_s16, 128  }
 0x2ff   : > { %688 = vsyncadd (%p596_p1), %s496_s16, 4294967168  ;;  %p17_p2 = scmp.ge.s32.totalorder %s773_s30, 4   ;;  %s896_s24 = smov %s695_s25 }
 0x300   : > { %s897_s25 = smov %s699_s26  ;;  %s898_s26 = smov %s784_s10 }
 0x301   : > { %s899_s27 = smov %s773_s30  ;;  %19 = sbr.rel (!%p17_p2) target bundleno = 3 (0x3), region = 83 }
 0x306   :  { %501 = vsyncpa [#allocation3], 1 }
 0x307   :  { %503 = vsyncpa [#allocation3 + $0x1], 1 }

// kernel: decoder_layer_forward.10
= control target key start
LH: loop header
LB: loop body
LE: loop exit
PB: predicated region body
PF: predicated region fallthrough
CT: control target
= control target key end

     0   :  { %s1564_s21 = smov 0   ;;  %s1566_s22 = smov 0   ;;  %s1773_s0 = inlined_call_operand.vmem [shape: bf16[2,8,32], index: 0, kind: input, shape index: {}]   ;;  %s1774_s1 = inlined_call_operand.vmem [shape: bf16[2,8,64], index: 1, kind: input, shape index: {}]   ;;  %s1775_s2 = inlined_call_operand.vmem [shape: bf16[2,1,8], index: 2, kind: input, shape index: {}]   ;;  %s1776_s3 = inlined_call_operand.vmem [shape: bf16[32,32], index: 3, kind: input, shape index: {}]   ;;  %s1777_s4 = inlined_call_operand.vmem [shape: f32[1,32], index: 4, kind: input, shape index: {}]   ;;  %s1778_s5 = inlined_call_operand.vmem [shape: f32[2,8,32], index: 5, kind: input, shape index: {}]   ;;  %s1779_s6 = inlined_call_operand.vmem [shape: f32[2,8,32], index: 6, kind: output, shape index: {}]  }
   0x1   :  { %s1568_s23 = smov 0  }
   0x2 LB: > { %s35_s24 = sadd.s32 1, %s1512_s22  ;;  %p1314_p0 = scmp.ge.s32.totalorder %s1516_s23, 1  ;;  %s1516_s23 = sphi %s1568_s23, %s16_s23   ;;  %s1512_s22 = sphi %s1566_s22, %s1781_s22   ;;  %s1508_s21 = sphi %s1564_s21, %s1780_s21  }
   0x3   : > { %p37_p1 = scmp.ge.s32.totalorder %s35_s24, 2  ;;  %p278_p2 = scmp.lt.s32.totalorder %s1516_s23, 3 }
   0x5   : > { %s1783_s24 = smov (%p37_p1, %s35_s24), 0  ;;  %p279_p3 = pnand %p1314_p0, %p278_p2 }
   0x6   : > { %p332_p4 = scmp.lt.s32.totalorder (!%p279_p3), %s1508_s21, 1  ;;  %s1522_s11 = smov (!%p279_p3), 96  }
   0x7   : > { %282 = sbr.rel (%p279_p3) target bundleno = 1500 (0x5dc), region = 44  ;;  %s1523_s12 = smov (!%p279_p3), 120  }
   0x8   : > { %s1524_s13 = smov (!%p279_p3), 112   ;;  %s1525_s14 = smov (!%p279_p3), 104  }
   0x9   : > { %s1526_s15 = smov (!%p279_p3), 88   ;;  %s1527_s16 = smov (!%p279_p3), 80  }
   0xa   : > { %s1528_s17 = smov (!%p279_p3), 72  }
   0xc   : > { %vm380_vm0 = vcmask 64512   ;;  %v1518_v0 = vmov 0.0   ;;  %vm1519_vm1 = vmmov 0   ;;  %s1785_s21 = smov (!%p332_p4, %s1508_s21), 1  ;;  %vm371_vm2 = vcmask 7168  }
   0xd   : > { %1360 = vmatprep.subr.bf16.mxu0 %v1518_v0  ;;  %381 = vst.msk [vmem:[#allocation4] sm:$0xff] %vm380_vm0, %v1518_v0  ;;  %382 = vst.msk [vmem:[#allocation4 + $0x8] sm:$0xff] %vm380_vm0, %v1518_v0  ;;  %1362 = vmatprep.mubr.msk.bf16.mxu0 %vm1519_vm1, %v1518_v0  ;;  %s1315_s25 = sshll.u32 %s1785_s21, 2  ;;  %v1520_v4 = vmov -inf   ;;  %s351_s10 = scalar_lea.vmem %s1775_s2, %s1785_s21  ;;  %v439_v7 = vlaneseq  ;;  %v1521_v20 = vmov 0   ;;  %vm484_vm3 = vcmask 1043456  }
   0xe   : > { %383 = vst.msk [vmem:[#allocation4 + $0x10] sm:$0xff] %vm380_vm0, %v1518_v0  ;;  %384 = vst.msk [vmem:[#allocation4 + $0x18] sm:$0xff] %vm380_vm0, %v1518_v0  ;;  %1366 = vmatprep.subr.bf16.mxu1 %v1518_v0  ;;  %1368 = vmatprep.mubr.msk.bf16.mxu1 %vm1519_vm1, %v1518_v0  ;;  %s345_s28 = scalar_lea.vmem %s1774_s1, %s1315_s25  ;;  %s338_s7 = scalar_lea.vmem %s1773_s0, %s1315_s25  ;;  %v387_v5 = vld [vmem:[%s351_s10] sm:$0x1]  ;;  %vm1189_vm4 = vcmask 261120  }
   0xf   : > { %v386_v1 = vld [vmem:[%s345_s28] sm:$0xf]  ;;  %372 = vst.msk [vmem:[#allocation2] sm:$0xff] %vm371_vm2, %v1520_v4  ;;  %373 = vst.msk [vmem:[#allocation2 + $0x8] sm:$0xff] %vm371_vm2, %v1520_v4  ;;  %v388_v6 = vunpack.c.l.bf16 %v387_v5  ;;  %v440_v9 = vshrl.u32 %v439_v7, 7  ;;  %1467 = vset.pattern.permute.xlu0 %v1521_v20  ;;  %1468 = vset.pattern.permute.xlu1 %v1521_v20  ;;  %s1317_s30 = sshll.u32 %s1785_s21, 3 }
  0x10   : > { %v396_v2 = vsel %vm380_vm0, %v386_v1, 0  ;;  %v385_v3 = vld [vmem:[%s338_s7] sm:$0xf]  ;;  %374 = vst.msk [vmem:[#allocation2 + $0x10] sm:$0xff] %vm371_vm2, %v1520_v4  ;;  %375 = vst.msk [vmem:[#allocation2 + $0x18] sm:$0xff] %vm371_vm2, %v1520_v4  ;;  %v1630_v21 = vcombine.low %v386_v1, %v386_v1  ;;  %s358_s9 = scalar_lea.vmem %s1778_s5, %s1317_s30 }
  0x11   : > { %1361 = vmatpush3.bf16.xpose.msra.mxu0 %v396_v2  ;;  %376 = vst.msk [vmem:[#allocation3] sm:$0xff] %vm371_vm2, %v1518_v0  ;;  %377 = vst.msk [vmem:[#allocation3 + $0x8] sm:$0xff] %vm371_vm2, %v1518_v0  ;;  %v389_v8 = vsub.f32 1.0, %v388_v6  ;;  %v441_v11 = vsub.s32 0, %v440_v9  ;;  %v1322_v22 = vcombine.low %v385_v3, %v385_v3 }
  0x12   : > { %1378 = vmatprep.subr.bf16.mxu0 %v1518_v0  ;;  %378 = vst.msk [vmem:[#allocation3 + $0x10] sm:$0xff] %vm371_vm2, %v1518_v0  ;;  %379 = vst.msk [vmem:[#allocation3 + $0x18] sm:$0xff] %vm371_vm2, %v1518_v0  ;;  %479 = vrot.lane.b32.xlu1 %v1630_v21, %s1522_s11 }
  0x13   : > { %v390_v10 = vmul.f32 -1e+09, %v389_v8 }
  0x15   : > { %v1626_v12 = vrot.slane %v390_v10, %v441_v11 }
  0x16   : > { %536 = vrot.lane.b32.xlu1 %v1630_v21, %s1523_s12  ;;  %v1636_v23 = vld [vmem:[#allocation2] sm:$0xff]  ;;  %v1678_v5 = vld [vmem:[#allocation2 + $0x8] sm:$0xff] }
  0x17   : > { %v724_v9 = vld [vmem:[#allocation2 + $0x10] sm:$0xff] }
  0x18   : > { %1363 = vmatmul.mubr.msk.bf16.vlgmr.msra.gmra.mxu0 %vm380_vm0, %v385_v3 }
  0x19   : > { %1380 = vmatprep.mubr.msk.bf16.mxu0 %vm1519_vm1, %v1518_v0 }
  0x1a   : > { %534 = vrot.lane.b32.xlu1 %v1322_v22, %s1523_s12 }
  0x1e   : > { %673 = vrot.lane.b32.xlu1 %v1630_v21, %s1524_s13 }
  0x22   : > { %671 = vrot.lane.b32.xlu1 %v1322_v22, %s1524_s13  ;;  %s365_s13 = scalar_lea.vmem %s1779_s6, %s1317_s30 }
  0x26   : > { %810 = vrot.lane.b32.xlu1 %v1630_v21, %s1525_s14 }
  0x2a   : > { %808 = vrot.lane.b32.xlu1 %v1322_v22, %s1525_s14 }
  0x84   : > { %v480_v27 = vpop.permute.xlu1 %479 }
  0x85   : > { %v486_v28 = vsel %vm484_vm3, %v480_v27, 0 }
  0x86   : > { %1367 = vmatpush3.bf16.msra.mxu1 %v486_v28 }
  0x87   : > { %1372 = vmatprep.subr.bf16.mxu1 %v1518_v0 }
  0x88   : > { %v537_v32 = vpop.permute.xlu1 %536 }
  0x89   : > { %v542_v35 = vsel %vm380_vm0, %v537_v32, 0 }
  0x8c   : > { %v535_v33 = vpop.permute.xlu1 %534 }
  0x90   : > { %v674_v37 = vpop.permute.xlu1 %673 }
  0x91   : > { %v679_v39 = vsel %vm380_vm0, %v674_v37, 0 }
  0x94   : > { %v672_v38 = vpop.permute.xlu1 %671 }
  0x98   : > { %v811_v40 = vpop.permute.xlu1 %810 }
  0x99   : > { %v816_v41 = vsel %vm380_vm0, %v811_v40, 0 }
  0x9c   : > { %v809_v42 = vpop.permute.xlu1 %808 }
  0xd8   : > { %v432_v13 = vpop.f32.mrf.mxu0 }
  0xd9   : > { %v438_v14 = vmul.f32 0.35355338, %v432_v13  ;;  %v861_v13 = vld [vmem:[#allocation2 + $0x18] sm:$0xff] }
  0xda   : > { %v1364_v15 = vpop.f32.mrf.mxu0 }
  0xdb   : > { %v443_v16 = vadd.f32 %v1626_v12, %v438_v14 }
  0xdc   : > { %v435_v17 = vpop.f32.mrf.mxu0 }
  0xdd   : > { %v445_v18 = vsel %vm380_vm0, %v443_v16, -inf }
  0xde   : > { %446 = vmax.xlane.f32.xlu0 %v445_v18  ;;  %v1365_v19 = vpop.f32.mrf.mxu0 }
 0x167   : > { %v447_v24 = vpop.xlane.xlu0 %446 }
 0x168   : > { %v1639_v25 = vmax.f32 %v1636_v23, %v447_v24 }
 0x16a   : > { %v449_v26 = vsub.f32 %v1636_v23, %v1639_v25  ;;  %530 = vst.msk [vmem:[#allocation2] sm:$0xff] %vm371_vm2, %v1639_v25  ;;  %454 = vperm.xlu0 %1467, %v1639_v25  }
 0x1e5   : > { %v455_v29 = vpop.permute.xlu0 %454 }
 0x1e6   : > { %v457_v30 = vsub.f32 %v443_v16, %v455_v29 }
 0x1e8   : > { %v458_v31 = vmul.f32 1.442695, %v457_v30 }
 0x1ea   : > { %1470 = vpow2.f32 %v458_v31  ;;  %v450_v31 = vmul.f32 1.442695, %v449_v26 }
 0x1f7   : > { %v1648_v34 = vpop.eup %1470 }
 0x1f8   : > { %v475_v36 = vpack.c.bf16 %v1648_v34, %v1648_v34  ;;  %v462_v17 = vsel %vm380_vm0, %v1648_v34, 0.0 }
 0x1fa   : > { %1369 = vmatmul.mubr.msk.bf16.vlgmr.msra.gmra.mxu1 %vm380_vm0, %v475_v36 }
 0x1fb   : > { %1373 = vmatpush3.bf16.xpose.msra.mxu1 %v542_v35  ;;  %1374 = vmatprep.mubr.msk.bf16.mxu1 %vm1519_vm1, %v1518_v0 }
 0x1fc   : > { %1384 = vmatprep.subr.bf16.mxu1 %v1518_v0 }
 0x202   : > { %1375 = vmatmul.mubr.msk.bf16.vlgmr.msra.gmra.mxu1 %vm380_vm0, %v535_v33 }
 0x203   : > { %1385 = vmatpush3.bf16.xpose.msra.mxu1 %v679_v39  ;;  %1386 = vmatprep.mubr.msk.bf16.mxu1 %vm1519_vm1, %v1518_v0 }
 0x204   : > { %1396 = vmatprep.subr.bf16.mxu1 %v1518_v0 }
 0x20a   : > { %1387 = vmatmul.mubr.msk.bf16.vlgmr.msra.gmra.mxu1 %vm380_vm0, %v672_v38 }
 0x20b   : > { %1397 = vmatpush3.bf16.xpose.msra.mxu1 %v816_v41  ;;  %1398 = vmatprep.mubr.msk.bf16.mxu1 %vm1519_vm1, %v1518_v0 }
 0x20c   : > { %1408 = vmatprep.subr.bf16.mxu1 %v1518_v0 }
 0x212   : > { %1399 = vmatmul.mubr.msk.bf16.vlgmr.msra.gmra.mxu1 %vm380_vm0, %v809_v42 }
 0x213   : > { %1410 = vmatprep.mubr.msk.bf16.mxu1 %vm1519_vm1, %v1518_v0 }
 0x2ba   : > { %v1670_v43 = vpop.f32.mrf.mxu1 }
 0x2bc   : > { %v1370_v44 = vpop.f32.mrf.mxu1 }
 0x2be   : > { %v525_v45 = vpop.f32.mrf.mxu1 }
 0x2c0   : > { %v1371_v46 = vpop.f32.mrf.mxu1 }
 0x2c2   : > { %v578_v47 = vpop.f32.mrf.mxu1 }
 0x2c3   : > { %v584_v48 = vmul.f32 0.35355338, %v578_v47 }
 0x2c4   : > { %v1376_v49 = vpop.f32.mrf.mxu1 }
 0x2c5   : > { %v585_v50 = vadd.f32 %v584_v48, %v1626_v12 }
 0x2c6   : > { %v581_v51 = vpop.f32.mrf.mxu1 }
 0x2c7   : > { %v588_v52 = vsel %vm380_vm0, %v585_v50, -inf }
 0x2c8   : > { %589 = vmax.xlane.f32.xlu1 %v588_v52  ;;  %v1377_v53 = vpop.f32.mrf.mxu1 }
 0x2ca   : > { %v715_v54 = vpop.f32.mrf.mxu1 }
 0x2cb   : > { %v721_v55 = vmul.f32 0.35355338, %v715_v54 }
 0x2cc   : > { %v1388_v56 = vpop.f32.mrf.mxu1 }
 0x2cd   : > { %v722_v57 = vadd.f32 %v721_v55, %v1626_v12  ;;  %v967_v56 = vld [vmem:[%s1776_s3] sm:$0xf] }
 0x2ce   : > { %v718_v58 = vpop.f32.mrf.mxu1 }
 0x2cf   : > { %v725_v59 = vsel %vm380_vm0, %v722_v57, -inf }
 0x2d0   : > { %726 = vmax.xlane.f32.xlu0 %v725_v59  ;;  %v1389_v60 = vpop.f32.mrf.mxu1  ;;  %v604_v59 = vld [vmem:[#allocation3 + $0x8] sm:$0xff] }
 0x2d2   : > { %v852_v61 = vpop.f32.mrf.mxu1 }
 0x2d3   : > { %v858_v62 = vmul.f32 0.35355338, %v852_v61 }
 0x2d4   : > { %v1400_v63 = vpop.f32.mrf.mxu1 }
 0x2d5   : > { %v859_v1 = vadd.f32 %v858_v62, %v1626_v12  ;;  %v468_v63 = vld [vmem:[#allocation4] sm:$0xff] }
 0x2d6   : > { %v855_v2 = vpop.f32.mrf.mxu1 }
 0x2d7   : > { %v862_v3 = vsel %vm380_vm0, %v859_v1, -inf  ;;  %v741_v2 = vld [vmem:[#allocation3 + $0x10] sm:$0xff] }
 0x2d8   : > { %863 = vmax.xlane.f32.xlu1 %v862_v3  ;;  %v1401_v4 = vpop.f32.mrf.mxu1 }
 0x351   : > { %v590_v6 = vpop.xlane.xlu1 %589 }
 0x352   : > { %v1681_v7 = vmax.f32 %v1678_v5, %v590_v6 }
 0x354   : > { %v592_v8 = vsub.f32 %v1678_v5, %v1681_v7  ;;  %670 = vst.msk [vmem:[#allocation2 + $0x8] sm:$0xff] %vm371_vm2, %v1681_v7  ;;  %597 = vperm.xlu1 %1468, %v1681_v7  }
 0x356   : > { %v593_v48 = vmul.f32 1.442695, %v592_v8 }
 0x359   : > { %v727_v10 = vpop.xlane.xlu0 %726 }
 0x35a   : > { %v728_v11 = vmax.f32 %v724_v9, %v727_v10 }
 0x35c   : > { %v729_v12 = vsub.f32 %v724_v9, %v728_v11  ;;  %807 = vst.msk [vmem:[#allocation2 + $0x10] sm:$0xff] %vm371_vm2, %v728_v11  ;;  %734 = vperm.xlu0 %1467, %v728_v11   ;;  %v878_v9 = vld [vmem:[#allocation3 + $0x18] sm:$0xff] }
 0x35e   : > { %v730_v35 = vmul.f32 1.442695, %v729_v12 }
 0x361   : > { %v864_v14 = vpop.xlane.xlu1 %863 }
 0x362   : > { %v865_v15 = vmax.f32 %v861_v13, %v864_v14 }
 0x364   : > { %v866_v16 = vsub.f32 %v861_v13, %v865_v15  ;;  %944 = vst.msk [vmem:[#allocation2 + $0x18] sm:$0xff] %vm371_vm2, %v865_v15  ;;  %871 = vperm.xlu1 %1468, %v865_v15  }
 0x366   : > { %v867_v26 = vmul.f32 1.442695, %v866_v16 }
 0x368   : > { %620 = vrot.lane.b32.xlu1 %v1630_v21, %s1526_s15 }
 0x36c   : > { %757 = vrot.lane.b32.xlu1 %v1630_v21, %s1527_s16 }
 0x370   : > { %894 = vrot.lane.b32.xlu1 %v1630_v21, %s1528_s17 }
 0x37b   : > { %463 = vadd.xlane.f32.xlu0 %v462_v17 }
 0x3cf   : > { %v598_v18 = vpop.permute.xlu1 %597 }
 0x3d0   : > { %v600_v19 = vsub.f32 %v585_v50, %v598_v18  ;;  %v460_v50 = vld [vmem:[#allocation3] sm:$0xff] }
 0x3d2   : > { %v601_v20 = vmul.f32 1.442695, %v600_v19 }
 0x3d4   : > { %1472 = vpow2.f32 %v601_v20 }
 0x3d7   : > { %v735_v22 = vpop.permute.xlu0 %734 }
 0x3d8   : > { %v737_v24 = vsub.f32 %v722_v57, %v735_v22  ;;  %v972_v57 = vsel %vm484_vm3, %v967_v56, 0 }
 0x3d9   : > { %1409 = vmatpush3.bf16.msra.mxu1 %v972_v57 }
 0x3da   : > { %v738_v27 = vmul.f32 1.442695, %v737_v24  ;;  %1420 = vmatprep.subr.bf16.mxu1 %v1518_v0  ;;  %v1083_v24 = vld [vmem:[%s1776_s3 + $0x8] sm:$0xf] }
 0x3dc   : > { %1474 = vpow2.f32 %v738_v27 }
 0x3df   : > { %v872_v28 = vpop.permute.xlu1 %871 }
 0x3e0   : > { %v874_v29 = vsub.f32 %v859_v1, %v872_v28 }
 0x3e1   : > { %v1473_v30 = vpop.eup %1472 }
 0x3e2   : > { %v875_v21 = vmul.f32 1.442695, %v874_v29  ;;  %v606_v32 = vsel %vm380_vm0, %v1473_v30, 0.0  ;;  %v619_v36 = vpack.c.bf16 %v1473_v30, %v1473_v30  ;;  %v1088_v29 = vsel %vm484_vm3, %v1083_v24, 0  ;;  %v612_v30 = vld [vmem:[#allocation4 + $0x8] sm:$0xff] }
 0x3e3   : > { %607 = vadd.xlane.f32.xlu1 %v606_v32  ;;  %v621_v33 = vpop.permute.xlu1 %620 }
 0x3e4   : > { %1476 = vpow2.f32 %v875_v21  ;;  %v626_v34 = vsel %vm484_vm3, %v621_v33, 0 }
 0x3e5   : > { %1379 = vmatpush3.bf16.msra.mxu0 %v626_v34  ;;  %1478 = vpow2.f32 %v450_v31  ;;  %v749_v34 = vld [vmem:[#allocation4 + $0x10] sm:$0xff] }
 0x3e6   : > { %1390 = vmatprep.subr.bf16.mxu0 %v1518_v0  ;;  %1480 = vpow2.f32 %v730_v35 }
 0x3e7   : > { %v758_v37 = vpop.permute.xlu1 %757  ;;  %1482 = vpow2.f32 %v867_v26 }
 0x3e8   : > { %1381 = vmatmul.mubr.msk.bf16.vlgmr.msra.gmra.mxu0 %vm380_vm0, %v619_v36  ;;  %v763_v23 = vsel %vm484_vm3, %v758_v37, 0  ;;  %1484 = vpow2.f32 %v593_v48 }
 0x3e9   : > { %v1475_v25 = vpop.eup %1474  ;;  %1391 = vmatpush3.bf16.msra.mxu0 %v763_v23  ;;  %1392 = vmatprep.mubr.msk.bf16.mxu0 %vm1519_vm1, %v1518_v0 }
 0x3ea   : > { %v743_v38 = vsel %vm380_vm0, %v1475_v25, 0.0  ;;  %1402 = vmatprep.subr.bf16.mxu0 %v1518_v0  ;;  %v756_v40 = vpack.c.bf16 %v1475_v25, %v1475_v25 }
 0x3eb   : > { %744 = vadd.xlane.f32.xlu0 %v743_v38  ;;  %v895_v39 = vpop.permute.xlu1 %894 }
 0x3ec   : > { %v900_v41 = vsel %vm484_vm3, %v895_v39, 0  ;;  %v886_v39 = vld [vmem:[#allocation4 + $0x18] sm:$0xff] }
 0x3f0   : > { %1393 = vmatmul.mubr.msk.bf16.vlgmr.msra.gmra.mxu0 %vm380_vm0, %v756_v40 }
 0x3f1   : > { %v1477_v42 = vpop.eup %1476  ;;  %1403 = vmatpush3.bf16.msra.mxu0 %v900_v41  ;;  %1404 = vmatprep.mubr.msk.bf16.mxu0 %vm1519_vm1, %v1518_v0 }
 0x3f2   : > { %v880_v44 = vsel %vm380_vm0, %v1477_v42, 0.0  ;;  %1414 = vmatprep.subr.bf16.mxu0 %v1518_v0  ;;  %v1479_v45 = vpop.eup %1478  ;;  %v893_v46 = vpack.c.bf16 %v1477_v42, %v1477_v42 }
 0x3f3   : > { %881 = vadd.xlane.f32.xlu0 %v880_v44  ;;  %v1481_v47 = vpop.eup %1480  ;;  %v461_v51 = vmul.f32 %v1479_v45, %v460_v50 }
 0x3f4   : > { %471 = vperm.xlu1 %1468, %v1479_v45   ;;  %v1483_v49 = vpop.eup %1482  ;;  %v742_v5 = vmul.f32 %v1481_v47, %v741_v2 }
 0x3f5   : > { %v1485_v54 = vpop.eup %1484  ;;  %v879_v10 = vmul.f32 %v1483_v49, %v878_v9 }
 0x3f6   : > { %v605_v60 = vmul.f32 %v1485_v54, %v604_v59 }
 0x3f8   : > { %1405 = vmatmul.mubr.msk.bf16.vlgmr.msra.gmra.mxu0 %vm380_vm0, %v893_v46  ;;  %752 = vperm.xlu1 %1468, %v1481_v47  }
 0x3f9   : > { %1416 = vmatprep.mubr.msk.bf16.mxu0 %vm1519_vm1, %v1518_v0 }
 0x3fc   : > { %889 = vperm.xlu1 %1468, %v1483_v49  }
 0x404   : > { %v464_v52 = vpop.xlane.xlu0 %463 }
 0x405   : > { %v465_v53 = vadd.f32 %v464_v52, %v461_v51  ;;  %v1141_v52 = vld [vmem:[%s1776_s3 + $0xc] sm:$0xf] }
 0x407   : > { %467 = vst.msk [vmem:[#allocation3] sm:$0xff] %vm371_vm2, %v465_v53 }
 0x409   : > { %615 = vperm.xlu0 %1467, %v1485_v54  }
 0x40e   : > { %v958_v55 = vld [vmem:[#allocation3] sm:$0xff] }
 0x40f   : > { %1486 = vrcp.f32 %v958_v55  ;;  %v1146_v55 = vsel %vm484_vm3, %v1141_v52, 0 }
 0x41c   : > { %v1487_v58 = vpop.eup %1486 }
 0x41d   : > { %962 = vperm.xlu0 %1467, %v1487_v58  }
 0x46c   : > { %v608_v61 = vpop.xlane.xlu1 %607 }
 0x46d   : > { %v609_v62 = vadd.f32 %v608_v61, %v605_v60 }
 0x46f   : > { %610 = vst.msk [vmem:[#allocation3 + $0x8] sm:$0xff] %vm371_vm2, %v609_v62 }
 0x470   : > { %v472_v1 = vpop.permute.xlu1 %471 }
 0x471   : > { %v474_v3 = vmul.f32 %v472_v1, %v468_v63 }
 0x473   : > { %v528_v4 = vadd.f32 %v1670_v43, %v474_v3  ;;  %v1025_v43 = vld [vmem:[%s1776_s3 + $0x4] sm:$0xf] }
 0x474   : > { %v745_v6 = vpop.xlane.xlu0 %744  ;;  %v1030_v14 = vsel %vm484_vm3, %v1025_v43, 0  ;;  %v753_v35 = vpop.permute.xlu1 %752 }
 0x475   : > { %529 = vst.msk [vmem:[#allocation4] sm:$0xff] %vm380_vm0, %v528_v4  ;;  %v746_v7 = vadd.f32 %v745_v6, %v742_v5  ;;  %1415 = vmatpush3.bf16.msra.mxu0 %v1030_v14  ;;  %v755_v23 = vmul.f32 %v753_v35, %v749_v34  ;;  %v948_v6 = vld [vmem:[%s358_s9] sm:$0xff] }
 0x476   : > { %v1016_v8 = vld [vmem:[#allocation3 + $0x8] sm:$0xff]  ;;  %1426 = vmatprep.subr.bf16.mxu0 %v1518_v0 }
 0x477   : > { %747 = vst.msk [vmem:[#allocation3 + $0x10] sm:$0xff] %vm371_vm2, %v746_v7  ;;  %1488 = vrcp.f32 %v1016_v8  ;;  %v1329_v7 = vld [vmem:[%s1777_s4] ss:$0 sm:$0xff] }
 0x478   : > { %v890_v40 = vpop.permute.xlu1 %889 }
 0x479   : > { %v892_v44 = vmul.f32 %v890_v40, %v886_v39 }
 0x47c   : > { %v882_v11 = vpop.xlane.xlu0 %881  ;;  %v957_v20 = vld [vmem:[#allocation4] sm:$0xff] }
 0x47d   : > { %v883_v12 = vadd.f32 %v882_v11, %v879_v10  ;;  %v956_v10 = vadd.f32 %v1329_v7, %v948_v6 }
 0x47e   : > { %v1074_v13 = vld [vmem:[#allocation3 + $0x10] sm:$0xff] }
 0x47f   : > { %884 = vst.msk [vmem:[#allocation3 + $0x18] sm:$0xff] %vm371_vm2, %v883_v12  ;;  %1490 = vrcp.f32 %v1074_v13 }
 0x484   : > { %v1489_v15 = vpop.eup %1488  ;;  %v616_v19 = vpop.permute.xlu0 %615 }
 0x485   : > { %1020 = vperm.xlu1 %1468, %v1489_v15   ;;  %v618_v31 = vmul.f32 %v616_v19, %v612_v30 }
 0x486   : > { %v1132_v16 = vld [vmem:[#allocation3 + $0x18] sm:$0xff] }
 0x487   : > { %1492 = vrcp.f32 %v1132_v16 }
 0x48c   : > { %v1491_v17 = vpop.eup %1490 }
 0x48d   : > { %1078 = vperm.xlu0 %1467, %v1491_v17  }
 0x494   : > { %v1493_v18 = vpop.eup %1492 }
 0x495   : > { %1136 = vperm.xlu1 %1468, %v1493_v18  }
 0x498   : > { %v963_v22 = vpop.permute.xlu0 %962 }
 0x499   : > { %v965_v27 = vmul.f32 %v963_v22, %v957_v20 }
 0x49b   : > { %v966_v28 = vpack.c.bf16 %v965_v27, %v965_v27 }
 0x49d   : > { %1411 = vmatmul.mubr.msk.bf16.vlgmr.msra.gmra.mxu1 %vm380_vm0, %v966_v28 }
 0x49e   : > { %1421 = vmatpush3.bf16.msra.mxu1 %v1088_v29  ;;  %1422 = vmatprep.mubr.msk.bf16.mxu1 %vm1519_vm1, %v1518_v0 }
 0x4a8   : > { %v662_v21 = vpop.f32.mrf.mxu0 }
 0x4a9   : > { %v668_v32 = vadd.f32 %v662_v21, %v618_v31 }
 0x4aa   : > { %v1382_v33 = vpop.f32.mrf.mxu0 }
 0x4ab   : > { %669 = vst.msk [vmem:[#allocation4 + $0x8] sm:$0xff] %vm380_vm0, %v668_v32 }
 0x4ac   : > { %v665_v36 = vpop.f32.mrf.mxu0 }
 0x4ae   : > { %v1383_v37 = vpop.f32.mrf.mxu0 }
 0x4b0   : > { %v799_v25 = vpop.f32.mrf.mxu0 }
 0x4b1   : > { %v805_v26 = vadd.f32 %v799_v25, %v755_v23 }
 0x4b2   : > { %v1394_v38 = vpop.f32.mrf.mxu0  ;;  %v1015_v51 = vld [vmem:[#allocation4 + $0x8] sm:$0xff] }
 0x4b3   : > { %806 = vst.msk [vmem:[#allocation4 + $0x10] sm:$0xff] %vm380_vm0, %v805_v26 }
 0x4b4   : > { %v802_v41 = vpop.f32.mrf.mxu0 }
 0x4b6   : > { %v1395_v42 = vpop.f32.mrf.mxu0 }
 0x4b8   : > { %v936_v45 = vpop.f32.mrf.mxu0 }
 0x4b9   : > { %v942_v46 = vadd.f32 %v936_v45, %v892_v44 }
 0x4ba   : > { %v1406_v47 = vpop.f32.mrf.mxu0  ;;  %v1073_v57 = vld [vmem:[#allocation4 + $0x10] sm:$0xff] }
 0x4bb   : > { %943 = vst.msk [vmem:[#allocation4 + $0x18] sm:$0xff] %vm380_vm0, %v942_v46 }
 0x4bc   : > { %v939_v48 = vpop.f32.mrf.mxu0 }
 0x4be   : > { %v1407_v49 = vpop.f32.mrf.mxu0 }
 0x4c2   : > { %v1131_v61 = vld [vmem:[#allocation4 + $0x18] sm:$0xff] }
 0x500   : > { %v1021_v50 = vpop.permute.xlu1 %1020 }
 0x501   : > { %v1023_v53 = vmul.f32 %v1021_v50, %v1015_v51 }
 0x503   : > { %v1024_v54 = vpack.c.bf16 %v1023_v53, %v1023_v53 }
 0x505   : > { %1417 = vmatmul.mubr.msk.bf16.vlgmr.msra.gmra.mxu0 %vm380_vm0, %v1024_v54 }
 0x506   : > { %1427 = vmatpush3.bf16.msra.mxu0 %v1146_v55  ;;  %1428 = vmatprep.mubr.msk.bf16.mxu0 %vm1519_vm1, %v1518_v0 }
 0x508   : > { %v1079_v56 = vpop.permute.xlu0 %1078 }
 0x509   : > { %v1081_v58 = vmul.f32 %v1079_v56, %v1073_v57 }
 0x50b   : > { %v1082_v59 = vpack.c.bf16 %v1081_v58, %v1081_v58 }
 0x50d   : > { %1423 = vmatmul.mubr.msk.bf16.vlgmr.msra.gmra.mxu1 %vm380_vm0, %v1082_v59 }
 0x510   : > { %v1137_v60 = vpop.permute.xlu1 %1136 }
 0x511   : > { %v1139_v62 = vmul.f32 %v1137_v60, %v1131_v61 }
 0x513   : > { %v1140_v63 = vpack.c.bf16 %v1139_v62, %v1139_v62 }
 0x515   : > { %1429 = vmatmul.mubr.msk.bf16.vlgmr.msra.gmra.mxu0 %vm380_vm0, %v1140_v63 }
 0x55d   : > { %v1008_v1 = vpop.f32.mrf.mxu1 }
 0x55e   : > { %v1014_v13 = vadd.f32 %v1008_v1, %v956_v10 }
 0x55f   : > { %v1412_v2 = vpop.f32.mrf.mxu1 }
 0x561   : > { %v1011_v3 = vpop.f32.mrf.mxu1 }
 0x563   : > { %v1413_v4 = vpop.f32.mrf.mxu1 }
 0x5c5   : > { %v1066_v5 = vpop.f32.mrf.mxu0 }
 0x5c6   : > { %v1072_v14 = vadd.f32 %v1066_v5, %v1014_v13 }
 0x5c7   : > { %v1418_v0 = vpop.f32.mrf.mxu0 }
 0x5c9   : > { %v1069_v8 = vpop.f32.mrf.mxu0 }
 0x5cb   : > { %v1419_v9 = vpop.f32.mrf.mxu0 }
 0x5cd   : > { %v1124_v11 = vpop.f32.mrf.mxu1 }
 0x5ce   : > { %v1130_v16 = vadd.f32 %v1124_v11, %v1072_v14 }
 0x5cf   : > { %v1424_v12 = vpop.f32.mrf.mxu1 }
 0x5d1   : > { %v1127_v43 = vpop.f32.mrf.mxu1 }
 0x5d3   : > { %v1425_v15 = vpop.f32.mrf.mxu1 }
 0x5d5   : > { %v1182_v17 = vpop.f32.mrf.mxu0 }
 0x5d6   : > { %v1188_v18 = vadd.f32 %v1182_v17, %v1130_v16 }
 0x5d7   : > { %v1430_v19 = vpop.f32.mrf.mxu0 }
 0x5d8   : > { %1190 = vst.msk [vmem:[%s365_s13] sm:$0xff] %vm1189_vm4, %v1188_v18 }
 0x5d9   : > { %v1185_v20 = vpop.f32.mrf.mxu0 }
 0x5db   : > { %v1431_v22 = vpop.f32.mrf.mxu0 }
 0x5dc PF: > { %s16_s23 = sadd.s32 1, %s1516_s23   ;;  %s1780_s21 = smov %s1512_s22 }
 0x5dd   : > { %p13_p5 = scmp.ge.s32.totalorder %s16_s23, 4   ;;  %s1781_s22 = smov %s1783_s24 }
 0x5df   :  { %15 = sbr.rel (!%p13_p5) target bundleno = 2 (0x2), region = 100 }

</bundles_post_ra>
